<compile_context>
chip_gen: v7x
topology: tpu7x:2x2x1
jax: 0.10.0
libtpu: 0.0.40
codegen_flags: <defaults>
</compile_context>

<pallas_src>
import numpy as np
import jax
import jax.numpy as jnp
from jax.experimental import pallas as pl
from jax.experimental.pallas import tpu as pltpu

EPS = 1e-5
VMEM_LIMIT = 48 * 1024 * 1024  # fits v7x (64 MiB phys), > default scoped on v5e/v6e


def _round_up(x, m):
    return (x + m - 1) // m * m


def _pick_tile(dim, cands):
    for t in cands:
        if t <= dim and dim % t == 0:
            return t
    return dim


def _pick_strip(H, W, tn, budget=1 << 20):
    """Output-row strip height: divides H, keeps the f32 acc small, lane/sublane
    friendly, and >= 2 strips when the budget allows (parallel axis for v7x)."""
    divs = [d for d in range(1, H + 1) if H % d == 0]
    ok = [d for d in divs
          if d * W * tn * 4 <= budget and ((d * W) % 8 == 0 or d == H)]
    if not ok:
        return H
    th = max(ok)
    if th == H:
        smaller = [d for d in ok if d < H]
        if smaller:
            th = max(smaller)
    return th


# ----------------------------------------------------------------------------
# Kernel 1: tiled matmul + shift + ReLU (1x1 conv + folded BN, no residual)
#   x_ref: (TM, TK) bf16   w_ref: (Kp, Fp) or (Kp, TN) bf16 (VMEM-resident)
#   shift_ref: (1, Fp) f32   o_ref: (TM, TN)   acc_ref: (TM, TN) f32
# ----------------------------------------------------------------------------
def _mm_bn_act_kernel(x_ref, w_ref, shift_ref, o_ref, acc_ref):
    k = pl.program_id(2)
    j = pl.program_id(1)
    tk = x_ref.shape[1]
    tn = o_ref.shape[1]
    koff = pl.multiple_of(k * tk, tk)
    joff = pl.multiple_of(j * tn, tn)

    if w_ref.shape[1] == tn:            # weights already a (Kp, TN) column block
        w_tile = w_ref[pl.ds(koff, tk), :]
    else:                               # fully resident (Kp, Fp) -> slice (k, j)
        w_tile = w_ref[pl.ds(koff, tk), pl.ds(joff, tn)]

    part = jnp.dot(x_ref[...], w_tile, preferred_element_type=jnp.float32)

    @pl.when(k == 0)
    def _first():
        acc_ref[...] = part             # no zero-fill pass

    @pl.when(k > 0)
    def _accum():
        acc_ref[...] += part

    @pl.when(k == pl.num_programs(2) - 1)
    def _finalize():
        y = acc_ref[...] + shift_ref[:, pl.ds(joff, tn)]
        o_ref[...] = jnp.maximum(y, 0.0).astype(o_ref.dtype)


# ----------------------------------------------------------------------------
# Kernel 2: tiled matmul + shift + residual + ReLU (1x1 conv + BN + skip add)
# ----------------------------------------------------------------------------
def _mm_bn_res_act_kernel(x_ref, w_ref, shift_ref, res_ref, o_ref, acc_ref):
    k = pl.program_id(2)
    j = pl.program_id(1)
    tk = x_ref.shape[1]
    tn = o_ref.shape[1]
    koff = pl.multiple_of(k * tk, tk)
    joff = pl.multiple_of(j * tn, tn)

    if w_ref.shape[1] == tn:
        w_tile = w_ref[pl.ds(koff, tk), :]
    else:
        w_tile = w_ref[pl.ds(koff, tk), pl.ds(joff, tn)]

    part = jnp.dot(x_ref[...], w_tile, preferred_element_type=jnp.float32)

    @pl.when(k == 0)
    def _first():
        acc_ref[...] = part

    @pl.when(k > 0)
    def _accum():
        acc_ref[...] += part

    @pl.when(k == pl.num_programs(2) - 1)
    def _finalize():
        y = (acc_ref[...] + shift_ref[:, pl.ds(joff, tn)]
             + res_ref[...].astype(jnp.float32))
        o_ref[...] = jnp.maximum(y, 0.0).astype(o_ref.dtype)


def conv1x1_bn_act(xb, wb, shift, *, out_dtype, res=None):
    """relu((xb @ wb) + shift [+ res]) with bf16 MXU inputs / f32 accumulation.

    xb: (Mp, Kp) bf16 channel-padded, wb: (Kp, Fp) bf16 (BN scale pre-folded),
    shift: (Fp,) f32, res: (Mp, Fp) bf16 or None.  Returns (Mp, Fp) out_dtype.
    """
    Mp, Kp = xb.shape
    _, Fp = wb.shape
    TM = _pick_tile(Mp, (1024, 512, 256, 128, 64, 32, 16, 8))
    TN = _pick_tile(Fp, (512, 256, 128))
    TK = _pick_tile(Kp, (1024, 512, 256, 128))
    shift2d = shift.reshape(1, Fp).astype(jnp.float32)

    # Keep the whole weight VMEM-resident when small (always true for ResNet 1x1).
    w_resident = Kp * Fp * 2 <= (4 << 20)
    w_spec = (pl.BlockSpec((Kp, Fp), lambda i, j, k: (0, 0)) if w_resident
              else pl.BlockSpec((Kp, TN), lambda i, j, k: (0, j)))

    in_specs = [pl.BlockSpec((TM, TK), lambda i, j, k: (i, k)),
                w_spec,
                pl.BlockSpec((1, Fp), lambda i, j, k: (0, 0))]
    args = [xb, wb, shift2d]
    kernel = _mm_bn_act_kernel
    if res is not None:
        in_specs.append(pl.BlockSpec((TM, TN), lambda i, j, k: (i, j)))
        args.append(res)
        kernel = _mm_bn_res_act_kernel

    return pl.pallas_call(
        kernel,
        out_shape=jax.ShapeDtypeStruct((Mp, Fp), out_dtype),
        grid=(Mp // TM, Fp // TN, Kp // TK),
        in_specs=in_specs,
        out_specs=pl.BlockSpec((TM, TN), lambda i, j, k: (i, j)),
        scratch_shapes=[pltpu.VMEM((TM, TN), jnp.float32)],
        compiler_params=pltpu.CompilerParams(
            dimension_semantics=("parallel", "parallel", "arbitrary"),
            vmem_limit_bytes=VMEM_LIMIT),
    )(*args)


# ----------------------------------------------------------------------------
# Kernel 3: 3x3 conv + BN + ReLU, strip-tiled over output rows, 9 in-kernel taps
#   xp_ref: (1, H+2, W+2, Cp) bf16 (whole padded image, resident per n)
#   w_ref:  (3, 3, Cp, TN) bf16 (BN scale pre-folded)
#   shift_ref: (1, Fp) f32   o_ref: (1, TH*W, TN)   acc_ref: (TH*W, TN) f32
# ----------------------------------------------------------------------------
def _conv3x3_bn_relu_kernel(xp_ref, w_ref, shift_ref, o_ref, acc_ref):
    j = pl.program_id(1)
    s = pl.program_id(2)
    thw = o_ref.shape[1]
    tn = o_ref.shape[2]
    W = xp_ref.shape[2] - 2
    Cp = xp_ref.shape[3]
    TH = thw // W
    row0 = s * TH

    # TODO(synk): the per-tap window slice + reshape still materializes a small
    # VMEM copy; a window dot_general / roll-based formulation could remove it,
    # but support for >2D matmul operands in Mosaic is not guaranteed.
    for ky in range(3):
        for kx in range(3):
            win = xp_ref[0, pl.ds(row0 + ky, TH), kx:kx + W, :]
            part = jnp.dot(win.reshape(TH * W, Cp), w_ref[ky, kx, :, :],
                           preferred_element_type=jnp.float32)
            if ky == 0 and kx == 0:
                acc_ref[...] = part          # first tap: no zero-fill
            else:
                acc_ref[...] += part

    joff = pl.multiple_of(j * tn, tn)
    y = acc_ref[...] + shift_ref[:, pl.ds(joff, tn)]
    o_ref[0] = jnp.maximum(y, 0.0).astype(o_ref.dtype)


def conv3x3_bn_relu(xpad, wb, shift, *, out_dtype):
    """3x3 conv (stride 1, pad 1) + folded-BN shift + ReLU.

    xpad: (N, H+2, W+2, Cp) bf16 spatially + channel padded,
    wb: (3, 3, Cp, Fp) bf16, shift: (Fp,) f32.  Returns (N, H*W, Fp) out_dtype.
    """
    N, Hp2, Wp2, Cp = xpad.shape
    H, W = Hp2 - 2, Wp2 - 2
    Fp = wb.shape[3]
    TN = _pick_tile(Fp, (256, 128))
    TH = _pick_strip(H, W, TN)
    shift2d = shift.reshape(1, Fp).astype(jnp.float32)

    return pl.pallas_call(
        _conv3x3_bn_relu_kernel,
        out_shape=jax.ShapeDtypeStruct((N, H * W, Fp), out_dtype),
        grid=(N, Fp // TN, H // TH),
        in_specs=[
            # Whole padded image: block index constant across (j, s) -> one DMA per n.
            pl.BlockSpec((1, Hp2, Wp2, Cp), lambda n, j, s: (n, 0, 0, 0)),
            pl.BlockSpec((3, 3, Cp, TN), lambda n, j, s: (0, 0, 0, j)),
            pl.BlockSpec((1, Fp), lambda n, j, s: (0, 0)),
        ],
        out_specs=pl.BlockSpec((1, TH * W, TN), lambda n, j, s: (n, s, j)),
        scratch_shapes=[pltpu.VMEM((TH * W, TN), jnp.float32)],
        compiler_params=pltpu.CompilerParams(
            dimension_semantics=("parallel", "parallel", "parallel"),
            vmem_limit_bytes=VMEM_LIMIT),
    )(xpad, wb, shift2d)


# ----------------------------------------------------------------------------
# Parameters (deterministic, mirrors IdentityBlock.__init__; BN in eval mode)
# ----------------------------------------------------------------------------
def make_params(key, in_channels, filters):
    f0, f1, f2 = filters
    ks = jax.random.split(key, 6)

    def bn_params(f, base):
        gamma = jnp.linspace(0.5, 1.5, f, dtype=jnp.float32) + 0.01 * base
        beta = jnp.linspace(-0.1, 0.1, f, dtype=jnp.float32)
        mean = jnp.linspace(-0.2, 0.2, f, dtype=jnp.float32)
        var = jnp.linspace(0.5, 1.5, f, dtype=jnp.float32)
        return gamma, beta, mean, var

    return {
        # PyTorch conv weight layout: (out, in, kh, kw)
        "w1": jax.random.normal(ks[0], (f0, in_channels, 1, 1), jnp.float32) * 0.2,
        "b1": jax.random.normal(ks[1], (f0,), jnp.float32) * 0.1,
        "w2": jax.random.normal(ks[2], (f1, f0, 3, 3), jnp.float32) * 0.1,
        "b2": jax.random.normal(ks[3], (f1,), jnp.float32) * 0.1,
        "w3": jax.random.normal(ks[4], (f2, f1, 1, 1), jnp.float32) * 0.2,
        "b3": jax.random.normal(ks[5], (f2,), jnp.float32) * 0.1,
        "bn1": bn_params(f0, 1.0),
        "bn2": bn_params(f1, 2.0),
        "bn3": bn_params(f2, 3.0),
    }


def _affine_from_bn(bn, conv_bias):
    """Fold eval-mode BN (+ conv bias) into per-channel (scale, shift)."""
    gamma, beta, mean, var = bn
    scale = gamma / jnp.sqrt(var + EPS)
    shift = beta - scale * mean + scale * conv_bias
    return scale, shift


# ----------------------------------------------------------------------------
# IdentityBlock forward (Pallas kernels for every conv stage)
# ----------------------------------------------------------------------------
def identity_block_forward(x_nchw, params):
    N, Cin, H, W = x_nchw.shape
    f0 = params["w1"].shape[0]
    f1 = params["w2"].shape[0]
    f2 = params["w3"].shape[0]

    Cin_p = _round_up(Cin, 128)
    F0p = _round_up(f0, 128)
    F1p = _round_up(f1, 128)
    F2p = _round_up(f2, 128)
    M = N * H * W
    Mp = _round_up(M, 8)

    s1, t1 = _affine_from_bn(params["bn1"], params["b1"])
    s2, t2 = _affine_from_bn(params["bn2"], params["b2"])
    s3, t3 = _affine_from_bn(params["bn3"], params["b3"])

    # Pre-pack weights: BN scale folded, bf16, channel-padded (lane-dense).
    w1 = params["w1"].reshape(f0, Cin).T * s1[None, :]
    w1b = jnp.pad(w1.astype(jnp.bfloat16), ((0, Cin_p - Cin), (0, F0p - f0)))
    t1p = jnp.pad(t1.astype(jnp.float32), (0, F0p - f0))

    w2 = jnp.transpose(params["w2"], (2, 3, 1, 0)) * s2[None, None, None, :]
    w2b = jnp.pad(w2.astype(jnp.bfloat16),
                  ((0, 0), (0, 0), (0, F0p - f0), (0, F1p - f1)))
    t2p = jnp.pad(t2.astype(jnp.float32), (0, F1p - f1))

    w3 = params["w3"].reshape(f2, f1).T * s3[None, :]
    w3b = jnp.pad(w3.astype(jnp.bfloat16), ((0, F1p - f1), (0, F2p - f2)))
    t3p = jnp.pad(t3.astype(jnp.float32), (0, F2p - f2))

    # Input: NCHW -> NHWC once, cast bf16, channel-pad to the lane width.
    x_nhwc = jnp.transpose(x_nchw, (0, 2, 3, 1))
    xb = jnp.pad(x_nhwc.astype(jnp.bfloat16),
                 ((0, 0), (0, 0), (0, 0), (0, Cin_p - Cin)))
    x2d = xb.reshape(M, Cin_p)
    x2d_p = jnp.pad(x2d, ((0, Mp - M), (0, 0))) if Mp != M else x2d

    # Stage 1: 1x1 conv + bn1 + relu -> bf16 channel-padded (flows to stage 2).
    h1 = conv1x1_bn_act(x2d_p, w1b, t1p, out_dtype=jnp.bfloat16)        # (Mp, F0p)
    h1 = h1[:M] if Mp != M else h1

    # Stage 2: 3x3 conv + bn2 + relu (strip-tiled, 9 taps accumulated in-kernel).
    h1_pad = jnp.pad(h1.reshape(N, H, W, F0p), ((0, 0), (1, 1), (1, 1), (0, 0)))
    h2 = conv3x3_bn_relu(h1_pad, w2b, t2p, out_dtype=jnp.bfloat16)      # (N, H*W, F1p)
    h2_2d = h2.reshape(M, F1p)
    h2_2d = jnp.pad(h2_2d, ((0, Mp - M), (0, 0))) if Mp != M else h2_2d

    # Stage 3: 1x1 conv + bn3 + skip + relu; residual is the padded bf16 input.
    res = x2d_p
    if F2p != Cin_p:  # identity block implies f2 == Cin; guard anyway
        res = (res[:, :F2p] if Cin_p > F2p
               else jnp.pad(res, ((0, 0), (0, F2p - Cin_p))))
    h3 = conv1x1_bn_act(h2_2d, w3b, t3p, out_dtype=jnp.float32, res=res)  # (Mp, F2p)
    h3 = h3[:M] if Mp != M else h3

    return h3[:, :f2].reshape(N, H, W, f2).transpose(0, 3, 1, 2)        # NCHW


# ----------------------------------------------------------------------------
# Pure-JAX reference (PyTorch eval-mode forward) for validation
# ----------------------------------------------------------------------------
def reference_forward(x_nchw, params):
    def conv(x, w, b, pad):
        y = jax.lax.conv_general_dilated(
            x, w, window_strides=(1, 1), padding=[(pad, pad), (pad, pad)],
            dimension_numbers=("NCHW", "OIHW", "NCHW"))
        return y + b[None, :, None, None]

    def bn(z, bn_p):
        g, be, m, v = bn_p
        return (z - m[None, :, None, None]) / jnp.sqrt(v[None, :, None, None] + EPS) \
            * g[None, :, None, None] + be[None, :, None, None]

    relu = lambda z: jnp.maximum(z, 0.0)
    h = relu(bn(conv(x_nchw, params["w1"], params["b1"], 0), params["bn1"]))
    h = relu(bn(conv(h, params["w2"], params["b2"], 1), params["bn2"]))
    h = bn(conv(h, params["w3"], params["b3"], 0), params["bn3"])
    h = h + x_nchw
    return relu(h)


if __name__ == "__main__":
    # Small shapes consistent with IdentityBlock: filters[2] == in_channels.
    N, Cin, H, W = 2, 4, 16, 16
    filters = (4, 4, 4)

    key = jax.random.PRNGKey(0)
    kx, kp = jax.random.split(key)
    x = jax.random.normal(kx, (N, Cin, H, W), jnp.float32)
    params = make_params(kp, Cin, filters)

    fwd = jax.jit(identity_block_forward)
    out = jax.block_until_ready(fwd(x, params))

    ref = reference_forward(x, params)
    # bf16 MXU inputs + bf16 intermediate activations, f32 accumulation.
    np.testing.assert_allclose(np.asarray(out), np.asarray(ref),
                               rtol=5e-2, atol=5e-2)

    print("KERNEL_OK")
</pallas_src>

<mosaic_0001>
module attributes {stable_mosaic.version = 11 : i64} {
  func.func @_mm_bn_act_kernel(%arg0: i32, %arg1: i32, %arg2: i32, %arg3: memref<512x128xbf16, #tpu.memory_space<vmem>>, %arg4: memref<128x128xbf16, #tpu.memory_space<vmem>>, %arg5: memref<1x128xf32, #tpu.memory_space<vmem>>, %arg6: memref<512x128xbf16, #tpu.memory_space<vmem>>, %arg7: memref<512x128xf32, #tpu.memory_space<vmem>>) attributes {dimension_semantics = [#tpu.dimension_semantics<parallel>, #tpu.dimension_semantics<parallel>, #tpu.dimension_semantics<arbitrary>], iteration_bounds = array<i64: 1, 1, 1>, scalar_prefetch = 0 : i64, scratch_operands = 1 : i64, tpu.core_type = #tpu.core_type<tc>, window_params = [{transform_indices = @transform_0, window_bounds = array<i64: 512, 128>}, {pipeline_mode = #tpu.pipeline_mode<synchronous>, transform_indices = @transform_1, window_bounds = array<i64: 128, 128>}, {pipeline_mode = #tpu.pipeline_mode<synchronous>, transform_indices = @transform_2, window_bounds = array<i64: 1, 128>}, {transform_indices = @transform_3, window_bounds = array<i64: 512, 128>}]} {
    %c128_i32 = arith.constant 128 : i32
    %0 = arith.muli %arg2, %c128_i32 : i32
    %1 = tpu.assume_multiple %0, 128 : i32
    %c128_i32_0 = arith.constant 128 : i32
    %2 = arith.muli %arg1, %c128_i32_0 : i32
    %3 = tpu.assume_multiple %2, 128 : i32
    %4 = arith.index_cast %1 : i32 to index
    %c0 = arith.constant 0 : index
    %5 = vector.load %arg4[%4, %c0] : memref<128x128xbf16, #tpu.memory_space<vmem>>, vector<128x128xbf16>
    %c0_1 = arith.constant 0 : index
    %c0_2 = arith.constant 0 : index
    %6 = vector.load %arg3[%c0_1, %c0_2] : memref<512x128xbf16, #tpu.memory_space<vmem>>, vector<512x128xbf16>
    %cst = arith.constant dense<0.000000e+00> : vector<512x128xf32>
    %7 = tpu.matmul %6, %5, %cst {dimension_numbers = #tpu.dot_dimension_numbers<[1], [0], [0], [1], [0, 0, 1, 1], [], []>} : vector<512x128xbf16>, vector<128x128xbf16>, vector<512x128xf32> -> vector<512x128xf32>
    %c0_i32 = arith.constant 0 : i32
    %8 = arith.cmpi eq, %arg2, %c0_i32 : i32
    %9 = arith.extui %8 : i1 to i32
    %c0_i32_3 = arith.constant 0 : i32
    %10 = arith.cmpi ne, %9, %c0_i32_3 : i32
    scf.if %10 {
      %c0_8 = arith.constant 0 : index
      %c0_9 = arith.constant 0 : index
      %17 = vector.load %arg7[%c0_8, %c0_9] : memref<512x128xf32, #tpu.memory_space<vmem>>, vector<512x128xf32>
      tpu.vector_store %arg7[%c0_8, %c0_9], %7 {strides = array<i32>} : memref<512x128xf32, #tpu.memory_space<vmem>>, vector<512x128xf32>,
    } else {
    }
    %c0_i32_4 = arith.constant 0 : i32
    %11 = arith.cmpi sgt, %arg2, %c0_i32_4 : i32
    %12 = arith.extui %11 : i1 to i32
    %c0_i32_5 = arith.constant 0 : i32
    %13 = arith.cmpi ne, %12, %c0_i32_5 : i32
    scf.if %13 {
      %c0_8 = arith.constant 0 : index
      %c0_9 = arith.constant 0 : index
      %17 = vector.load %arg7[%c0_8, %c0_9] : memref<512x128xf32, #tpu.memory_space<vmem>>, vector<512x128xf32>
      %18 = arith.addf %17, %7 : vector<512x128xf32>
      %c0_10 = arith.constant 0 : index
      %c0_11 = arith.constant 0 : index
      %19 = vector.load %arg7[%c0_10, %c0_11] : memref<512x128xf32, #tpu.memory_space<vmem>>, vector<512x128xf32>
      tpu.vector_store %arg7[%c0_10, %c0_11], %18 {strides = array<i32>} : memref<512x128xf32, #tpu.memory_space<vmem>>, vector<512x128xf32>,
    } else {
    }
    %c0_i32_6 = arith.constant 0 : i32
    %14 = arith.cmpi eq, %arg2, %c0_i32_6 : i32
    %15 = arith.extui %14 : i1 to i32
    %c0_i32_7 = arith.constant 0 : i32
    %16 = arith.cmpi ne, %15, %c0_i32_7 : i32
    scf.if %16 {
      %c0_8 = arith.constant 0 : index
      %c0_9 = arith.constant 0 : index
      %17 = vector.load %arg7[%c0_8, %c0_9] : memref<512x128xf32, #tpu.memory_space<vmem>>, vector<512x128xf32>
      %c0_10 = arith.constant 0 : index
      %18 = arith.index_cast %3 : i32 to index
      %19 = vector.load %arg5[%c0_10, %18] : memref<1x128xf32, #tpu.memory_space<vmem>>, vector<1x128xf32>
      %20 = vector.broadcast %19 : vector<1x128xf32> to vector<512x128xf32>
      %21 = arith.addf %17, %20 : vector<512x128xf32>
      %cst_11 = arith.constant 0.000000e+00 : f32
      %22 = vector.broadcast %cst_11 : f32 to vector<512x128xf32>
      %23 = arith.maximumf %21, %22 : vector<512x128xf32>
      %24 = arith.truncf %23 : vector<512x128xf32> to vector<512x128xbf16>
      %c0_12 = arith.constant 0 : index
      %c0_13 = arith.constant 0 : index
      %25 = vector.load %arg6[%c0_12, %c0_13] : memref<512x128xbf16, #tpu.memory_space<vmem>>, vector<512x128xbf16>
      tpu.vector_store %arg6[%c0_12, %c0_13], %24 {strides = array<i32>} : memref<512x128xbf16, #tpu.memory_space<vmem>>, vector<512x128xbf16>,
    } else {
    }
    return
  }
  func.func @transform_0(%arg0: i32, %arg1: i32, %arg2: i32) -> (i32, i32) {
    %c0_i32 = arith.constant 0 : i32
    return %arg0, %arg2 : i32, i32
  }
  func.func @transform_1(%arg0: i32, %arg1: i32, %arg2: i32) -> (i32, i32) {
    %c0_i32 = arith.constant 0 : i32
    %c0_i32_0 = arith.constant 0 : i32
    %c0_i32_1 = arith.constant 0 : i32
    return %c0_i32, %c0_i32_0 : i32, i32
  }
  func.func @transform_2(%arg0: i32, %arg1: i32, %arg2: i32) -> (i32, i32) {
    %c0_i32 = arith.constant 0 : i32
    %c0_i32_0 = arith.constant 0 : i32
    %c0_i32_1 = arith.constant 0 : i32
    return %c0_i32, %c0_i32_0 : i32, i32
  }
  func.func @transform_3(%arg0: i32, %arg1: i32, %arg2: i32) -> (i32, i32) {
    %c0_i32 = arith.constant 0 : i32
    return %arg0, %arg1 : i32, i32
  }
}

module attributes {stable_mosaic.version = 11 : i64} {
  func.func @_conv3x3_bn_relu_kernel(%arg0: i32, %arg1: i32, %arg2: i32, %arg3: memref<1x18x18x128xbf16, #tpu.memory_space<vmem>>, %arg4: memref<3x3x128x128xbf16, #tpu.memory_space<vmem>>, %arg5: memref<1x128xf32, #tpu.memory_space<vmem>>, %arg6: memref<1x128x128xbf16, #tpu.memory_space<vmem>>, %arg7: memref<128x128xf32, #tpu.memory_space<vmem>>) attributes {dimension_semantics = [#tpu.dimension_semantics<parallel>, #tpu.dimension_semantics<parallel>, #tpu.dimension_semantics<parallel>], iteration_bounds = array<i64: 2, 1, 2>, scalar_prefetch = 0 : i64, scratch_operands = 1 : i64, tpu.core_type = #tpu.core_type<tc>, window_params = [{transform_indices = @transform_0, window_bounds = array<i64: 1, 18, 18, 128>}, {transform_indices = @transform_1, window_bounds = array<i64: 3, 3, 128, 128>}, {pipeline_mode = #tpu.pipeline_mode<synchronous>, transform_indices = @transform_2, window_bounds = array<i64: 1, 128>}, {transform_indices = @transform_3, window_bounds = array<i64: 1, 128, 128>}]} {
    %c8_i32 = arith.constant 8 : i32
    %0 = arith.muli %arg2, %c8_i32 : i32
    %c0_i32 = arith.constant 0 : i32
    %1 = arith.addi %0, %c0_i32 : i32
    %c0 = arith.constant 0 : index
    %2 = arith.index_cast %1 : i32 to index
    %c0_0 = arith.constant 0 : index
    %c0_1 = arith.constant 0 : index
    %3 = vector.load %arg3[%c0, %2, %c0_0, %c0_1] : memref<1x18x18x128xbf16, #tpu.memory_space<vmem>>, vector<1x8x16x128xbf16>
    %4 = vector.shape_cast %3 : vector<1x8x16x128xbf16> to vector<8x16x128xbf16>
    %5 = vector.shape_cast %4 : vector<8x16x128xbf16> to vector<128x128xbf16>
    %c0_2 = arith.constant 0 : index
    %c0_3 = arith.constant 0 : index
    %c0_4 = arith.constant 0 : index
    %c0_5 = arith.constant 0 : index
    %6 = vector.load %arg4[%c0_2, %c0_3, %c0_4, %c0_5] : memref<3x3x128x128xbf16, #tpu.memory_space<vmem>>, vector<1x1x128x128xbf16>
    %7 = vector.shape_cast %6 : vector<1x1x128x128xbf16> to vector<128x128xbf16>
    %cst = arith.constant dense<0.000000e+00> : vector<128x128xf32>
    %8 = tpu.matmul %5, %7, %cst {dimension_numbers = #tpu.dot_dimension_numbers<[1], [0], [0], [1], [0, 0, 1, 1], [], []>} : vector<128x128xbf16>, vector<128x128xbf16>, vector<128x128xf32> -> vector<128x128xf32>
    %c0_6 = arith.constant 0 : index
    %c0_7 = arith.constant 0 : index
    %9 = vector.load %arg7[%c0_6, %c0_7] : memref<128x128xf32, #tpu.memory_space<vmem>>, vector<128x128xf32>
    tpu.vector_store %arg7[%c0_6, %c0_7], %8 {strides = array<i32>} : memref<128x128xf32, #tpu.memory_space<vmem>>, vector<128x128xf32>,
    %c0_i32_8 = arith.constant 0 : i32
    %10 = arith.addi %0, %c0_i32_8 : i32
    %c0_9 = arith.constant 0 : index
    %11 = arith.index_cast %10 : i32 to index
    %c1 = arith.constant 1 : index
    %c0_10 = arith.constant 0 : index
    %12 = vector.load %arg3[%c0_9, %11, %c1, %c0_10] : memref<1x18x18x128xbf16, #tpu.memory_space<vmem>>, vector<1x8x16x128xbf16>
    %13 = vector.shape_cast %12 : vector<1x8x16x128xbf16> to vector<8x16x128xbf16>
    %14 = vector.shape_cast %13 : vector<8x16x128xbf16> to vector<128x128xbf16>
    %c0_11 = arith.constant 0 : index
    %c1_12 = arith.constant 1 : index
    %c0_13 = arith.constant 0 : index
    %c0_14 = arith.constant 0 : index
    %15 = vector.load %arg4[%c0_11, %c1_12, %c0_13, %c0_14] : memref<3x3x128x128xbf16, #tpu.memory_space<vmem>>, vector<1x1x128x128xbf16>
    %16 = vector.shape_cast %15 : vector<1x1x128x128xbf16> to vector<128x128xbf16>
    %cst_15 = arith.constant dense<0.000000e+00> : vector<128x128xf32>
    %17 = tpu.matmul %14, %16, %cst_15 {dimension_numbers = #tpu.dot_dimension_numbers<[1], [0], [0], [1], [0, 0, 1, 1], [], []>} : vector<128x128xbf16>, vector<128x128xbf16>, vector<128x128xf32> -> vector<128x128xf32>
    %c0_16 = arith.constant 0 : index
    %c0_17 = arith.constant 0 : index
    %18 = vector.load %arg7[%c0_16, %c0_17] : memref<128x128xf32, #tpu.memory_space<vmem>>, vector<128x128xf32>
    %19 = arith.addf %18, %17 : vector<128x128xf32>
    %c0_18 = arith.constant 0 : index
    %c0_19 = arith.constant 0 : index
    %20 = vector.load %arg7[%c0_18, %c0_19] : memref<128x128xf32, #tpu.memory_space<vmem>>, vector<128x128xf32>
    tpu.vector_store %arg7[%c0_18, %c0_19], %19 {strides = array<i32>} : memref<128x128xf32, #tpu.memory_space<vmem>>, vector<128x128xf32>,
    %c0_i32_20 = arith.constant 0 : i32
    %21 = arith.addi %0, %c0_i32_20 : i32
    %c0_21 = arith.constant 0 : index
    %22 = arith.index_cast %21 : i32 to index
    %c2 = arith.constant 2 : index
    %c0_22 = arith.constant 0 : index
    %23 = vector.load %arg3[%c0_21, %22, %c2, %c0_22] : memref<1x18x18x128xbf16, #tpu.memory_space<vmem>>, vector<1x8x16x128xbf16>
    %24 = vector.shape_cast %23 : vector<1x8x16x128xbf16> to vector<8x16x128xbf16>
    %25 = vector.shape_cast %24 : vector<8x16x128xbf16> to vector<128x128xbf16>
    %c0_23 = arith.constant 0 : index
    %c2_24 = arith.constant 2 : index
    %c0_25 = arith.constant 0 : index
    %c0_26 = arith.constant 0 : index
    %26 = vector.load %arg4[%c0_23, %c2_24, %c0_25, %c0_26] : memref<3x3x128x128xbf16, #tpu.memory_space<vmem>>, vector<1x1x128x128xbf16>
    %27 = vector.shape_cast %26 : vector<1x1x128x128xbf16> to vector<128x128xbf16>
    %cst_27 = arith.constant dense<0.000000e+00> : vector<128x128xf32>
    %28 = tpu.matmul %25, %27, %cst_27 {dimension_numbers = #tpu.dot_dimension_numbers<[1], [0], [0], [1], [0, 0, 1, 1], [], []>} : vector<128x128xbf16>, vector<128x128xbf16>, vector<128x128xf32> -> vector<128x128xf32>
    %c0_28 = arith.constant 0 : index
    %c0_29 = arith.constant 0 : index
    %29 = vector.load %arg7[%c0_28, %c0_29] : memref<128x128xf32, #tpu.memory_space<vmem>>, vector<128x128xf32>
    %30 = arith.addf %29, %28 : vector<128x128xf32>
    %c0_30 = arith.constant 0 : index
    %c0_31 = arith.constant 0 : index
    %31 = vector.load %arg7[%c0_30, %c0_31] : memref<128x128xf32, #tpu.memory_space<vmem>>, vector<128x128xf32>
    tpu.vector_store %arg7[%c0_30, %c0_31], %30 {strides = array<i32>} : memref<128x128xf32, #tpu.memory_space<vmem>>, vector<128x128xf32>,
    %c1_i32 = arith.constant 1 : i32
    %32 = arith.addi %0, %c1_i32 : i32
    %c0_32 = arith.constant 0 : index
    %33 = arith.index_cast %32 : i32 to index
    %c0_33 = arith.constant 0 : index
    %c0_34 = arith.constant 0 : index
    %34 = vector.load %arg3[%c0_32, %33, %c0_33, %c0_34] : memref<1x18x18x128xbf16, #tpu.memory_space<vmem>>, vector<1x8x16x128xbf16>
    %35 = vector.shape_cast %34 : vector<1x8x16x128xbf16> to vector<8x16x128xbf16>
    %36 = vector.shape_cast %35 : vector<8x16x128xbf16> to vector<128x128xbf16>
    %c1_35 = arith.constant 1 : index
    %c0_36 = arith.constant 0 : index
    %c0_37 = arith.constant 0 : index
    %c0_38 = arith.constant 0 : index
    %37 = vector.load %arg4[%c1_35, %c0_36, %c0_37, %c0_38] : memref<3x3x128x128xbf16, #tpu.memory_space<vmem>>, vector<1x1x128x128xbf16>
    %38 = vector.shape_cast %37 : vector<1x1x128x128xbf16> to vector<128x128xbf16>
    %cst_39 = arith.constant dense<0.000000e+00> : vector<128x128xf32>
    %39 = tpu.matmul %36, %38, %cst_39 {dimension_numbers = #tpu.dot_dimension_numbers<[1], [0], [0], [1], [0, 0, 1, 1], [], []>} : vector<128x128xbf16>, vector<128x128xbf16>, vector<128x128xf32> -> vector<128x128xf32>
    %c0_40 = arith.constant 0 : index
    %c0_41 = arith.constant 0 : index
    %40 = vector.load %arg7[%c0_40, %c0_41] : memref<128x128xf32, #tpu.memory_space<vmem>>, vector<128x128xf32>
    %41 = arith.addf %40, %39 : vector<128x128xf32>
    %c0_42 = arith.constant 0 : index
    %c0_43 = arith.constant 0 : index
    %42 = vector.load %arg7[%c0_42, %c0_43] : memref<128x128xf32, #tpu.memory_space<vmem>>, vector<128x128xf32>
    tpu.vector_store %arg7[%c0_42, %c0_43], %41 {strides = array<i32>} : memref<128x128xf32, #tpu.memory_space<vmem>>, vector<128x128xf32>,
    %c1_i32_44 = arith.constant 1 : i32
    %43 = arith.addi %0, %c1_i32_44 : i32
    %c0_45 = arith.constant 0 : index
    %44 = arith.index_cast %43 : i32 to index
    %c1_46 = arith.constant 1 : index
    %c0_47 = arith.constant 0 : index
    %45 = vector.load %arg3[%c0_45, %44, %c1_46, %c0_47] : memref<1x18x18x128xbf16, #tpu.memory_space<vmem>>, vector<1x8x16x128xbf16>
    %46 = vector.shape_cast %45 : vector<1x8x16x128xbf16> to vector<8x16x128xbf16>
    %47 = vector.shape_cast %46 : vector<8x16x128xbf16> to vector<128x128xbf16>
    %c1_48 = arith.constant 1 : index
    %c1_49 = arith.constant 1 : index
    %c0_50 = arith.constant 0 : index
    %c0_51 = arith.constant 0 : index
    %48 = vector.load %arg4[%c1_48, %c1_49, %c0_50, %c0_51] : memref<3x3x128x128xbf16, #tpu.memory_space<vmem>>, vector<1x1x128x128xbf16>
    %49 = vector.shape_cast %48 : vector<1x1x128x128xbf16> to vector<128x128xbf16>
    %cst_52 = arith.constant dense<0.000000e+00> : vector<128x128xf32>
    %50 = tpu.matmul %47, %49, %cst_52 {dimension_numbers = #tpu.dot_dimension_numbers<[1], [0], [0], [1], [0, 0, 1, 1], [], []>} : vector<128x128xbf16>, vector<128x128xbf16>, vector<128x128xf32> -> vector<128x128xf32>
    %c0_53 = arith.constant 0 : index
    %c0_54 = arith.constant 0 : index
    %51 = vector.load %arg7[%c0_53, %c0_54] : memref<128x128xf32, #tpu.memory_space<vmem>>, vector<128x128xf32>
    %52 = arith.addf %51, %50 : vector<128x128xf32>
    %c0_55 = arith.constant 0 : index
    %c0_56 = arith.constant 0 : index
    %53 = vector.load %arg7[%c0_55, %c0_56] : memref<128x128xf32, #tpu.memory_space<vmem>>, vector<128x128xf32>
    tpu.vector_store %arg7[%c0_55, %c0_56], %52 {strides = array<i32>} : memref<128x128xf32, #tpu.memory_space<vmem>>, vector<128x128xf32>,
    %c1_i32_57 = arith.constant 1 : i32
    %54 = arith.addi %0, %c1_i32_57 : i32
    %c0_58 = arith.constant 0 : index
    %55 = arith.index_cast %54 : i32 to index
    %c2_59 = arith.constant 2 : index
    %c0_60 = arith.constant 0 : index
    %56 = vector.load %arg3[%c0_58, %55, %c2_59, %c0_60] : memref<1x18x18x128xbf16, #tpu.memory_space<vmem>>, vector<1x8x16x128xbf16>
    %57 = vector.shape_cast %56 : vector<1x8x16x128xbf16> to vector<8x16x128xbf16>
    %58 = vector.shape_cast %57 : vector<8x16x128xbf16> to vector<128x128xbf16>
    %c1_61 = arith.constant 1 : index
    %c2_62 = arith.constant 2 : index
    %c0_63 = arith.constant 0 : index
    %c0_64 = arith.constant 0 : index
    %59 = vector.load %arg4[%c1_61, %c2_62, %c0_63, %c0_64] : memref<3x3x128x128xbf16, #tpu.memory_space<vmem>>, vector<1x1x128x128xbf16>
    %60 = vector.shape_cast %59 : vector<1x1x128x128xbf16> to vector<128x128xbf16>
    %cst_65 = arith.constant dense<0.000000e+00> : vector<128x128xf32>
    %61 = tpu.matmul %58, %60, %cst_65 {dimension_numbers = #tpu.dot_dimension_numbers<[1], [0], [0], [1], [0, 0, 1, 1], [], []>} : vector<128x128xbf16>, vector<128x128xbf16>, vector<128x128xf32> -> vector<128x128xf32>
    %c0_66 = arith.constant 0 : index
    %c0_67 = arith.constant 0 : index
    %62 = vector.load %arg7[%c0_66, %c0_67] : memref<128x128xf32, #tpu.memory_space<vmem>>, vector<128x128xf32>
    %63 = arith.addf %62, %61 : vector<128x128xf32>
    %c0_68 = arith.constant 0 : index
    %c0_69 = arith.constant 0 : index
    %64 = vector.load %arg7[%c0_68, %c0_69] : memref<128x128xf32, #tpu.memory_space<vmem>>, vector<128x128xf32>
    tpu.vector_store %arg7[%c0_68, %c0_69], %63 {strides = array<i32>} : memref<128x128xf32, #tpu.memory_space<vmem>>, vector<128x128xf32>,
    %c2_i32 = arith.constant 2 : i32
    %65 = arith.addi %0, %c2_i32 : i32
    %c0_70 = arith.constant 0 : index
    %66 = arith.index_cast %65 : i32 to index
    %c0_71 = arith.constant 0 : index
    %c0_72 = arith.constant 0 : index
    %67 = vector.load %arg3[%c0_70, %66, %c0_71, %c0_72] : memref<1x18x18x128xbf16, #tpu.memory_space<vmem>>, vector<1x8x16x128xbf16>
    %68 = vector.shape_cast %67 : vector<1x8x16x128xbf16> to vector<8x16x128xbf16>
    %69 = vector.shape_cast %68 : vector<8x16x128xbf16> to vector<128x128xbf16>
    %c2_73 = arith.constant 2 : index
    %c0_74 = arith.constant 0 : index
    %c0_75 = arith.constant 0 : index
    %c0_76 = arith.constant 0 : index
    %70 = vector.load %arg4[%c2_73, %c0_74, %c0_75, %c0_76] : memref<3x3x128x128xbf16, #tpu.memory_space<vmem>>, vector<1x1x128x128xbf16>
    %71 = vector.shape_cast %70 : vector<1x1x128x128xbf16> to vector<128x128xbf16>
    %cst_77 = arith.constant dense<0.000000e+00> : vector<128x128xf32>
    %72 = tpu.matmul %69, %71, %cst_77 {dimension_numbers = #tpu.dot_dimension_numbers<[1], [0], [0], [1], [0, 0, 1, 1], [], []>} : vector<128x128xbf16>, vector<128x128xbf16>, vector<128x128xf32> -> vector<128x128xf32>
    %c0_78 = arith.constant 0 : index
    %c0_79 = arith.constant 0 : index
    %73 = vector.load %arg7[%c0_78, %c0_79] : memref<128x128xf32, #tpu.memory_space<vmem>>, vector<128x128xf32>
    %74 = arith.addf %73, %72 : vector<128x128xf32>
    %c0_80 = arith.constant 0 : index
    %c0_81 = arith.constant 0 : index
    %75 = vector.load %arg7[%c0_80, %c0_81] : memref<128x128xf32, #tpu.memory_space<vmem>>, vector<128x128xf32>
    tpu.vector_store %arg7[%c0_80, %c0_81], %74 {strides = array<i32>} : memref<128x128xf32, #tpu.memory_space<vmem>>, vector<128x128xf32>,
    %c2_i32_82 = arith.constant 2 : i32
    %76 = arith.addi %0, %c2_i32_82 : i32
    %c0_83 = arith.constant 0 : index
    %77 = arith.index_cast %76 : i32 to index
    %c1_84 = arith.constant 1 : index
    %c0_85 = arith.constant 0 : index
    %78 = vector.load %arg3[%c0_83, %77, %c1_84, %c0_85] : memref<1x18x18x128xbf16, #tpu.memory_space<vmem>>, vector<1x8x16x128xbf16>
    %79 = vector.shape_cast %78 : vector<1x8x16x128xbf16> to vector<8x16x128xbf16>
    %80 = vector.shape_cast %79 : vector<8x16x128xbf16> to vector<128x128xbf16>
    %c2_86 = arith.constant 2 : index
    %c1_87 = arith.constant 1 : index
    %c0_88 = arith.constant 0 : index
    %c0_89 = arith.constant 0 : index
    %81 = vector.load %arg4[%c2_86, %c1_87, %c0_88, %c0_89] : memref<3x3x128x128xbf16, #tpu.memory_space<vmem>>, vector<1x1x128x128xbf16>
    %82 = vector.shape_cast %81 : vector<1x1x128x128xbf16> to vector<128x128xbf16>
    %cst_90 = arith.constant dense<0.000000e+00> : vector<128x128xf32>
    %83 = tpu.matmul %80, %82, %cst_90 {dimension_numbers = #tpu.dot_dimension_numbers<[1], [0], [0], [1], [0, 0, 1, 1], [], []>} : vector<128x128xbf16>, vector<128x128xbf16>, vector<128x128xf32> -> vector<128x128xf32>
    %c0_91 = arith.constant 0 : index
    %c0_92 = arith.constant 0 : index
    %84 = vector.load %arg7[%c0_91, %c0_92] : memref<128x128xf32, #tpu.memory_space<vmem>>, vector<128x128xf32>
    %85 = arith.addf %84, %83 : vector<128x128xf32>
    %c0_93 = arith.constant 0 : index
    %c0_94 = arith.constant 0 : index
    %86 = vector.load %arg7[%c0_93, %c0_94] : memref<128x128xf32, #tpu.memory_space<vmem>>, vector<128x128xf32>
    tpu.vector_store %arg7[%c0_93, %c0_94], %85 {strides = array<i32>} : memref<128x128xf32, #tpu.memory_space<vmem>>, vector<128x128xf32>,
    %c2_i32_95 = arith.constant 2 : i32
    %87 = arith.addi %0, %c2_i32_95 : i32
    %c0_96 = arith.constant 0 : index
    %88 = arith.index_cast %87 : i32 to index
    %c2_97 = arith.constant 2 : index
    %c0_98 = arith.constant 0 : index
    %89 = vector.load %arg3[%c0_96, %88, %c2_97, %c0_98] : memref<1x18x18x128xbf16, #tpu.memory_space<vmem>>, vector<1x8x16x128xbf16>
    %90 = vector.shape_cast %89 : vector<1x8x16x128xbf16> to vector<8x16x128xbf16>
    %91 = vector.shape_cast %90 : vector<8x16x128xbf16> to vector<128x128xbf16>
    %c2_99 = arith.constant 2 : index
    %c2_100 = arith.constant 2 : index
    %c0_101 = arith.constant 0 : index
    %c0_102 = arith.constant 0 : index
    %92 = vector.load %arg4[%c2_99, %c2_100, %c0_101, %c0_102] : memref<3x3x128x128xbf16, #tpu.memory_space<vmem>>, vector<1x1x128x128xbf16>
    %93 = vector.shape_cast %92 : vector<1x1x128x128xbf16> to vector<128x128xbf16>
    %cst_103 = arith.constant dense<0.000000e+00> : vector<128x128xf32>
    %94 = tpu.matmul %91, %93, %cst_103 {dimension_numbers = #tpu.dot_dimension_numbers<[1], [0], [0], [1], [0, 0, 1, 1], [], []>} : vector<128x128xbf16>, vector<128x128xbf16>, vector<128x128xf32> -> vector<128x128xf32>
    %c0_104 = arith.constant 0 : index
    %c0_105 = arith.constant 0 : index
    %95 = vector.load %arg7[%c0_104, %c0_105] : memref<128x128xf32, #tpu.memory_space<vmem>>, vector<128x128xf32>
    %96 = arith.addf %95, %94 : vector<128x128xf32>
    %c0_106 = arith.constant 0 : index
    %c0_107 = arith.constant 0 : index
    %97 = vector.load %arg7[%c0_106, %c0_107] : memref<128x128xf32, #tpu.memory_space<vmem>>, vector<128x128xf32>
    tpu.vector_store %arg7[%c0_106, %c0_107], %96 {strides = array<i32>} : memref<128x128xf32, #tpu.memory_space<vmem>>, vector<128x128xf32>,
    %c128_i32 = arith.constant 128 : i32
    %98 = arith.muli %arg1, %c128_i32 : i32
    %99 = tpu.assume_multiple %98, 128 : i32
    %c0_108 = arith.constant 0 : index
    %c0_109 = arith.constant 0 : index
    %100 = vector.load %arg7[%c0_108, %c0_109] : memref<128x128xf32, #tpu.memory_space<vmem>>, vector<128x128xf32>
    %c0_110 = arith.constant 0 : index
    %101 = arith.index_cast %99 : i32 to index
    %102 = vector.load %arg5[%c0_110, %101] : memref<1x128xf32, #tpu.memory_space<vmem>>, vector<1x128xf32>
    %103 = vector.broadcast %102 : vector<1x128xf32> to vector<128x128xf32>
    %104 = arith.addf %100, %103 : vector<128x128xf32>
    %cst_111 = arith.constant 0.000000e+00 : f32
    %105 = vector.broadcast %cst_111 : f32 to vector<128x128xf32>
    %106 = arith.maximumf %104, %105 : vector<128x128xf32>
    %107 = arith.truncf %106 : vector<128x128xf32> to vector<128x128xbf16>
    %c0_112 = arith.constant 0 : index
    %c0_113 = arith.constant 0 : index
    %c0_114 = arith.constant 0 : index
    %108 = vector.load %arg6[%c0_112, %c0_113, %c0_114] : memref<1x128x128xbf16, #tpu.memory_space<vmem>>, vector<1x128x128xbf16>
    %109 = vector.shape_cast %108 : vector<1x128x128xbf16> to vector<128x128xbf16>
    %110 = vector.shape_cast %107 : vector<128x128xbf16> to vector<1x128x128xbf16>
    tpu.vector_store %arg6[%c0_112, %c0_113, %c0_114], %110 {strides = array<i32>} : memref<1x128x128xbf16, #tpu.memory_space<vmem>>, vector<1x128x128xbf16>,
    return
  }
  func.func @transform_0(%arg0: i32, %arg1: i32, %arg2: i32) -> (i32, i32, i32, i32) {
    %c0_i32 = arith.constant 0 : i32
    %c0_i32_0 = arith.constant 0 : i32
    %c0_i32_1 = arith.constant 0 : i32
    %c0_i32_2 = arith.constant 0 : i32
    return %arg0, %c0_i32, %c0_i32_0, %c0_i32_1 : i32, i32, i32, i32
  }
  func.func @transform_1(%arg0: i32, %arg1: i32, %arg2: i32) -> (i32, i32, i32, i32) {
    %c0_i32 = arith.constant 0 : i32
    %c0_i32_0 = arith.constant 0 : i32
    %c0_i32_1 = arith.constant 0 : i32
    %c0_i32_2 = arith.constant 0 : i32
    return %c0_i32, %c0_i32_0, %c0_i32_1, %arg1 : i32, i32, i32, i32
  }
  func.func @transform_2(%arg0: i32, %arg1: i32, %arg2: i32) -> (i32, i32) {
    %c0_i32 = arith.constant 0 : i32
    %c0_i32_0 = arith.constant 0 : i32
    %c0_i32_1 = arith.constant 0 : i32
    return %c0_i32, %c0_i32_0 : i32, i32
  }
  func.func @transform_3(%arg0: i32, %arg1: i32, %arg2: i32) -> (i32, i32, i32) {
    %c0_i32 = arith.constant 0 : i32
    return %arg0, %arg2, %arg1 : i32, i32, i32
  }
}

module attributes {stable_mosaic.version = 11 : i64} {
  func.func @_mm_bn_res_act_kernel(%arg0: i32, %arg1: i32, %arg2: i32, %arg3: memref<512x128xbf16, #tpu.memory_space<vmem>>, %arg4: memref<128x128xbf16, #tpu.memory_space<vmem>>, %arg5: memref<1x128xf32, #tpu.memory_space<vmem>>, %arg6: memref<512x128xbf16, #tpu.memory_space<vmem>>, %arg7: memref<512x128xf32, #tpu.memory_space<vmem>>, %arg8: memref<512x128xf32, #tpu.memory_space<vmem>>) attributes {dimension_semantics = [#tpu.dimension_semantics<parallel>, #tpu.dimension_semantics<parallel>, #tpu.dimension_semantics<arbitrary>], iteration_bounds = array<i64: 1, 1, 1>, scalar_prefetch = 0 : i64, scratch_operands = 1 : i64, tpu.core_type = #tpu.core_type<tc>, window_params = [{transform_indices = @transform_0, window_bounds = array<i64: 512, 128>}, {pipeline_mode = #tpu.pipeline_mode<synchronous>, transform_indices = @transform_1, window_bounds = array<i64: 128, 128>}, {pipeline_mode = #tpu.pipeline_mode<synchronous>, transform_indices = @transform_2, window_bounds = array<i64: 1, 128>}, {transform_indices = @transform_3, window_bounds = array<i64: 512, 128>}, {transform_indices = @transform_4, window_bounds = array<i64: 512, 128>}]} {
    %c128_i32 = arith.constant 128 : i32
    %0 = arith.muli %arg2, %c128_i32 : i32
    %1 = tpu.assume_multiple %0, 128 : i32
    %c128_i32_0 = arith.constant 128 : i32
    %2 = arith.muli %arg1, %c128_i32_0 : i32
    %3 = tpu.assume_multiple %2, 128 : i32
    %4 = arith.index_cast %1 : i32 to index
    %c0 = arith.constant 0 : index
    %5 = vector.load %arg4[%4, %c0] : memref<128x128xbf16, #tpu.memory_space<vmem>>, vector<128x128xbf16>
    %c0_1 = arith.constant 0 : index
    %c0_2 = arith.constant 0 : index
    %6 = vector.load %arg3[%c0_1, %c0_2] : memref<512x128xbf16, #tpu.memory_space<vmem>>, vector<512x128xbf16>
    %cst = arith.constant dense<0.000000e+00> : vector<512x128xf32>
    %7 = tpu.matmul %6, %5, %cst {dimension_numbers = #tpu.dot_dimension_numbers<[1], [0], [0], [1], [0, 0, 1, 1], [], []>} : vector<512x128xbf16>, vector<128x128xbf16>, vector<512x128xf32> -> vector<512x128xf32>
    %c0_i32 = arith.constant 0 : i32
    %8 = arith.cmpi eq, %arg2, %c0_i32 : i32
    %9 = arith.extui %8 : i1 to i32
    %c0_i32_3 = arith.constant 0 : i32
    %10 = arith.cmpi ne, %9, %c0_i32_3 : i32
    scf.if %10 {
      %c0_8 = arith.constant 0 : index
      %c0_9 = arith.constant 0 : index
      %17 = vector.load %arg8[%c0_8, %c0_9] : memref<512x128xf32, #tpu.memory_space<vmem>>, vector<512x128xf32>
      tpu.vector_store %arg8[%c0_8, %c0_9], %7 {strides = array<i32>} : memref<512x128xf32, #tpu.memory_space<vmem>>, vector<512x128xf32>,
    } else {
    }
    %c0_i32_4 = arith.constant 0 : i32
    %11 = arith.cmpi sgt, %arg2, %c0_i32_4 : i32
    %12 = arith.extui %11 : i1 to i32
    %c0_i32_5 = arith.constant 0 : i32
    %13 = arith.cmpi ne, %12, %c0_i32_5 : i32
    scf.if %13 {
      %c0_8 = arith.constant 0 : index
      %c0_9 = arith.constant 0 : index
      %17 = vector.load %arg8[%c0_8, %c0_9] : memref<512x128xf32, #tpu.memory_space<vmem>>, vector<512x128xf32>
      %18 = arith.addf %17, %7 : vector<512x128xf32>
      %c0_10 = arith.constant 0 : index
      %c0_11 = arith.constant 0 : index
      %19 = vector.load %arg8[%c0_10, %c0_11] : memref<512x128xf32, #tpu.memory_space<vmem>>, vector<512x128xf32>
      tpu.vector_store %arg8[%c0_10, %c0_11], %18 {strides = array<i32>} : memref<512x128xf32, #tpu.memory_space<vmem>>, vector<512x128xf32>,
    } else {
    }
    %c0_i32_6 = arith.constant 0 : i32
    %14 = arith.cmpi eq, %arg2, %c0_i32_6 : i32
    %15 = arith.extui %14 : i1 to i32
    %c0_i32_7 = arith.constant 0 : i32
    %16 = arith.cmpi ne, %15, %c0_i32_7 : i32
    scf.if %16 {
      %c0_8 = arith.constant 0 : index
      %c0_9 = arith.constant 0 : index
      %17 = vector.load %arg8[%c0_8, %c0_9] : memref<512x128xf32, #tpu.memory_space<vmem>>, vector<512x128xf32>
      %c0_10 = arith.constant 0 : index
      %18 = arith.index_cast %3 : i32 to index
      %19 = vector.load %arg5[%c0_10, %18] : memref<1x128xf32, #tpu.memory_space<vmem>>, vector<1x128xf32>
      %20 = vector.broadcast %19 : vector<1x128xf32> to vector<512x128xf32>
      %21 = arith.addf %17, %20 : vector<512x128xf32>
      %c0_11 = arith.constant 0 : index
      %c0_12 = arith.constant 0 : index
      %22 = vector.load %arg6[%c0_11, %c0_12] : memref<512x128xbf16, #tpu.memory_space<vmem>>, vector<512x128xbf16>
      %23 = arith.extf %22 : vector<512x128xbf16> to vector<512x128xf32>
      %24 = arith.addf %21, %23 : vector<512x128xf32>
      %cst_13 = arith.constant 0.000000e+00 : f32
      %25 = vector.broadcast %cst_13 : f32 to vector<512x128xf32>
      %26 = arith.maximumf %24, %25 : vector<512x128xf32>
      %c0_14 = arith.constant 0 : index
      %c0_15 = arith.constant 0 : index
      %27 = vector.load %arg7[%c0_14, %c0_15] : memref<512x128xf32, #tpu.memory_space<vmem>>, vector<512x128xf32>
      tpu.vector_store %arg7[%c0_14, %c0_15], %26 {strides = array<i32>} : memref<512x128xf32, #tpu.memory_space<vmem>>, vector<512x128xf32>,
    } else {
    }
    return
  }
  func.func @transform_0(%arg0: i32, %arg1: i32, %arg2: i32) -> (i32, i32) {
    %c0_i32 = arith.constant 0 : i32
    return %arg0, %arg2 : i32, i32
  }
  func.func @transform_1(%arg0: i32, %arg1: i32, %arg2: i32) -> (i32, i32) {
    %c0_i32 = arith.constant 0 : i32
    %c0_i32_0 = arith.constant 0 : i32
    %c0_i32_1 = arith.constant 0 : i32
    return %c0_i32, %c0_i32_0 : i32, i32
  }
  func.func @transform_2(%arg0: i32, %arg1: i32, %arg2: i32) -> (i32, i32) {
    %c0_i32 = arith.constant 0 : i32
    %c0_i32_0 = arith.constant 0 : i32
    %c0_i32_1 = arith.constant 0 : i32
    return %c0_i32, %c0_i32_0 : i32, i32
  }
  func.func @transform_3(%arg0: i32, %arg1: i32, %arg2: i32) -> (i32, i32) {
    %c0_i32 = arith.constant 0 : i32
    return %arg0, %arg1 : i32, i32
  }
  func.func @transform_4(%arg0: i32, %arg1: i32, %arg2: i32) -> (i32, i32) {
    %c0_i32 = arith.constant 0 : i32
    return %arg0, %arg1 : i32, i32
  }
}

</mosaic_0001>

<bundles_post_ra>
// kernel: identity_block_forward.3
= control target key start
LH: loop header
LB: loop body
LE: loop exit
PB: predicated region body
PF: predicated region fallthrough
CT: control target
= control target key end

     0   :  { %s2267_s1 = inlined_call_operand.vmem [shape: bf16[128,128], index: 1, kind: input, shape index: {}]   ;;  %s2268_s0 = inlined_call_operand.vmem [shape: bf16[512,128], index: 0, kind: input, shape index: {}]   ;;  %s2269_s2 = inlined_call_operand.vmem [shape: f32[1,128], index: 2, kind: input, shape index: {}]   ;;  %s2270_s3 = inlined_call_operand.vmem [shape: bf16[512,128], index: 3, kind: output, shape index: {}]  }
   0x1   :  { %v1922_v0 = vld [vmem:[%s2267_s1] sm:$0xff]   ;;  %v1923_v1 = vld [vmem:[%s2267_s1 + $0x8] sm:$0xff]   ;;  %v1924_v2 = vld [vmem:[%s2267_s1 + $0x10] sm:$0xff]  }
   0x2   :  { %1826 = vmatprep.subr.bf16.mxu0 %v1922_v0  ;;  %1906 = vmatprep.subr.bf16.mxu1 %v1922_v0  ;;  %v1925_v3 = vld [vmem:[%s2267_s1 + $0x18] sm:$0xff]   ;;  %v1930_v4 = vld [vmem:[%s2268_s0] sm:$0xff]   ;;  %v1927_v7 = vld [vmem:[%s2267_s1 + $0x28] sm:$0xff]  }
   0x3   :  { %1827 = vmatpush3.bf16.msra.mxu0 %v1922_v0  ;;  %1914 = vmatpush3.bf16.msra.mxu1 %v1922_v0  ;;  %v1931_v5 = vld [vmem:[%s2268_s0 + $0x80] sm:$0xff]   ;;  %v1928_v8 = vld [vmem:[%s2267_s1 + $0x30] sm:$0xff]   ;;  %v1929_v9 = vld [vmem:[%s2267_s1 + $0x38] sm:$0xff]  }
   0x4   :  { %1828 = vmatprep.subr.bf16.mxu0 %v1923_v1  ;;  %1907 = vmatprep.subr.bf16.mxu1 %v1923_v1  ;;  %v1926_v6 = vld [vmem:[%s2267_s1 + $0x20] sm:$0xff]   ;;  %v1932_v10 = vld [vmem:[%s2268_s0 + $0x8] sm:$0xff]   ;;  %v1934_v12 = vld [vmem:[%s2268_s0 + $0x10] sm:$0xff]  }
   0x5   :  { %1842 = vmatprep.mubr.bf16.mxu0 %v1930_v4  ;;  %1874 = vmatprep.mubr.bf16.mxu1 %v1931_v5  ;;  %v1933_v11 = vld [vmem:[%s2268_s0 + $0x88] sm:$0xff]   ;;  %v1935_v13 = vld [vmem:[%s2268_s0 + $0x90] sm:$0xff]   ;;  %v1936_v14 = vld [vmem:[%s2268_s0 + $0x18] sm:$0xff]  }
   0x6   :  { %v1937_v15 = vld [vmem:[%s2268_s0 + $0x98] sm:$0xff]   ;;  %v1938_v16 = vld [vmem:[%s2268_s0 + $0x20] sm:$0xff]   ;;  %v1940_v18 = vld [vmem:[%s2268_s0 + $0x28] sm:$0xff]  }
   0x7   :  { %1829 = vmatpush3.bf16.msra.mxu0 %v1923_v1  ;;  %1915 = vmatpush3.bf16.msra.mxu1 %v1923_v1  ;;  %v1939_v17 = vld [vmem:[%s2268_s0 + $0xa0] sm:$0xff]   ;;  %v1941_v19 = vld [vmem:[%s2268_s0 + $0xa8] sm:$0xff]   ;;  %v1942_v20 = vld [vmem:[%s2268_s0 + $0x30] sm:$0xff]  }
   0x8   :  { %1830 = vmatprep.subr.bf16.mxu0 %v1924_v2  ;;  %1908 = vmatprep.subr.bf16.mxu1 %v1924_v2  ;;  %v1943_v21 = vld [vmem:[%s2268_s0 + $0xb0] sm:$0xff]   ;;  %v1944_v22 = vld [vmem:[%s2268_s0 + $0x38] sm:$0xff]   ;;  %v1946_v24 = vld [vmem:[%s2268_s0 + $0x40] sm:$0xff]  }
   0x9   :  { %v1945_v23 = vld [vmem:[%s2268_s0 + $0xb8] sm:$0xff]   ;;  %v1947_v25 = vld [vmem:[%s2268_s0 + $0xc0] sm:$0xff]   ;;  %v1948_v26 = vld [vmem:[%s2268_s0 + $0x48] sm:$0xff]  }
   0xa   :  { %v1949_v27 = vld [vmem:[%s2268_s0 + $0xc8] sm:$0xff]   ;;  %v1950_v28 = vld [vmem:[%s2268_s0 + $0x50] sm:$0xff]   ;;  %v1952_v30 = vld [vmem:[%s2268_s0 + $0x58] sm:$0xff]  }
   0xb   :  { %1831 = vmatpush3.bf16.msra.mxu0 %v1924_v2  ;;  %1916 = vmatpush3.bf16.msra.mxu1 %v1924_v2  ;;  %v1951_v29 = vld [vmem:[%s2268_s0 + $0xd0] sm:$0xff]   ;;  %v1953_v31 = vld [vmem:[%s2268_s0 + $0xd8] sm:$0xff]   ;;  %v1954_v32 = vld [vmem:[%s2268_s0 + $0x60] sm:$0xff]  }
   0xc   :  { %1832 = vmatprep.subr.bf16.mxu0 %v1925_v3  ;;  %1909 = vmatprep.subr.bf16.mxu1 %v1925_v3  ;;  %v1955_v33 = vld [vmem:[%s2268_s0 + $0xe0] sm:$0xff]   ;;  %v1956_v34 = vld [vmem:[%s2268_s0 + $0x68] sm:$0xff]   ;;  %v1958_v36 = vld [vmem:[%s2268_s0 + $0x70] sm:$0xff]  }
   0xd   :  { %v1957_v35 = vld [vmem:[%s2268_s0 + $0xe8] sm:$0xff]   ;;  %v1959_v37 = vld [vmem:[%s2268_s0 + $0xf0] sm:$0xff]   ;;  %v1960_v38 = vld [vmem:[%s2268_s0 + $0x78] sm:$0xff]  }
   0xe   :  { %v1961_v39 = vld [vmem:[%s2268_s0 + $0xf8] sm:$0xff]   ;;  %v2105_v40 = vld [vmem:[%s2269_s2] ss:$0 sm:$0xff] }
   0xf   :  { %1833 = vmatpush3.bf16.msra.mxu0 %v1925_v3  ;;  %1917 = vmatpush3.bf16.msra.mxu1 %v1925_v3 }
  0x10   :  { %1834 = vmatprep.subr.bf16.mxu0 %v1926_v6  ;;  %1910 = vmatprep.subr.bf16.mxu1 %v1926_v6 }
  0x13   :  { %1835 = vmatpush3.bf16.msra.mxu0 %v1926_v6  ;;  %1918 = vmatpush3.bf16.msra.mxu1 %v1926_v6 }
  0x14   :  { %1836 = vmatprep.subr.bf16.mxu0 %v1927_v7  ;;  %1911 = vmatprep.subr.bf16.mxu1 %v1927_v7 }
  0x17   :  { %1837 = vmatpush3.bf16.msra.mxu0 %v1927_v7  ;;  %1919 = vmatpush3.bf16.msra.mxu1 %v1927_v7 }
  0x18   :  { %1838 = vmatprep.subr.bf16.mxu0 %v1928_v8  ;;  %1912 = vmatprep.subr.bf16.mxu1 %v1928_v8 }
  0x1b   :  { %1839 = vmatpush3.bf16.msra.mxu0 %v1928_v8  ;;  %1920 = vmatpush3.bf16.msra.mxu1 %v1928_v8 }
  0x1c   :  { %1840 = vmatprep.subr.bf16.mxu0 %v1929_v9  ;;  %1913 = vmatprep.subr.bf16.mxu1 %v1929_v9 }
  0x1f   :  { %1841 = vmatpush3.bf16.msra.mxu0 %v1929_v9  ;;  %1921 = vmatpush3.bf16.msra.mxu1 %v1929_v9 }
  0x22   :  { %1843 = vmatmul.mubr.bf16.vlgmr.msra.gmra.mrb[0].mxu0 %v1932_v10  ;;  %1875 = vmatmul.mubr.bf16.vlgmr.msra.gmra.mrb[0].mxu1 %v1933_v11 }
  0x23   :  { %1846 = vmatprep.mubr.bf16.mxu0 %v1934_v12  ;;  %1878 = vmatprep.mubr.bf16.mxu1 %v1935_v13 }
  0x2a   :  { %1847 = vmatmul.mubr.bf16.gmra.mrb[4].mxu0 %v1936_v14  ;;  %1879 = vmatmul.mubr.bf16.gmra.mrb[4].mxu1 %v1937_v15 }
  0x2b   :  { %1850 = vmatprep.mubr.bf16.mxu0 %v1938_v16  ;;  %1882 = vmatprep.mubr.bf16.mxu1 %v1939_v17 }
  0x32   :  { %1851 = vmatmul.mubr.bf16.gmra.mrb[8].mxu0 %v1940_v18  ;;  %1883 = vmatmul.mubr.bf16.gmra.mrb[8].mxu1 %v1941_v19 }
  0x33   :  { %1854 = vmatprep.mubr.bf16.mxu0 %v1942_v20  ;;  %1886 = vmatprep.mubr.bf16.mxu1 %v1943_v21 }
  0x3a   :  { %1855 = vmatmul.mubr.bf16.gmra.mrb[12].mxu0 %v1944_v22  ;;  %1887 = vmatmul.mubr.bf16.gmra.mrb[12].mxu1 %v1945_v23 }
  0x3b   :  { %1858 = vmatprep.mubr.bf16.mxu0 %v1946_v24  ;;  %1890 = vmatprep.mubr.bf16.mxu1 %v1947_v25 }
  0x42   :  { %1859 = vmatmul.mubr.bf16.gmra.mrb[16].mxu0 %v1948_v26  ;;  %1891 = vmatmul.mubr.bf16.gmra.mrb[16].mxu1 %v1949_v27 }
  0x43   :  { %1862 = vmatprep.mubr.bf16.mxu0 %v1950_v28  ;;  %1894 = vmatprep.mubr.bf16.mxu1 %v1951_v29 }
  0x4a   :  { %1863 = vmatmul.mubr.bf16.gmra.mrb[20].mxu0 %v1952_v30  ;;  %1895 = vmatmul.mubr.bf16.gmra.mrb[20].mxu1 %v1953_v31 }
  0x4b   :  { %1866 = vmatprep.mubr.bf16.mxu0 %v1954_v32  ;;  %1898 = vmatprep.mubr.bf16.mxu1 %v1955_v33 }
  0x52   :  { %1867 = vmatmul.mubr.bf16.gmra.mrb[24].mxu0 %v1956_v34  ;;  %1899 = vmatmul.mubr.bf16.gmra.mrb[24].mxu1 %v1957_v35 }
  0x53   :  { %1870 = vmatprep.mubr.bf16.mxu0 %v1958_v36  ;;  %1902 = vmatprep.mubr.bf16.mxu1 %v1959_v37 }
  0x5a   :  { %1871 = vmatmul.mubr.bf16.gmra.mrb[28].mxu0 %v1960_v38  ;;  %1903 = vmatmul.mubr.bf16.gmra.mrb[28].mxu1 %v1961_v39 }
  0xf5   :  { %v1844_v41 = vpop.f32.mrb[0].mxu0  ;;  %v1876_v42 = vpop.f32.mrb[0].mxu1 }
  0xf6   :  { %v973_v43 = vadd.f32 %v1844_v41, %v2105_v40  ;;  %v1005_v44 = vadd.f32 %v1876_v42, %v2105_v40  ;;  %v375_v45 = vpop.f32.mrb[1].mxu0  ;;  %v503_v46 = vpop.f32.mrb[1].mxu1 }
  0xf7   :  { %v971_v47 = vadd.f32 %v2105_v40, %v375_v45  ;;  %v1003_v48 = vadd.f32 %v2105_v40, %v503_v46  ;;  %v1845_v49 = vpop.f32.mrb[2].mxu0  ;;  %v1877_v50 = vpop.f32.mrb[2].mxu1 }
  0xf8   :  { %v974_v51 = vadd.f32 %v1845_v49, %v2105_v40  ;;  %v1006_v52 = vadd.f32 %v1877_v50, %v2105_v40  ;;  %v378_v53 = vpop.f32.mrb[3].mxu0  ;;  %v506_v54 = vpop.f32.mrb[3].mxu1  ;;  %v1037_v57 = vmax.f32 %v973_v43, 0.0  ;;  %v1069_v58 = vmax.f32 %v1005_v44, 0.0 }
  0xf9   :  { %v972_v55 = vadd.f32 %v2105_v40, %v378_v53  ;;  %v1004_v56 = vadd.f32 %v2105_v40, %v506_v54  ;;  %v1035_v61 = vmax.f32 %v971_v47, 0.0  ;;  %v1067_v62 = vmax.f32 %v1003_v48, 0.0 }
  0xfa   :  { %v1038_v59 = vmax.f32 %v974_v51, 0.0  ;;  %v1070_v60 = vmax.f32 %v1006_v52, 0.0 }
  0xfb   :  { %v1036_v63 = vmax.f32 %v972_v55, 0.0  ;;  %v1068_v0 = vmax.f32 %v1004_v56, 0.0 }
  0xfc   :  { %v1603_v1 = vpack.c.bf16 %v1038_v59, %v1037_v57  ;;  %v1683_v2 = vpack.c.bf16 %v1070_v60, %v1069_v58 }
  0xfd   :  { %v1598_v3 = vpack.c.bf16 %v1036_v63, %v1035_v61  ;;  %v1678_v4 = vpack.c.bf16 %v1068_v0, %v1067_v62  ;;  %v1848_v5 = vpop.f32.mrb[4].mxu0  ;;  %v1880_v6 = vpop.f32.mrb[4].mxu1 }
  0xfe   :  { %1755 = vst [vmem:[%s2270_s3 + $0x8] sm:$0xff] %v1603_v1   ;;  %1771 = vst [vmem:[%s2270_s3 + $0x88] sm:$0xff] %v1683_v2   ;;  %v977_v7 = vadd.f32 %v1848_v5, %v2105_v40  ;;  %v1009_v8 = vadd.f32 %v1880_v6, %v2105_v40  ;;  %v391_v9 = vpop.f32.mrb[5].mxu0  ;;  %v519_v10 = vpop.f32.mrb[5].mxu1 }
  0xff   :  { %1599 = vst [vmem:[%s2270_s3] sm:$0xff] %v1598_v3   ;;  %1770 = vst [vmem:[%s2270_s3 + $0x80] sm:$0xff] %v1678_v4   ;;  %v975_v11 = vadd.f32 %v2105_v40, %v391_v9  ;;  %v1007_v12 = vadd.f32 %v2105_v40, %v519_v10  ;;  %v1849_v13 = vpop.f32.mrb[6].mxu0  ;;  %v1881_v14 = vpop.f32.mrb[6].mxu1 }
 0x100   :  { %v978_v15 = vadd.f32 %v1849_v13, %v2105_v40  ;;  %v1010_v16 = vadd.f32 %v1881_v14, %v2105_v40  ;;  %v394_v17 = vpop.f32.mrb[7].mxu0  ;;  %v522_v18 = vpop.f32.mrb[7].mxu1  ;;  %v1041_v21 = vmax.f32 %v977_v7, 0.0  ;;  %v1073_v22 = vmax.f32 %v1009_v8, 0.0 }
 0x101   :  { %v976_v19 = vadd.f32 %v2105_v40, %v394_v17  ;;  %v1008_v20 = vadd.f32 %v2105_v40, %v522_v18  ;;  %v1039_v25 = vmax.f32 %v975_v11, 0.0  ;;  %v1071_v26 = vmax.f32 %v1007_v12, 0.0 }
 0x102   :  { %v1042_v23 = vmax.f32 %v978_v15, 0.0  ;;  %v1074_v24 = vmax.f32 %v1010_v16, 0.0 }
 0x103   :  { %v1040_v27 = vmax.f32 %v976_v19, 0.0  ;;  %v1072_v28 = vmax.f32 %v1008_v20, 0.0 }
 0x104   :  { %v1613_v29 = vpack.c.bf16 %v1042_v23, %v1041_v21  ;;  %v1693_v30 = vpack.c.bf16 %v1074_v24, %v1073_v22 }
 0x105   :  { %v1608_v31 = vpack.c.bf16 %v1040_v27, %v1039_v25  ;;  %v1688_v32 = vpack.c.bf16 %v1072_v28, %v1071_v26  ;;  %v1852_v33 = vpop.f32.mrb[8].mxu0  ;;  %v1884_v34 = vpop.f32.mrb[8].mxu1 }
 0x106   :  { %1757 = vst [vmem:[%s2270_s3 + $0x18] sm:$0xff] %v1613_v29   ;;  %1773 = vst [vmem:[%s2270_s3 + $0x98] sm:$0xff] %v1693_v30   ;;  %v981_v35 = vadd.f32 %v1852_v33, %v2105_v40  ;;  %v1013_v36 = vadd.f32 %v1884_v34, %v2105_v40  ;;  %v407_v37 = vpop.f32.mrb[9].mxu0  ;;  %v535_v38 = vpop.f32.mrb[9].mxu1 }
 0x107   :  { %1756 = vst [vmem:[%s2270_s3 + $0x10] sm:$0xff] %v1608_v31   ;;  %1772 = vst [vmem:[%s2270_s3 + $0x90] sm:$0xff] %v1688_v32   ;;  %v979_v39 = vadd.f32 %v2105_v40, %v407_v37  ;;  %v1011_v41 = vadd.f32 %v2105_v40, %v535_v38  ;;  %v1853_v42 = vpop.f32.mrb[10].mxu0  ;;  %v1885_v43 = vpop.f32.mrb[10].mxu1 }
 0x108   :  { %v982_v44 = vadd.f32 %v1853_v42, %v2105_v40  ;;  %v1014_v45 = vadd.f32 %v1885_v43, %v2105_v40  ;;  %v410_v46 = vpop.f32.mrb[11].mxu0  ;;  %v538_v47 = vpop.f32.mrb[11].mxu1  ;;  %v1045_v50 = vmax.f32 %v981_v35, 0.0  ;;  %v1077_v51 = vmax.f32 %v1013_v36, 0.0 }
 0x109   :  { %v980_v48 = vadd.f32 %v2105_v40, %v410_v46  ;;  %v1012_v49 = vadd.f32 %v2105_v40, %v538_v47  ;;  %v1043_v54 = vmax.f32 %v979_v39, 0.0  ;;  %v1075_v55 = vmax.f32 %v1011_v41, 0.0 }
 0x10a   :  { %v1046_v52 = vmax.f32 %v982_v44, 0.0  ;;  %v1078_v53 = vmax.f32 %v1014_v45, 0.0 }
 0x10b   :  { %v1044_v56 = vmax.f32 %v980_v48, 0.0  ;;  %v1076_v57 = vmax.f32 %v1012_v49, 0.0 }
 0x10c   :  { %v1623_v58 = vpack.c.bf16 %v1046_v52, %v1045_v50  ;;  %v1703_v59 = vpack.c.bf16 %v1078_v53, %v1077_v51 }
 0x10d   :  { %v1618_v60 = vpack.c.bf16 %v1044_v56, %v1043_v54  ;;  %v1698_v61 = vpack.c.bf16 %v1076_v57, %v1075_v55  ;;  %v1856_v62 = vpop.f32.mrb[12].mxu0  ;;  %v1888_v63 = vpop.f32.mrb[12].mxu1 }
 0x10e   :  { %1759 = vst [vmem:[%s2270_s3 + $0x28] sm:$0xff] %v1623_v58   ;;  %1775 = vst [vmem:[%s2270_s3 + $0xa8] sm:$0xff] %v1703_v59   ;;  %v985_v0 = vadd.f32 %v1856_v62, %v2105_v40  ;;  %v1017_v1 = vadd.f32 %v1888_v63, %v2105_v40  ;;  %v423_v2 = vpop.f32.mrb[13].mxu0  ;;  %v551_v3 = vpop.f32.mrb[13].mxu1 }
 0x10f   :  { %1758 = vst [vmem:[%s2270_s3 + $0x20] sm:$0xff] %v1618_v60   ;;  %1774 = vst [vmem:[%s2270_s3 + $0xa0] sm:$0xff] %v1698_v61   ;;  %v983_v4 = vadd.f32 %v2105_v40, %v423_v2  ;;  %v1015_v5 = vadd.f32 %v2105_v40, %v551_v3  ;;  %v1857_v6 = vpop.f32.mrb[14].mxu0  ;;  %v1889_v7 = vpop.f32.mrb[14].mxu1 }
 0x110   :  { %v986_v8 = vadd.f32 %v1857_v6, %v2105_v40  ;;  %v1018_v9 = vadd.f32 %v1889_v7, %v2105_v40  ;;  %v426_v10 = vpop.f32.mrb[15].mxu0  ;;  %v554_v11 = vpop.f32.mrb[15].mxu1  ;;  %v1049_v14 = vmax.f32 %v985_v0, 0.0  ;;  %v1081_v15 = vmax.f32 %v1017_v1, 0.0 }
 0x111   :  { %v984_v12 = vadd.f32 %v2105_v40, %v426_v10  ;;  %v1016_v13 = vadd.f32 %v2105_v40, %v554_v11  ;;  %v1047_v18 = vmax.f32 %v983_v4, 0.0  ;;  %v1079_v19 = vmax.f32 %v1015_v5, 0.0 }
 0x112   :  { %v1050_v16 = vmax.f32 %v986_v8, 0.0  ;;  %v1082_v17 = vmax.f32 %v1018_v9, 0.0 }
 0x113   :  { %v1048_v20 = vmax.f32 %v984_v12, 0.0  ;;  %v1080_v21 = vmax.f32 %v1016_v13, 0.0 }
 0x114   :  { %v1633_v22 = vpack.c.bf16 %v1050_v16, %v1049_v14  ;;  %v1713_v23 = vpack.c.bf16 %v1082_v17, %v1081_v15 }
 0x115   :  { %v1628_v24 = vpack.c.bf16 %v1048_v20, %v1047_v18  ;;  %v1708_v25 = vpack.c.bf16 %v1080_v21, %v1079_v19  ;;  %v1860_v26 = vpop.f32.mrb[16].mxu0  ;;  %v1892_v27 = vpop.f32.mrb[16].mxu1 }
 0x116   :  { %1761 = vst [vmem:[%s2270_s3 + $0x38] sm:$0xff] %v1633_v22   ;;  %1777 = vst [vmem:[%s2270_s3 + $0xb8] sm:$0xff] %v1713_v23   ;;  %v989_v28 = vadd.f32 %v1860_v26, %v2105_v40  ;;  %v1021_v29 = vadd.f32 %v1892_v27, %v2105_v40  ;;  %v439_v30 = vpop.f32.mrb[17].mxu0  ;;  %v567_v31 = vpop.f32.mrb[17].mxu1 }
 0x117   :  { %1760 = vst [vmem:[%s2270_s3 + $0x30] sm:$0xff] %v1628_v24   ;;  %1776 = vst [vmem:[%s2270_s3 + $0xb0] sm:$0xff] %v1708_v25   ;;  %v987_v32 = vadd.f32 %v2105_v40, %v439_v30  ;;  %v1019_v33 = vadd.f32 %v2105_v40, %v567_v31  ;;  %v1861_v34 = vpop.f32.mrb[18].mxu0  ;;  %v1893_v35 = vpop.f32.mrb[18].mxu1 }
 0x118   :  { %v990_v36 = vadd.f32 %v1861_v34, %v2105_v40  ;;  %v1022_v37 = vadd.f32 %v1893_v35, %v2105_v40  ;;  %v442_v38 = vpop.f32.mrb[19].mxu0  ;;  %v570_v39 = vpop.f32.mrb[19].mxu1  ;;  %v1053_v43 = vmax.f32 %v989_v28, 0.0  ;;  %v1085_v44 = vmax.f32 %v1021_v29, 0.0 }
 0x119   :  { %v988_v41 = vadd.f32 %v2105_v40, %v442_v38  ;;  %v1020_v42 = vadd.f32 %v2105_v40, %v570_v39  ;;  %v1051_v47 = vmax.f32 %v987_v32, 0.0  ;;  %v1083_v48 = vmax.f32 %v1019_v33, 0.0 }
 0x11a   :  { %v1054_v45 = vmax.f32 %v990_v36, 0.0  ;;  %v1086_v46 = vmax.f32 %v1022_v37, 0.0 }
 0x11b   :  { %v1052_v49 = vmax.f32 %v988_v41, 0.0  ;;  %v1084_v50 = vmax.f32 %v1020_v42, 0.0 }
 0x11c   :  { %v1643_v51 = vpack.c.bf16 %v1054_v45, %v1053_v43  ;;  %v1723_v52 = vpack.c.bf16 %v1086_v46, %v1085_v44 }
 0x11d   :  { %v1638_v53 = vpack.c.bf16 %v1052_v49, %v1051_v47  ;;  %v1718_v54 = vpack.c.bf16 %v1084_v50, %v1083_v48  ;;  %v1864_v55 = vpop.f32.mrb[20].mxu0  ;;  %v1896_v56 = vpop.f32.mrb[20].mxu1 }
 0x11e   :  { %1763 = vst [vmem:[%s2270_s3 + $0x48] sm:$0xff] %v1643_v51   ;;  %1779 = vst [vmem:[%s2270_s3 + $0xc8] sm:$0xff] %v1723_v52   ;;  %v993_v57 = vadd.f32 %v1864_v55, %v2105_v40  ;;  %v1025_v58 = vadd.f32 %v1896_v56, %v2105_v40  ;;  %v455_v59 = vpop.f32.mrb[21].mxu0  ;;  %v583_v60 = vpop.f32.mrb[21].mxu1 }
 0x11f   :  { %1762 = vst [vmem:[%s2270_s3 + $0x40] sm:$0xff] %v1638_v53   ;;  %1778 = vst [vmem:[%s2270_s3 + $0xc0] sm:$0xff] %v1718_v54   ;;  %v991_v61 = vadd.f32 %v2105_v40, %v455_v59  ;;  %v1023_v62 = vadd.f32 %v2105_v40, %v583_v60  ;;  %v1865_v63 = vpop.f32.mrb[22].mxu0  ;;  %v1897_v0 = vpop.f32.mrb[22].mxu1 }
 0x120   :  { %v994_v1 = vadd.f32 %v1865_v63, %v2105_v40  ;;  %v1026_v2 = vadd.f32 %v1897_v0, %v2105_v40  ;;  %v458_v3 = vpop.f32.mrb[23].mxu0  ;;  %v586_v4 = vpop.f32.mrb[23].mxu1  ;;  %v1057_v7 = vmax.f32 %v993_v57, 0.0  ;;  %v1089_v8 = vmax.f32 %v1025_v58, 0.0 }
 0x121   :  { %v992_v5 = vadd.f32 %v2105_v40, %v458_v3  ;;  %v1024_v6 = vadd.f32 %v2105_v40, %v586_v4  ;;  %v1055_v11 = vmax.f32 %v991_v61, 0.0  ;;  %v1087_v12 = vmax.f32 %v1023_v62, 0.0 }
 0x122   :  { %v1058_v9 = vmax.f32 %v994_v1, 0.0  ;;  %v1090_v10 = vmax.f32 %v1026_v2, 0.0 }
 0x123   :  { %v1056_v13 = vmax.f32 %v992_v5, 0.0  ;;  %v1088_v14 = vmax.f32 %v1024_v6, 0.0 }
 0x124   :  { %v1653_v15 = vpack.c.bf16 %v1058_v9, %v1057_v7  ;;  %v1733_v16 = vpack.c.bf16 %v1090_v10, %v1089_v8 }
 0x125   :  { %v1648_v17 = vpack.c.bf16 %v1056_v13, %v1055_v11  ;;  %v1728_v18 = vpack.c.bf16 %v1088_v14, %v1087_v12  ;;  %v1868_v19 = vpop.f32.mrb[24].mxu0  ;;  %v1900_v20 = vpop.f32.mrb[24].mxu1 }
 0x126   :  { %1765 = vst [vmem:[%s2270_s3 + $0x58] sm:$0xff] %v1653_v15   ;;  %1781 = vst [vmem:[%s2270_s3 + $0xd8] sm:$0xff] %v1733_v16   ;;  %v997_v21 = vadd.f32 %v1868_v19, %v2105_v40  ;;  %v1029_v22 = vadd.f32 %v1900_v20, %v2105_v40  ;;  %v471_v23 = vpop.f32.mrb[25].mxu0  ;;  %v599_v24 = vpop.f32.mrb[25].mxu1 }
 0x127   :  { %1764 = vst [vmem:[%s2270_s3 + $0x50] sm:$0xff] %v1648_v17   ;;  %1780 = vst [vmem:[%s2270_s3 + $0xd0] sm:$0xff] %v1728_v18   ;;  %v995_v25 = vadd.f32 %v2105_v40, %v471_v23  ;;  %v1027_v26 = vadd.f32 %v2105_v40, %v599_v24  ;;  %v1869_v27 = vpop.f32.mrb[26].mxu0  ;;  %v1901_v28 = vpop.f32.mrb[26].mxu1 }
 0x128   :  { %v998_v29 = vadd.f32 %v1869_v27, %v2105_v40  ;;  %v1030_v30 = vadd.f32 %v1901_v28, %v2105_v40  ;;  %v474_v31 = vpop.f32.mrb[27].mxu0  ;;  %v602_v32 = vpop.f32.mrb[27].mxu1  ;;  %v1061_v35 = vmax.f32 %v997_v21, 0.0  ;;  %v1093_v36 = vmax.f32 %v1029_v22, 0.0 }
 0x129   :  { %v996_v33 = vadd.f32 %v2105_v40, %v474_v31  ;;  %v1028_v34 = vadd.f32 %v2105_v40, %v602_v32  ;;  %v1059_v39 = vmax.f32 %v995_v25, 0.0  ;;  %v1091_v41 = vmax.f32 %v1027_v26, 0.0 }
 0x12a   :  { %v1062_v37 = vmax.f32 %v998_v29, 0.0  ;;  %v1094_v38 = vmax.f32 %v1030_v30, 0.0 }
 0x12b   :  { %v1060_v42 = vmax.f32 %v996_v33, 0.0  ;;  %v1092_v43 = vmax.f32 %v1028_v34, 0.0 }
 0x12c   :  { %v1663_v44 = vpack.c.bf16 %v1062_v37, %v1061_v35  ;;  %v1743_v45 = vpack.c.bf16 %v1094_v38, %v1093_v36 }
 0x12d   :  { %v1658_v46 = vpack.c.bf16 %v1060_v42, %v1059_v39  ;;  %v1738_v47 = vpack.c.bf16 %v1092_v43, %v1091_v41  ;;  %v1872_v48 = vpop.f32.mrb[28].mxu0  ;;  %v1904_v49 = vpop.f32.mrb[28].mxu1 }
 0x12e   :  { %1767 = vst [vmem:[%s2270_s3 + $0x68] sm:$0xff] %v1663_v44   ;;  %1783 = vst [vmem:[%s2270_s3 + $0xe8] sm:$0xff] %v1743_v45   ;;  %v1001_v50 = vadd.f32 %v1872_v48, %v2105_v40  ;;  %v1033_v51 = vadd.f32 %v1904_v49, %v2105_v40  ;;  %v487_v52 = vpop.f32.mrb[29].mxu0  ;;  %v615_v53 = vpop.f32.mrb[29].mxu1 }
 0x12f   :  { %1766 = vst [vmem:[%s2270_s3 + $0x60] sm:$0xff] %v1658_v46   ;;  %1782 = vst [vmem:[%s2270_s3 + $0xe0] sm:$0xff] %v1738_v47   ;;  %v999_v54 = vadd.f32 %v2105_v40, %v487_v52  ;;  %v1031_v55 = vadd.f32 %v2105_v40, %v615_v53  ;;  %v1873_v56 = vpop.f32.mrb[30].mxu0  ;;  %v1905_v57 = vpop.f32.mrb[30].mxu1 }
 0x130   :  { %v1002_v58 = vadd.f32 %v1873_v56, %v2105_v40  ;;  %v1034_v59 = vadd.f32 %v1905_v57, %v2105_v40  ;;  %v490_v60 = vpop.f32.mrb[31].mxu0  ;;  %v618_v61 = vpop.f32.mrb[31].mxu1  ;;  %v1065_v0 = vmax.f32 %v1001_v50, 0.0  ;;  %v1097_v1 = vmax.f32 %v1033_v51, 0.0 }
 0x131   :  { %v1000_v62 = vadd.f32 %v2105_v40, %v490_v60  ;;  %v1032_v63 = vadd.f32 %v2105_v40, %v618_v61  ;;  %v1063_v4 = vmax.f32 %v999_v54, 0.0  ;;  %v1095_v5 = vmax.f32 %v1031_v55, 0.0 }
 0x132   :  { %v1066_v2 = vmax.f32 %v1002_v58, 0.0  ;;  %v1098_v3 = vmax.f32 %v1034_v59, 0.0 }
 0x133   :  { %v1064_v6 = vmax.f32 %v1000_v62, 0.0  ;;  %v1096_v7 = vmax.f32 %v1032_v63, 0.0 }
 0x134   :  { %v1673_v8 = vpack.c.bf16 %v1066_v2, %v1065_v0  ;;  %v1753_v9 = vpack.c.bf16 %v1098_v3, %v1097_v1 }
 0x135   :  { %v1668_v10 = vpack.c.bf16 %v1064_v6, %v1063_v4  ;;  %v1748_v11 = vpack.c.bf16 %v1096_v7, %v1095_v5 }
 0x136   :  { %1769 = vst [vmem:[%s2270_s3 + $0x78] sm:$0xff] %v1673_v8   ;;  %1785 = vst [vmem:[%s2270_s3 + $0xf8] sm:$0xff] %v1753_v9  }
 0x137   :  { %1768 = vst [vmem:[%s2270_s3 + $0x70] sm:$0xff] %v1668_v10   ;;  %1784 = vst [vmem:[%s2270_s3 + $0xf0] sm:$0xff] %v1748_v11  }

// kernel: identity_block_forward.5
= control target key start
LH: loop header
LB: loop body
LE: loop exit
PB: predicated region body
PF: predicated region fallthrough
CT: control target
= control target key end

     0   :  { %s2243_s1 = inlined_call_operand.vmem [shape: bf16[128,128], index: 1, kind: input, shape index: {}]   ;;  %s2244_s0 = inlined_call_operand.vmem [shape: bf16[512,128], index: 0, kind: input, shape index: {}]   ;;  %s2245_s3 = inlined_call_operand.vmem [shape: bf16[512,128], index: 3, kind: input, shape index: {}]   ;;  %s2246_s2 = inlined_call_operand.vmem [shape: f32[1,128], index: 2, kind: input, shape index: {}]   ;;  %s2247_s4 = inlined_call_operand.vmem [shape: f32[512,128], index: 4, kind: output, shape index: {}]  }
   0x1   :  { %v1701_v0 = vld [vmem:[%s2243_s1] sm:$0xff]   ;;  %v1702_v1 = vld [vmem:[%s2243_s1 + $0x8] sm:$0xff]   ;;  %v1703_v2 = vld [vmem:[%s2243_s1 + $0x10] sm:$0xff]  }
   0x2   :  { %1605 = vmatprep.subr.bf16.mxu0 %v1701_v0  ;;  %1685 = vmatprep.subr.bf16.mxu1 %v1701_v0  ;;  %v1704_v3 = vld [vmem:[%s2243_s1 + $0x18] sm:$0xff]   ;;  %v1709_v4 = vld [vmem:[%s2244_s0] sm:$0xff]   ;;  %v1706_v7 = vld [vmem:[%s2243_s1 + $0x28] sm:$0xff]  }
   0x3   :  { %1606 = vmatpush3.bf16.msra.mxu0 %v1701_v0  ;;  %1693 = vmatpush3.bf16.msra.mxu1 %v1701_v0  ;;  %v1710_v5 = vld [vmem:[%s2244_s0 + $0x80] sm:$0xff]   ;;  %v1707_v8 = vld [vmem:[%s2243_s1 + $0x30] sm:$0xff]   ;;  %v1708_v9 = vld [vmem:[%s2243_s1 + $0x38] sm:$0xff]  }
   0x4   :  { %1607 = vmatprep.subr.bf16.mxu0 %v1702_v1  ;;  %1686 = vmatprep.subr.bf16.mxu1 %v1702_v1  ;;  %v1705_v6 = vld [vmem:[%s2243_s1 + $0x20] sm:$0xff]   ;;  %v1711_v10 = vld [vmem:[%s2244_s0 + $0x8] sm:$0xff]   ;;  %v1713_v12 = vld [vmem:[%s2244_s0 + $0x10] sm:$0xff]  }
   0x5   :  { %1621 = vmatprep.mubr.bf16.mxu0 %v1709_v4  ;;  %1653 = vmatprep.mubr.bf16.mxu1 %v1710_v5  ;;  %v1712_v11 = vld [vmem:[%s2244_s0 + $0x88] sm:$0xff]   ;;  %v1714_v13 = vld [vmem:[%s2244_s0 + $0x90] sm:$0xff]   ;;  %v1715_v14 = vld [vmem:[%s2244_s0 + $0x18] sm:$0xff]  }
   0x6   :  { %v1716_v15 = vld [vmem:[%s2244_s0 + $0x98] sm:$0xff]   ;;  %v1717_v16 = vld [vmem:[%s2244_s0 + $0x20] sm:$0xff]   ;;  %v1719_v18 = vld [vmem:[%s2244_s0 + $0x28] sm:$0xff]  }
   0x7   :  { %1608 = vmatpush3.bf16.msra.mxu0 %v1702_v1  ;;  %1694 = vmatpush3.bf16.msra.mxu1 %v1702_v1  ;;  %v1718_v17 = vld [vmem:[%s2244_s0 + $0xa0] sm:$0xff]   ;;  %v1720_v19 = vld [vmem:[%s2244_s0 + $0xa8] sm:$0xff]   ;;  %v1721_v20 = vld [vmem:[%s2244_s0 + $0x30] sm:$0xff]  }
   0x8   :  { %1609 = vmatprep.subr.bf16.mxu0 %v1703_v2  ;;  %1687 = vmatprep.subr.bf16.mxu1 %v1703_v2  ;;  %v1722_v21 = vld [vmem:[%s2244_s0 + $0xb0] sm:$0xff]   ;;  %v1723_v22 = vld [vmem:[%s2244_s0 + $0x38] sm:$0xff]   ;;  %v1725_v24 = vld [vmem:[%s2244_s0 + $0x40] sm:$0xff]  }
   0x9   :  { %v1724_v23 = vld [vmem:[%s2244_s0 + $0xb8] sm:$0xff]   ;;  %v1726_v25 = vld [vmem:[%s2244_s0 + $0xc0] sm:$0xff]   ;;  %v1727_v26 = vld [vmem:[%s2244_s0 + $0x48] sm:$0xff]  }
   0xa   :  { %v1728_v27 = vld [vmem:[%s2244_s0 + $0xc8] sm:$0xff]   ;;  %v1729_v28 = vld [vmem:[%s2244_s0 + $0x50] sm:$0xff]   ;;  %v1731_v30 = vld [vmem:[%s2244_s0 + $0x58] sm:$0xff]  }
   0xb   :  { %1610 = vmatpush3.bf16.msra.mxu0 %v1703_v2  ;;  %1695 = vmatpush3.bf16.msra.mxu1 %v1703_v2  ;;  %v1730_v29 = vld [vmem:[%s2244_s0 + $0xd0] sm:$0xff]   ;;  %v1732_v31 = vld [vmem:[%s2244_s0 + $0xd8] sm:$0xff]   ;;  %v1733_v32 = vld [vmem:[%s2244_s0 + $0x60] sm:$0xff]  }
   0xc   :  { %1611 = vmatprep.subr.bf16.mxu0 %v1704_v3  ;;  %1688 = vmatprep.subr.bf16.mxu1 %v1704_v3  ;;  %v1734_v33 = vld [vmem:[%s2244_s0 + $0xe0] sm:$0xff]   ;;  %v1735_v34 = vld [vmem:[%s2244_s0 + $0x68] sm:$0xff]   ;;  %v1737_v36 = vld [vmem:[%s2244_s0 + $0x70] sm:$0xff]  }
   0xd   :  { %v1736_v35 = vld [vmem:[%s2244_s0 + $0xe8] sm:$0xff]   ;;  %v1738_v37 = vld [vmem:[%s2244_s0 + $0xf0] sm:$0xff]   ;;  %v1739_v38 = vld [vmem:[%s2244_s0 + $0x78] sm:$0xff]  }
   0xe   :  { %v1740_v39 = vld [vmem:[%s2244_s0 + $0xf8] sm:$0xff]   ;;  %v1534_v40 = vld [vmem:[%s2245_s3 + $0x8] sm:$0xff]   ;;  %v1407_v42 = vld [vmem:[%s2245_s3] sm:$0xff]  }
   0xf   :  { %1612 = vmatpush3.bf16.msra.mxu0 %v1704_v3  ;;  %1696 = vmatpush3.bf16.msra.mxu1 %v1704_v3  ;;  %v1550_v41 = vld [vmem:[%s2245_s3 + $0x88] sm:$0xff]   ;;  %v1549_v43 = vld [vmem:[%s2245_s3 + $0x80] sm:$0xff]   ;;  %v1412_v45 = vunpack.c.l.bf16 %v1534_v40  ;;  %v1408_v49 = vunpack.c.l.bf16 %v1407_v42  ;;  %v1413_v55 = vunpack.c.h.bf16 %v1534_v40  ;;  %v1409_v61 = vunpack.c.h.bf16 %v1407_v42 }
  0x10   :  { %1613 = vmatprep.subr.bf16.mxu0 %v1705_v6  ;;  %1689 = vmatprep.subr.bf16.mxu1 %v1705_v6  ;;  %v1901_v44 = vld [vmem:[%s2246_s2] ss:$0 sm:$0xff]  ;;  %v1476_v46 = vunpack.c.l.bf16 %v1550_v41  ;;  %v1472_v50 = vunpack.c.l.bf16 %v1549_v43  ;;  %v1477_v56 = vunpack.c.h.bf16 %v1550_v41  ;;  %v1473_v62 = vunpack.c.h.bf16 %v1549_v43 }
  0x13   :  { %1614 = vmatpush3.bf16.msra.mxu0 %v1705_v6  ;;  %1697 = vmatpush3.bf16.msra.mxu1 %v1705_v6 }
  0x14   :  { %1615 = vmatprep.subr.bf16.mxu0 %v1706_v7  ;;  %1690 = vmatprep.subr.bf16.mxu1 %v1706_v7 }
  0x17   :  { %1616 = vmatpush3.bf16.msra.mxu0 %v1706_v7  ;;  %1698 = vmatpush3.bf16.msra.mxu1 %v1706_v7 }
  0x18   :  { %1617 = vmatprep.subr.bf16.mxu0 %v1707_v8  ;;  %1691 = vmatprep.subr.bf16.mxu1 %v1707_v8 }
  0x1b   :  { %1618 = vmatpush3.bf16.msra.mxu0 %v1707_v8  ;;  %1699 = vmatpush3.bf16.msra.mxu1 %v1707_v8 }
  0x1c   :  { %1619 = vmatprep.subr.bf16.mxu0 %v1708_v9  ;;  %1692 = vmatprep.subr.bf16.mxu1 %v1708_v9 }
  0x1f   :  { %1620 = vmatpush3.bf16.msra.mxu0 %v1708_v9  ;;  %1700 = vmatpush3.bf16.msra.mxu1 %v1708_v9  ;;  %v1536_v9 = vld [vmem:[%s2245_s3 + $0x18] sm:$0xff]  }
  0x22   :  { %1622 = vmatmul.mubr.bf16.vlgmr.msra.gmra.mrb[0].mxu0 %v1711_v10  ;;  %1654 = vmatmul.mubr.bf16.vlgmr.msra.gmra.mrb[0].mxu1 %v1712_v11  ;;  %v1552_v10 = vld [vmem:[%s2245_s3 + $0x98] sm:$0xff]  }
  0x23   :  { %1625 = vmatprep.mubr.bf16.mxu0 %v1713_v12  ;;  %1657 = vmatprep.mubr.bf16.mxu1 %v1714_v13 }
  0x2a   :  { %1626 = vmatmul.mubr.bf16.gmra.mrb[4].mxu0 %v1715_v14  ;;  %1658 = vmatmul.mubr.bf16.gmra.mrb[4].mxu1 %v1716_v15  ;;  %v1535_v15 = vld [vmem:[%s2245_s3 + $0x10] sm:$0xff]  }
  0x2b   :  { %1629 = vmatprep.mubr.bf16.mxu0 %v1717_v16  ;;  %1661 = vmatprep.mubr.bf16.mxu1 %v1718_v17  ;;  %v1551_v16 = vld [vmem:[%s2245_s3 + $0x90] sm:$0xff]   ;;  %v1417_v41 = vunpack.c.h.bf16 %v1535_v15 }
  0x2c   :  { %v1481_v42 = vunpack.c.h.bf16 %v1551_v16 }
  0x32   :  { %1630 = vmatmul.mubr.bf16.gmra.mrb[8].mxu0 %v1719_v18  ;;  %1662 = vmatmul.mubr.bf16.gmra.mrb[8].mxu1 %v1720_v19 }
  0x33   :  { %1633 = vmatprep.mubr.bf16.mxu0 %v1721_v20  ;;  %1665 = vmatprep.mubr.bf16.mxu1 %v1722_v21 }
  0x3a   :  { %1634 = vmatmul.mubr.bf16.gmra.mrb[12].mxu0 %v1723_v22  ;;  %1666 = vmatmul.mubr.bf16.gmra.mrb[12].mxu1 %v1724_v23  ;;  %v1420_v23 = vunpack.c.l.bf16 %v1536_v9 }
  0x3b   :  { %1637 = vmatprep.mubr.bf16.mxu0 %v1725_v24  ;;  %1669 = vmatprep.mubr.bf16.mxu1 %v1726_v25  ;;  %v1484_v24 = vunpack.c.l.bf16 %v1552_v10 }
  0x42   :  { %1638 = vmatmul.mubr.bf16.gmra.mrb[16].mxu0 %v1727_v26  ;;  %1670 = vmatmul.mubr.bf16.gmra.mrb[16].mxu1 %v1728_v27 }
  0x43   :  { %1641 = vmatprep.mubr.bf16.mxu0 %v1729_v28  ;;  %1673 = vmatprep.mubr.bf16.mxu1 %v1730_v29  ;;  %v1416_v29 = vunpack.c.l.bf16 %v1535_v15 }
  0x4a   :  { %1642 = vmatmul.mubr.bf16.gmra.mrb[20].mxu0 %v1731_v30  ;;  %1674 = vmatmul.mubr.bf16.gmra.mrb[20].mxu1 %v1732_v31  ;;  %v1480_v30 = vunpack.c.l.bf16 %v1551_v16 }
  0x4b   :  { %1645 = vmatprep.mubr.bf16.mxu0 %v1733_v32  ;;  %1677 = vmatprep.mubr.bf16.mxu1 %v1734_v33 }
  0x52   :  { %1646 = vmatmul.mubr.bf16.gmra.mrb[24].mxu0 %v1735_v34  ;;  %1678 = vmatmul.mubr.bf16.gmra.mrb[24].mxu1 %v1736_v35  ;;  %v1421_v35 = vunpack.c.h.bf16 %v1536_v9 }
  0x53   :  { %1649 = vmatprep.mubr.bf16.mxu0 %v1737_v36  ;;  %1681 = vmatprep.mubr.bf16.mxu1 %v1738_v37  ;;  %v1485_v36 = vunpack.c.h.bf16 %v1552_v10 }
  0x5a   :  { %1650 = vmatmul.mubr.bf16.gmra.mrb[28].mxu0 %v1739_v38  ;;  %1682 = vmatmul.mubr.bf16.gmra.mrb[28].mxu1 %v1740_v39 }
  0xf5   :  { %v1623_v47 = vpop.f32.mrb[0].mxu0  ;;  %v1655_v48 = vpop.f32.mrb[0].mxu1 }
  0xf6   :  { %v976_v51 = vadd.f32 %v1623_v47, %v1901_v44  ;;  %v1008_v52 = vadd.f32 %v1655_v48, %v1901_v44  ;;  %v378_v53 = vpop.f32.mrb[1].mxu0  ;;  %v506_v54 = vpop.f32.mrb[1].mxu1 }
  0xf7   :  { %v974_v57 = vadd.f32 %v1901_v44, %v378_v53  ;;  %v1006_v58 = vadd.f32 %v1901_v44, %v506_v54  ;;  %v1624_v59 = vpop.f32.mrb[2].mxu0  ;;  %v1656_v60 = vpop.f32.mrb[2].mxu1  ;;  %v1538_v54 = vld [vmem:[%s2245_s3 + $0x28] sm:$0xff]  }
  0xf8   :  { %v1168_v63 = vadd.f32 %v1412_v45, %v976_v51  ;;  %v1200_v0 = vadd.f32 %v1476_v46, %v1008_v52  ;;  %v977_v1 = vadd.f32 %v1624_v59, %v1901_v44  ;;  %v1009_v2 = vadd.f32 %v1656_v60, %v1901_v44  ;;  %v381_v3 = vpop.f32.mrb[3].mxu0  ;;  %v509_v4 = vpop.f32.mrb[3].mxu1  ;;  %v1537_v60 = vld [vmem:[%s2245_s3 + $0x20] sm:$0xff]  }
  0xf9   :  { %v1166_v5 = vadd.f32 %v1408_v49, %v974_v57  ;;  %v1198_v6 = vadd.f32 %v1472_v50, %v1006_v58  ;;  %v975_v7 = vadd.f32 %v1901_v44, %v381_v3  ;;  %v1007_v8 = vadd.f32 %v1901_v44, %v509_v4 }
  0xfa   :  { %v1232_v11 = vmax.f32 %v1168_v63, 0.0  ;;  %v1264_v12 = vmax.f32 %v1200_v0, 0.0  ;;  %v1169_v13 = vadd.f32 %v1413_v55, %v977_v1  ;;  %v1201_v14 = vadd.f32 %v1477_v56, %v1009_v2  ;;  %v1554_v55 = vld [vmem:[%s2245_s3 + $0xa8] sm:$0xff]  }
  0xfb   :  { %v1230_v17 = vmax.f32 %v1166_v5, 0.0  ;;  %v1262_v18 = vmax.f32 %v1198_v6, 0.0  ;;  %v1167_v19 = vadd.f32 %v1409_v61, %v975_v7  ;;  %v1199_v20 = vadd.f32 %v1473_v62, %v1007_v8  ;;  %v1553_v61 = vld [vmem:[%s2245_s3 + $0xa0] sm:$0xff]  }
  0xfc   :  { %1296 = vst [vmem:[%s2247_s4 + $0x10] sm:$0xff] %v1232_v11  ;;  %1328 = vst [vmem:[%s2247_s4 + $0x110] sm:$0xff] %v1264_v12  ;;  %v1233_v21 = vmax.f32 %v1169_v13, 0.0  ;;  %v1265_v22 = vmax.f32 %v1201_v14, 0.0  ;;  %v1428_v4 = vunpack.c.l.bf16 %v1538_v54  ;;  %v1492_v5 = vunpack.c.l.bf16 %v1554_v55 }
  0xfd   :  { %1294 = vst [vmem:[%s2247_s4] sm:$0xff] %v1230_v17  ;;  %1326 = vst [vmem:[%s2247_s4 + $0x100] sm:$0xff] %v1262_v18  ;;  %v1231_v25 = vmax.f32 %v1167_v19, 0.0  ;;  %v1263_v26 = vmax.f32 %v1199_v20, 0.0  ;;  %v1627_v27 = vpop.f32.mrb[4].mxu0  ;;  %v1659_v28 = vpop.f32.mrb[4].mxu1  ;;  %v1424_v10 = vunpack.c.l.bf16 %v1537_v60  ;;  %v1488_v11 = vunpack.c.l.bf16 %v1553_v61 }
  0xfe   :  { %1297 = vst [vmem:[%s2247_s4 + $0x18] sm:$0xff] %v1233_v21  ;;  %1329 = vst [vmem:[%s2247_s4 + $0x118] sm:$0xff] %v1265_v22  ;;  %v980_v31 = vadd.f32 %v1627_v27, %v1901_v44  ;;  %v1012_v32 = vadd.f32 %v1659_v28, %v1901_v44  ;;  %v394_v33 = vpop.f32.mrb[5].mxu0  ;;  %v522_v34 = vpop.f32.mrb[5].mxu1  ;;  %v1429_v16 = vunpack.c.h.bf16 %v1538_v54  ;;  %v1493_v17 = vunpack.c.h.bf16 %v1554_v55 }
  0xff   :  { %1295 = vst [vmem:[%s2247_s4 + $0x8] sm:$0xff] %v1231_v25  ;;  %1327 = vst [vmem:[%s2247_s4 + $0x108] sm:$0xff] %v1263_v26  ;;  %v978_v37 = vadd.f32 %v1901_v44, %v394_v33  ;;  %v1010_v38 = vadd.f32 %v1901_v44, %v522_v34  ;;  %v1628_v39 = vpop.f32.mrb[6].mxu0  ;;  %v1660_v40 = vpop.f32.mrb[6].mxu1  ;;  %v1425_v22 = vunpack.c.h.bf16 %v1537_v60  ;;  %v1540_v34 = vld [vmem:[%s2245_s3 + $0x38] sm:$0xff]  }
 0x100   :  { %v1172_v43 = vadd.f32 %v1420_v23, %v980_v31  ;;  %v1204_v45 = vadd.f32 %v1484_v24, %v1012_v32  ;;  %v981_v46 = vadd.f32 %v1628_v39, %v1901_v44  ;;  %v1013_v47 = vadd.f32 %v1660_v40, %v1901_v44  ;;  %v397_v48 = vpop.f32.mrb[7].mxu0  ;;  %v525_v49 = vpop.f32.mrb[7].mxu1  ;;  %v1539_v40 = vld [vmem:[%s2245_s3 + $0x30] sm:$0xff]  }
 0x101   :  { %v1170_v50 = vadd.f32 %v1416_v29, %v978_v37  ;;  %v1202_v51 = vadd.f32 %v1480_v30, %v1010_v38  ;;  %v979_v52 = vadd.f32 %v1901_v44, %v397_v48  ;;  %v1011_v53 = vadd.f32 %v1901_v44, %v525_v49 }
 0x102   :  { %v1236_v56 = vmax.f32 %v1172_v43, 0.0  ;;  %v1268_v57 = vmax.f32 %v1204_v45, 0.0  ;;  %v1173_v58 = vadd.f32 %v1421_v35, %v981_v46  ;;  %v1205_v59 = vadd.f32 %v1485_v36, %v1013_v47  ;;  %v1556_v35 = vld [vmem:[%s2245_s3 + $0xb8] sm:$0xff]  }
 0x103   :  { %v1234_v62 = vmax.f32 %v1170_v50, 0.0  ;;  %v1266_v63 = vmax.f32 %v1202_v51, 0.0  ;;  %v1171_v0 = vadd.f32 %v1417_v41, %v979_v52  ;;  %v1203_v1 = vadd.f32 %v1481_v42, %v1011_v53  ;;  %v1555_v41 = vld [vmem:[%s2245_s3 + $0xb0] sm:$0xff]  }
 0x104   :  { %1300 = vst [vmem:[%s2247_s4 + $0x30] sm:$0xff] %v1236_v56  ;;  %1332 = vst [vmem:[%s2247_s4 + $0x130] sm:$0xff] %v1268_v57  ;;  %v1237_v2 = vmax.f32 %v1173_v58, 0.0  ;;  %v1269_v3 = vmax.f32 %v1205_v59, 0.0  ;;  %v1489_v23 = vunpack.c.h.bf16 %v1553_v61  ;;  %v1436_v49 = vunpack.c.l.bf16 %v1540_v34 }
 0x105   :  { %1298 = vst [vmem:[%s2247_s4 + $0x20] sm:$0xff] %v1234_v62  ;;  %1330 = vst [vmem:[%s2247_s4 + $0x120] sm:$0xff] %v1266_v63  ;;  %v1235_v6 = vmax.f32 %v1171_v0, 0.0  ;;  %v1267_v7 = vmax.f32 %v1203_v1, 0.0  ;;  %v1631_v8 = vpop.f32.mrb[8].mxu0  ;;  %v1663_v9 = vpop.f32.mrb[8].mxu1  ;;  %v1500_v50 = vunpack.c.l.bf16 %v1556_v35  ;;  %v1432_v55 = vunpack.c.l.bf16 %v1539_v40 }
 0x106   :  { %1301 = vst [vmem:[%s2247_s4 + $0x38] sm:$0xff] %v1237_v2  ;;  %1333 = vst [vmem:[%s2247_s4 + $0x138] sm:$0xff] %v1269_v3  ;;  %v984_v12 = vadd.f32 %v1631_v8, %v1901_v44  ;;  %v1016_v13 = vadd.f32 %v1663_v9, %v1901_v44  ;;  %v410_v14 = vpop.f32.mrb[9].mxu0  ;;  %v538_v15 = vpop.f32.mrb[9].mxu1  ;;  %v1496_v56 = vunpack.c.l.bf16 %v1555_v41  ;;  %v1437_v61 = vunpack.c.h.bf16 %v1540_v34 }
 0x107   :  { %1299 = vst [vmem:[%s2247_s4 + $0x28] sm:$0xff] %v1235_v6  ;;  %1331 = vst [vmem:[%s2247_s4 + $0x128] sm:$0xff] %v1267_v7  ;;  %v982_v18 = vadd.f32 %v1901_v44, %v410_v14  ;;  %v1014_v19 = vadd.f32 %v1901_v44, %v538_v15  ;;  %v1632_v20 = vpop.f32.mrb[10].mxu0  ;;  %v1664_v21 = vpop.f32.mrb[10].mxu1  ;;  %v1501_v62 = vunpack.c.h.bf16 %v1556_v35  ;;  %v1433_v3 = vunpack.c.h.bf16 %v1539_v40  ;;  %v1542_v15 = vld [vmem:[%s2245_s3 + $0x48] sm:$0xff]  }
 0x108   :  { %v1176_v24 = vadd.f32 %v1428_v4, %v984_v12  ;;  %v1208_v25 = vadd.f32 %v1492_v5, %v1016_v13  ;;  %v985_v26 = vadd.f32 %v1632_v20, %v1901_v44  ;;  %v1017_v27 = vadd.f32 %v1664_v21, %v1901_v44  ;;  %v413_v28 = vpop.f32.mrb[11].mxu0  ;;  %v541_v29 = vpop.f32.mrb[11].mxu1  ;;  %v1541_v21 = vld [vmem:[%s2245_s3 + $0x40] sm:$0xff]  }
 0x109   :  { %v1174_v30 = vadd.f32 %v1424_v10, %v982_v18  ;;  %v1206_v31 = vadd.f32 %v1488_v11, %v1014_v19  ;;  %v983_v32 = vadd.f32 %v1901_v44, %v413_v28  ;;  %v1015_v33 = vadd.f32 %v1901_v44, %v541_v29 }
 0x10a   :  { %v1240_v36 = vmax.f32 %v1176_v24, 0.0  ;;  %v1272_v37 = vmax.f32 %v1208_v25, 0.0  ;;  %v1177_v38 = vadd.f32 %v1429_v16, %v985_v26  ;;  %v1209_v39 = vadd.f32 %v1493_v17, %v1017_v27  ;;  %v1558_v16 = vld [vmem:[%s2245_s3 + $0xc8] sm:$0xff]  }
 0x10b   :  { %v1238_v42 = vmax.f32 %v1174_v30, 0.0  ;;  %v1270_v43 = vmax.f32 %v1206_v31, 0.0  ;;  %v1175_v45 = vadd.f32 %v1425_v22, %v983_v32  ;;  %v1207_v46 = vadd.f32 %v1489_v23, %v1015_v33  ;;  %v1557_v22 = vld [vmem:[%s2245_s3 + $0xc0] sm:$0xff]  }
 0x10c   :  { %1304 = vst [vmem:[%s2247_s4 + $0x50] sm:$0xff] %v1240_v36  ;;  %1336 = vst [vmem:[%s2247_s4 + $0x150] sm:$0xff] %v1272_v37  ;;  %v1241_v47 = vmax.f32 %v1177_v38, 0.0  ;;  %v1273_v48 = vmax.f32 %v1209_v39, 0.0  ;;  %v1497_v4 = vunpack.c.h.bf16 %v1555_v41  ;;  %v1444_v29 = vunpack.c.l.bf16 %v1542_v15 }
 0x10d   :  { %1302 = vst [vmem:[%s2247_s4 + $0x40] sm:$0xff] %v1238_v42  ;;  %1334 = vst [vmem:[%s2247_s4 + $0x140] sm:$0xff] %v1270_v43  ;;  %v1239_v51 = vmax.f32 %v1175_v45, 0.0  ;;  %v1271_v52 = vmax.f32 %v1207_v46, 0.0  ;;  %v1635_v53 = vpop.f32.mrb[12].mxu0  ;;  %v1667_v54 = vpop.f32.mrb[12].mxu1  ;;  %v1508_v30 = vunpack.c.l.bf16 %v1558_v16  ;;  %v1440_v35 = vunpack.c.l.bf16 %v1541_v21 }
 0x10e   :  { %1305 = vst [vmem:[%s2247_s4 + $0x58] sm:$0xff] %v1241_v47  ;;  %1337 = vst [vmem:[%s2247_s4 + $0x158] sm:$0xff] %v1273_v48  ;;  %v988_v57 = vadd.f32 %v1635_v53, %v1901_v44  ;;  %v1020_v58 = vadd.f32 %v1667_v54, %v1901_v44  ;;  %v426_v59 = vpop.f32.mrb[13].mxu0  ;;  %v554_v60 = vpop.f32.mrb[13].mxu1  ;;  %v1504_v36 = vunpack.c.l.bf16 %v1557_v22  ;;  %v1445_v41 = vunpack.c.h.bf16 %v1542_v15 }
 0x10f   :  { %1303 = vst [vmem:[%s2247_s4 + $0x48] sm:$0xff] %v1239_v51  ;;  %1335 = vst [vmem:[%s2247_s4 + $0x148] sm:$0xff] %v1271_v52  ;;  %v986_v63 = vadd.f32 %v1901_v44, %v426_v59  ;;  %v1018_v0 = vadd.f32 %v1901_v44, %v554_v60  ;;  %v1636_v1 = vpop.f32.mrb[14].mxu0  ;;  %v1668_v2 = vpop.f32.mrb[14].mxu1  ;;  %v1509_v42 = vunpack.c.h.bf16 %v1558_v16  ;;  %v1441_v48 = vunpack.c.h.bf16 %v1541_v21  ;;  %v1544_v60 = vld [vmem:[%s2245_s3 + $0x58] sm:$0xff]  }
 0x110   :  { %v1180_v5 = vadd.f32 %v1436_v49, %v988_v57  ;;  %v1212_v6 = vadd.f32 %v1500_v50, %v1020_v58  ;;  %v989_v7 = vadd.f32 %v1636_v1, %v1901_v44  ;;  %v1021_v8 = vadd.f32 %v1668_v2, %v1901_v44  ;;  %v429_v9 = vpop.f32.mrb[15].mxu0  ;;  %v557_v10 = vpop.f32.mrb[15].mxu1  ;;  %v1543_v2 = vld [vmem:[%s2245_s3 + $0x50] sm:$0xff]  }
 0x111   :  { %v1178_v11 = vadd.f32 %v1432_v55, %v986_v63  ;;  %v1210_v12 = vadd.f32 %v1496_v56, %v1018_v0  ;;  %v987_v13 = vadd.f32 %v1901_v44, %v429_v9  ;;  %v1019_v14 = vadd.f32 %v1901_v44, %v557_v10 }
 0x112   :  { %v1244_v17 = vmax.f32 %v1180_v5, 0.0  ;;  %v1276_v18 = vmax.f32 %v1212_v6, 0.0  ;;  %v1181_v19 = vadd.f32 %v1437_v61, %v989_v7  ;;  %v1213_v20 = vadd.f32 %v1501_v62, %v1021_v8  ;;  %v1560_v61 = vld [vmem:[%s2245_s3 + $0xd8] sm:$0xff]  }
 0x113   :  { %v1242_v23 = vmax.f32 %v1178_v11, 0.0  ;;  %v1274_v24 = vmax.f32 %v1210_v12, 0.0  ;;  %v1179_v25 = vadd.f32 %v1433_v3, %v987_v13  ;;  %v1211_v26 = vadd.f32 %v1497_v4, %v1019_v14  ;;  %v1559_v3 = vld [vmem:[%s2245_s3 + $0xd0] sm:$0xff]  }
 0x114   :  { %1308 = vst [vmem:[%s2247_s4 + $0x70] sm:$0xff] %v1244_v17  ;;  %1340 = vst [vmem:[%s2247_s4 + $0x170] sm:$0xff] %v1276_v18  ;;  %v1245_v27 = vmax.f32 %v1181_v19, 0.0  ;;  %v1277_v28 = vmax.f32 %v1213_v20, 0.0  ;;  %v1505_v49 = vunpack.c.h.bf16 %v1557_v22  ;;  %v1452_v10 = vunpack.c.l.bf16 %v1544_v60 }
 0x115   :  { %1306 = vst [vmem:[%s2247_s4 + $0x60] sm:$0xff] %v1242_v23  ;;  %1338 = vst [vmem:[%s2247_s4 + $0x160] sm:$0xff] %v1274_v24  ;;  %v1243_v31 = vmax.f32 %v1179_v25, 0.0  ;;  %v1275_v32 = vmax.f32 %v1211_v26, 0.0  ;;  %v1639_v33 = vpop.f32.mrb[16].mxu0  ;;  %v1671_v34 = vpop.f32.mrb[16].mxu1  ;;  %v1516_v11 = vunpack.c.l.bf16 %v1560_v61  ;;  %v1448_v16 = vunpack.c.l.bf16 %v1543_v2 }
 0x116   :  { %1309 = vst [vmem:[%s2247_s4 + $0x78] sm:$0xff] %v1245_v27  ;;  %1341 = vst [vmem:[%s2247_s4 + $0x178] sm:$0xff] %v1277_v28  ;;  %v992_v37 = vadd.f32 %v1639_v33, %v1901_v44  ;;  %v1024_v38 = vadd.f32 %v1671_v34, %v1901_v44  ;;  %v442_v39 = vpop.f32.mrb[17].mxu0  ;;  %v570_v40 = vpop.f32.mrb[17].mxu1  ;;  %v1512_v17 = vunpack.c.l.bf16 %v1559_v3  ;;  %v1453_v22 = vunpack.c.h.bf16 %v1544_v60 }
 0x117   :  { %1307 = vst [vmem:[%s2247_s4 + $0x68] sm:$0xff] %v1243_v31  ;;  %1339 = vst [vmem:[%s2247_s4 + $0x168] sm:$0xff] %v1275_v32  ;;  %v990_v43 = vadd.f32 %v1901_v44, %v442_v39  ;;  %v1022_v45 = vadd.f32 %v1901_v44, %v570_v40  ;;  %v1640_v46 = vpop.f32.mrb[18].mxu0  ;;  %v1672_v47 = vpop.f32.mrb[18].mxu1  ;;  %v1517_v23 = vunpack.c.h.bf16 %v1560_v61  ;;  %v1449_v28 = vunpack.c.h.bf16 %v1543_v2  ;;  %v1546_v40 = vld [vmem:[%s2245_s3 + $0x68] sm:$0xff]  }
 0x118   :  { %v1184_v50 = vadd.f32 %v1444_v29, %v992_v37  ;;  %v1216_v51 = vadd.f32 %v1508_v30, %v1024_v38  ;;  %v993_v52 = vadd.f32 %v1640_v46, %v1901_v44  ;;  %v1025_v53 = vadd.f32 %v1672_v47, %v1901_v44  ;;  %v445_v54 = vpop.f32.mrb[19].mxu0  ;;  %v573_v55 = vpop.f32.mrb[19].mxu1  ;;  %v1545_v47 = vld [vmem:[%s2245_s3 + $0x60] sm:$0xff]  }
 0x119   :  { %v1182_v56 = vadd.f32 %v1440_v35, %v990_v43  ;;  %v1214_v57 = vadd.f32 %v1504_v36, %v1022_v45  ;;  %v991_v58 = vadd.f32 %v1901_v44, %v445_v54  ;;  %v1023_v59 = vadd.f32 %v1901_v44, %v573_v55 }
 0x11a   :  { %v1248_v62 = vmax.f32 %v1184_v50, 0.0  ;;  %v1280_v63 = vmax.f32 %v1216_v51, 0.0  ;;  %v1185_v0 = vadd.f32 %v1445_v41, %v993_v52  ;;  %v1217_v1 = vadd.f32 %v1509_v42, %v1025_v53  ;;  %v1562_v41 = vld [vmem:[%s2245_s3 + $0xe8] sm:$0xff]  }
 0x11b   :  { %v1246_v4 = vmax.f32 %v1182_v56, 0.0  ;;  %v1278_v5 = vmax.f32 %v1214_v57, 0.0  ;;  %v1183_v6 = vadd.f32 %v1441_v48, %v991_v58  ;;  %v1215_v7 = vadd.f32 %v1505_v49, %v1023_v59  ;;  %v1561_v48 = vld [vmem:[%s2245_s3 + $0xe0] sm:$0xff]  }
 0x11c   :  { %1312 = vst [vmem:[%s2247_s4 + $0x90] sm:$0xff] %v1248_v62  ;;  %1344 = vst [vmem:[%s2247_s4 + $0x190] sm:$0xff] %v1280_v63  ;;  %v1249_v8 = vmax.f32 %v1185_v0, 0.0  ;;  %v1281_v9 = vmax.f32 %v1217_v1, 0.0  ;;  %v1513_v29 = vunpack.c.h.bf16 %v1559_v3  ;;  %v1460_v55 = vunpack.c.l.bf16 %v1546_v40 }
 0x11d   :  { %1310 = vst [vmem:[%s2247_s4 + $0x80] sm:$0xff] %v1246_v4  ;;  %1342 = vst [vmem:[%s2247_s4 + $0x180] sm:$0xff] %v1278_v5  ;;  %v1247_v12 = vmax.f32 %v1183_v6, 0.0  ;;  %v1279_v13 = vmax.f32 %v1215_v7, 0.0  ;;  %v1643_v14 = vpop.f32.mrb[20].mxu0  ;;  %v1675_v15 = vpop.f32.mrb[20].mxu1  ;;  %v1524_v56 = vunpack.c.l.bf16 %v1562_v41  ;;  %v1456_v61 = vunpack.c.l.bf16 %v1545_v47 }
 0x11e   :  { %1313 = vst [vmem:[%s2247_s4 + $0x98] sm:$0xff] %v1249_v8  ;;  %1345 = vst [vmem:[%s2247_s4 + $0x198] sm:$0xff] %v1281_v9  ;;  %v996_v18 = vadd.f32 %v1643_v14, %v1901_v44  ;;  %v1028_v19 = vadd.f32 %v1675_v15, %v1901_v44  ;;  %v458_v20 = vpop.f32.mrb[21].mxu0  ;;  %v586_v21 = vpop.f32.mrb[21].mxu1  ;;  %v1520_v62 = vunpack.c.l.bf16 %v1561_v48  ;;  %v1461_v3 = vunpack.c.h.bf16 %v1546_v40 }
 0x11f   :  { %1311 = vst [vmem:[%s2247_s4 + $0x88] sm:$0xff] %v1247_v12  ;;  %1343 = vst [vmem:[%s2247_s4 + $0x188] sm:$0xff] %v1279_v13  ;;  %v994_v24 = vadd.f32 %v1901_v44, %v458_v20  ;;  %v1026_v25 = vadd.f32 %v1901_v44, %v586_v21  ;;  %v1644_v26 = vpop.f32.mrb[22].mxu0  ;;  %v1676_v27 = vpop.f32.mrb[22].mxu1  ;;  %v1525_v4 = vunpack.c.h.bf16 %v1562_v41  ;;  %v1457_v9 = vunpack.c.h.bf16 %v1545_v47  ;;  %v1548_v21 = vld [vmem:[%s2245_s3 + $0x78] sm:$0xff]  }
 0x120   :  { %v1188_v30 = vadd.f32 %v1452_v10, %v996_v18  ;;  %v1220_v31 = vadd.f32 %v1516_v11, %v1028_v19  ;;  %v997_v32 = vadd.f32 %v1644_v26, %v1901_v44  ;;  %v1029_v33 = vadd.f32 %v1676_v27, %v1901_v44  ;;  %v461_v34 = vpop.f32.mrb[23].mxu0  ;;  %v589_v35 = vpop.f32.mrb[23].mxu1  ;;  %v1547_v27 = vld [vmem:[%s2245_s3 + $0x70] sm:$0xff]  }
 0x121   :  { %v1186_v36 = vadd.f32 %v1448_v16, %v994_v24  ;;  %v1218_v37 = vadd.f32 %v1512_v17, %v1026_v25  ;;  %v995_v38 = vadd.f32 %v1901_v44, %v461_v34  ;;  %v1027_v39 = vadd.f32 %v1901_v44, %v589_v35 }
 0x122   :  { %v1252_v42 = vmax.f32 %v1188_v30, 0.0  ;;  %v1284_v43 = vmax.f32 %v1220_v31, 0.0  ;;  %v1189_v45 = vadd.f32 %v1453_v22, %v997_v32  ;;  %v1221_v46 = vadd.f32 %v1517_v23, %v1029_v33  ;;  %v1564_v22 = vld [vmem:[%s2245_s3 + $0xf8] sm:$0xff]  }
 0x123   :  { %v1250_v49 = vmax.f32 %v1186_v36, 0.0  ;;  %v1282_v50 = vmax.f32 %v1218_v37, 0.0  ;;  %v1187_v51 = vadd.f32 %v1449_v28, %v995_v38  ;;  %v1219_v52 = vadd.f32 %v1513_v29, %v1027_v39  ;;  %v1563_v28 = vld [vmem:[%s2245_s3 + $0xf0] sm:$0xff]  }
 0x124   :  { %1316 = vst [vmem:[%s2247_s4 + $0xb0] sm:$0xff] %v1252_v42  ;;  %1348 = vst [vmem:[%s2247_s4 + $0x1b0] sm:$0xff] %v1284_v43  ;;  %v1253_v53 = vmax.f32 %v1189_v45, 0.0  ;;  %v1285_v54 = vmax.f32 %v1221_v46, 0.0  ;;  %v1521_v10 = vunpack.c.h.bf16 %v1561_v48  ;;  %v1468_v35 = vunpack.c.l.bf16 %v1548_v21 }
 0x125   :  { %1314 = vst [vmem:[%s2247_s4 + $0xa0] sm:$0xff] %v1250_v49  ;;  %1346 = vst [vmem:[%s2247_s4 + $0x1a0] sm:$0xff] %v1282_v50  ;;  %v1251_v57 = vmax.f32 %v1187_v51, 0.0  ;;  %v1283_v58 = vmax.f32 %v1219_v52, 0.0  ;;  %v1647_v59 = vpop.f32.mrb[24].mxu0  ;;  %v1679_v60 = vpop.f32.mrb[24].mxu1  ;;  %v1532_v36 = vunpack.c.l.bf16 %v1564_v22  ;;  %v1464_v41 = vunpack.c.l.bf16 %v1547_v27 }
 0x126   :  { %1317 = vst [vmem:[%s2247_s4 + $0xb8] sm:$0xff] %v1253_v53  ;;  %1349 = vst [vmem:[%s2247_s4 + $0x1b8] sm:$0xff] %v1285_v54  ;;  %v1000_v63 = vadd.f32 %v1647_v59, %v1901_v44  ;;  %v1032_v0 = vadd.f32 %v1679_v60, %v1901_v44  ;;  %v474_v1 = vpop.f32.mrb[25].mxu0  ;;  %v602_v2 = vpop.f32.mrb[25].mxu1  ;;  %v1528_v42 = vunpack.c.l.bf16 %v1563_v28  ;;  %v1469_v48 = vunpack.c.h.bf16 %v1548_v21 }
 0x127   :  { %1315 = vst [vmem:[%s2247_s4 + $0xa8] sm:$0xff] %v1251_v57  ;;  %1347 = vst [vmem:[%s2247_s4 + $0x1a8] sm:$0xff] %v1283_v58  ;;  %v998_v5 = vadd.f32 %v1901_v44, %v474_v1  ;;  %v1030_v6 = vadd.f32 %v1901_v44, %v602_v2  ;;  %v1648_v7 = vpop.f32.mrb[26].mxu0  ;;  %v1680_v8 = vpop.f32.mrb[26].mxu1  ;;  %v1533_v49 = vunpack.c.h.bf16 %v1564_v22  ;;  %v1465_v54 = vunpack.c.h.bf16 %v1547_v27 }
 0x128   :  { %v1192_v11 = vadd.f32 %v1460_v55, %v1000_v63  ;;  %v1224_v12 = vadd.f32 %v1524_v56, %v1032_v0  ;;  %v1001_v13 = vadd.f32 %v1648_v7, %v1901_v44  ;;  %v1033_v14 = vadd.f32 %v1680_v8, %v1901_v44  ;;  %v477_v15 = vpop.f32.mrb[27].mxu0  ;;  %v605_v16 = vpop.f32.mrb[27].mxu1 }
 0x129   :  { %v1190_v17 = vadd.f32 %v1456_v61, %v998_v5  ;;  %v1222_v18 = vadd.f32 %v1520_v62, %v1030_v6  ;;  %v999_v19 = vadd.f32 %v1901_v44, %v477_v15  ;;  %v1031_v20 = vadd.f32 %v1901_v44, %v605_v16 }
 0x12a   :  { %v1256_v23 = vmax.f32 %v1192_v11, 0.0  ;;  %v1288_v24 = vmax.f32 %v1224_v12, 0.0  ;;  %v1193_v25 = vadd.f32 %v1461_v3, %v1001_v13  ;;  %v1225_v26 = vadd.f32 %v1525_v4, %v1033_v14 }
 0x12b   :  { %v1254_v29 = vmax.f32 %v1190_v17, 0.0  ;;  %v1286_v30 = vmax.f32 %v1222_v18, 0.0  ;;  %v1191_v31 = vadd.f32 %v1457_v9, %v999_v19  ;;  %v1223_v32 = vadd.f32 %v1521_v10, %v1031_v20 }
 0x12c   :  { %1320 = vst [vmem:[%s2247_s4 + $0xd0] sm:$0xff] %v1256_v23  ;;  %1352 = vst [vmem:[%s2247_s4 + $0x1d0] sm:$0xff] %v1288_v24  ;;  %v1257_v33 = vmax.f32 %v1193_v25, 0.0  ;;  %v1289_v34 = vmax.f32 %v1225_v26, 0.0  ;;  %v1529_v55 = vunpack.c.h.bf16 %v1563_v28 }
 0x12d   :  { %1318 = vst [vmem:[%s2247_s4 + $0xc0] sm:$0xff] %v1254_v29  ;;  %1350 = vst [vmem:[%s2247_s4 + $0x1c0] sm:$0xff] %v1286_v30  ;;  %v1255_v37 = vmax.f32 %v1191_v31, 0.0  ;;  %v1287_v38 = vmax.f32 %v1223_v32, 0.0  ;;  %v1651_v39 = vpop.f32.mrb[28].mxu0  ;;  %v1683_v40 = vpop.f32.mrb[28].mxu1 }
 0x12e   :  { %1321 = vst [vmem:[%s2247_s4 + $0xd8] sm:$0xff] %v1257_v33  ;;  %1353 = vst [vmem:[%s2247_s4 + $0x1d8] sm:$0xff] %v1289_v34  ;;  %v1004_v43 = vadd.f32 %v1651_v39, %v1901_v44  ;;  %v1036_v45 = vadd.f32 %v1683_v40, %v1901_v44  ;;  %v490_v46 = vpop.f32.mrb[29].mxu0  ;;  %v618_v47 = vpop.f32.mrb[29].mxu1 }
 0x12f   :  { %1319 = vst [vmem:[%s2247_s4 + $0xc8] sm:$0xff] %v1255_v37  ;;  %1351 = vst [vmem:[%s2247_s4 + $0x1c8] sm:$0xff] %v1287_v38  ;;  %v1002_v50 = vadd.f32 %v1901_v44, %v490_v46  ;;  %v1034_v51 = vadd.f32 %v1901_v44, %v618_v47  ;;  %v1652_v52 = vpop.f32.mrb[30].mxu0  ;;  %v1684_v53 = vpop.f32.mrb[30].mxu1 }
 0x130   :  { %v1196_v56 = vadd.f32 %v1468_v35, %v1004_v43  ;;  %v1228_v57 = vadd.f32 %v1532_v36, %v1036_v45  ;;  %v1005_v58 = vadd.f32 %v1652_v52, %v1901_v44  ;;  %v1037_v59 = vadd.f32 %v1684_v53, %v1901_v44  ;;  %v493_v60 = vpop.f32.mrb[31].mxu0  ;;  %v621_v61 = vpop.f32.mrb[31].mxu1 }
 0x131   :  { %v1194_v62 = vadd.f32 %v1464_v41, %v1002_v50  ;;  %v1226_v63 = vadd.f32 %v1528_v42, %v1034_v51  ;;  %v1003_v0 = vadd.f32 %v1901_v44, %v493_v60  ;;  %v1035_v1 = vadd.f32 %v1901_v44, %v621_v61 }
 0x132   :  { %v1260_v2 = vmax.f32 %v1196_v56, 0.0  ;;  %v1292_v3 = vmax.f32 %v1228_v57, 0.0  ;;  %v1197_v4 = vadd.f32 %v1469_v48, %v1005_v58  ;;  %v1229_v5 = vadd.f32 %v1533_v49, %v1037_v59 }
 0x133   :  { %v1258_v6 = vmax.f32 %v1194_v62, 0.0  ;;  %v1290_v7 = vmax.f32 %v1226_v63, 0.0  ;;  %v1195_v8 = vadd.f32 %v1465_v54, %v1003_v0  ;;  %v1227_v9 = vadd.f32 %v1529_v55, %v1035_v1 }
 0x134   :  { %1324 = vst [vmem:[%s2247_s4 + $0xf0] sm:$0xff] %v1260_v2  ;;  %1356 = vst [vmem:[%s2247_s4 + $0x1f0] sm:$0xff] %v1292_v3  ;;  %v1261_v10 = vmax.f32 %v1197_v4, 0.0  ;;  %v1293_v11 = vmax.f32 %v1229_v5, 0.0 }
 0x135   :  { %1322 = vst [vmem:[%s2247_s4 + $0xe0] sm:$0xff] %v1258_v6  ;;  %1354 = vst [vmem:[%s2247_s4 + $0x1e0] sm:$0xff] %v1290_v7  ;;  %v1259_v44 = vmax.f32 %v1195_v8, 0.0  ;;  %v1291_v12 = vmax.f32 %v1227_v9, 0.0 }
 0x136   :  { %1325 = vst [vmem:[%s2247_s4 + $0xf8] sm:$0xff] %v1261_v10  ;;  %1357 = vst [vmem:[%s2247_s4 + $0x1f8] sm:$0xff] %v1293_v11 }
 0x137   :  { %1323 = vst [vmem:[%s2247_s4 + $0xe8] sm:$0xff] %v1259_v44  ;;  %1355 = vst [vmem:[%s2247_s4 + $0x1e8] sm:$0xff] %v1291_v12 }

// kernel: identity_block_forward.4
= control target key start
LH: loop header
LB: loop body
LE: loop exit
PB: predicated region body
PF: predicated region fallthrough
CT: control target
= control target key end

     0   :  { %s5005_s12 = smov 0   ;;  %s5007_s13 = smov 0   ;;  %s5749_s0 = inlined_call_operand.vmem [shape: bf16[2,18,18,128], index: 0, kind: input, shape index: {}]   ;;  %s5750_s1 = inlined_call_operand.vmem [shape: bf16[3,3,128,128], index: 1, kind: input, shape index: {}]   ;;  %s5751_s2 = inlined_call_operand.vmem [shape: f32[1,128], index: 2, kind: input, shape index: {}]   ;;  %s5752_s3 = inlined_call_operand.vmem [shape: bf16[2,256,128], index: 3, kind: output, shape index: {}]  }
   0x1   :  { %s5009_s14 = smov 0   ;;  %s5011_s15 = smov 0  }
   0x2   :  { %s5013_s16 = smov 0  }
   0x3 LB: > { %s25_s17 = sadd.s32 1, %s4975_s14  ;;  %s32_s18 = sadd.s32 1, %s4979_s15  ;;  %s4983_s16 = sphi %s5013_s16, %s13_s16   ;;  %s4979_s15 = sphi %s5011_s15, %s5760_s15   ;;  %s4975_s14 = sphi %s5009_s14, %s5759_s14   ;;  %s4971_s13 = sphi %s5007_s13, %s5758_s13   ;;  %s4967_s12 = sphi %s5005_s12, %s5757_s12  }
   0x4   : > { %p26_p0 = scmp.ge.s32.totalorder %s25_s17, 2  ;;  %p3713_p1 = scmp.ge.s32.totalorder %s4983_s16, 1 }
   0x5   : > { %p169_p2 = scmp.lt.s32.totalorder %s4983_s16, 5 }
   0x6   : > { %s5762_s17 = smov (%p26_p0, %s25_s17), 0  ;;  %s5764_s18 = smov (!%p26_p0, %s32_s18), %s4979_s15 }
   0x7   : > { %p170_p3 = pnand %p3713_p1, %p169_p2  ;;  %p34_p4 = scmp.ge.s32.totalorder %s5764_s18, 2 }
   0x8   : > { %v4849_v0 = vld [vmem:[%s5750_s1] sm:$0xff] (!%p170_p3)   ;;  %p204_p5 = scmp.lt.s32.totalorder (!%p170_p3), %s4971_s13, 1  ;;  %v4851_v2 = vld [vmem:[%s5750_s1 + $0x8] sm:$0xff] (!%p170_p3)   ;;  %v4853_v4 = vld [vmem:[%s5750_s1 + $0x10] sm:$0xff] (!%p170_p3)   ;;  %s4168_s9 = smul.u32 (!%p170_p3), 96, %s4967_s12  ;;  %vm981_vm3 = vcmask (!%p170_p3), 1042432  }
   0x9   : > { %s5766_s18 = smov (%p34_p4, %s5764_s18), 0  ;;  %173 = sbr.rel (%p170_p3) target bundleno = 419 (0x1a3), region = 32 }
   0xa   : > { %v4850_v1 = vld [vmem:[%s5750_s1 + $0x100] sm:$0xff] (!%p170_p3)   ;;  %4376 = vmatprep.subr.bf16.mxu1 (!%p170_p3), %v4849_v0  ;;  %v4852_v3 = vld [vmem:[%s5750_s1 + $0x108] sm:$0xff] (!%p170_p3)   ;;  %v4854_v5 = vld [vmem:[%s5750_s1 + $0x110] sm:$0xff] (!%p170_p3)   ;;  %vm496_vm0 = vsmask.f32 (!%p170_p3), 3328  ;;  %vm982_vm4 = vcmask (!%p170_p3), 1046532  }
   0xb   : > { %4504 = vmatprep.subr.bf16.mxu0 (!%p170_p3), %v4850_v1  ;;  %4377 = vmatpush3.bf16.msra.mxu1 (!%p170_p3), %v4849_v0  ;;  %v4855_v6 = vld [vmem:[%s5750_s1 + $0x18] sm:$0xff] (!%p170_p3)   ;;  %v4857_v8 = vld [vmem:[%s5750_s1 + $0x20] sm:$0xff] (!%p170_p3)   ;;  %v4859_v10 = vld [vmem:[%s5750_s1 + $0x28] sm:$0xff] (!%p170_p3)   ;;  %vm497_vm1 = vsmask.f32 (!%p170_p3), 7440 }
   0xc   : > { %4505 = vmatpush3.bf16.msra.mxu0 (!%p170_p3), %v4850_v1  ;;  %4378 = vmatprep.subr.bf16.mxu1 (!%p170_p3), %v4851_v2  ;;  %v4856_v7 = vld [vmem:[%s5750_s1 + $0x118] sm:$0xff] (!%p170_p3)   ;;  %v4858_v9 = vld [vmem:[%s5750_s1 + $0x120] sm:$0xff] (!%p170_p3)   ;;  %v4860_v11 = vld [vmem:[%s5750_s1 + $0x128] sm:$0xff] (!%p170_p3)  }
   0xd   : > { %4506 = vmatprep.subr.bf16.mxu0 (!%p170_p3), %v4852_v3  ;;  %v4861_v18 = vld [vmem:[%s5750_s1 + $0x30] sm:$0xff] (!%p170_p3)   ;;  %v4863_v32 = vld [vmem:[%s5750_s1 + $0x38] sm:$0xff] (!%p170_p3)   ;;  %vm5100_vm2 = vmor (!%p170_p3), %vm496_vm0, %vm497_vm1 }
   0xe   : > { %v4862_v24 = vld [vmem:[%s5750_s1 + $0x130] sm:$0xff] (!%p170_p3)   ;;  %v4864_v38 = vld [vmem:[%s5750_s1 + $0x138] sm:$0xff] (!%p170_p3)   ;;  %v4867_v49 = vld [vmem:[%s5750_s1 + $0x40] sm:$0xff] (!%p170_p3)  }
   0xf   : > { %4379 = vmatpush3.bf16.msra.mxu1 (!%p170_p3), %v4851_v2  ;;  %v4868_v55 = vld [vmem:[%s5750_s1 + $0x140] sm:$0xff] (!%p170_p3)   ;;  %v4869_v2 = vld [vmem:[%s5750_s1 + $0x48] sm:$0xff] (!%p170_p3)   ;;  %vm5222_vm5 = vmor (!%p170_p3), %vm981_vm3, %vm982_vm4 }
  0x10   : > { %s5768_s13 = smov (!%p204_p5, %s4971_s13), 1  ;;  %4507 = vmatpush3.bf16.msra.mxu0 %v4852_v3  ;;  %4380 = vmatprep.subr.bf16.mxu1 %v4853_v4 }
  0x11   : > { %s4808_s4 = smul.u32 216, %s5768_s13  ;;  %4508 = vmatprep.subr.bf16.mxu0 %v4854_v5  ;;  %s3716_s8 = sshll.u32 %s5768_s13, 5 }
  0x13   : > { %4381 = vmatpush3.bf16.msra.mxu1 %v4853_v4  ;;  %s208_s19 = scalar_lea.vmem %s5749_s0, %s4808_s4 }
  0x14   : > { %4509 = vmatpush3.bf16.msra.mxu0 %v4854_v5  ;;  %4382 = vmatprep.subr.bf16.mxu1 %v4855_v6  ;;  %s5077_s26 = scalar_lea.vmem %s208_s19, %s4168_s9 }
  0x15   : > { %4510 = vmatprep.subr.bf16.mxu0 %v4856_v7  ;;  %v4865_v12 = vld [vmem:[%s5077_s26] sm:$0xff]   ;;  %v3859_v13 = vld [vmem:[%s5077_s26 + $0xc] sm:$0xf]  ;;  %v3860_v14 = vld [vmem:[%s5077_s26 + $0x10] sm:$0xf] }
  0x16   : > { %4392 = vmatprep.mubr.bf16.mxu1 %v4865_v12  ;;  %v3861_v15 = vld [vmem:[%s5077_s26 + $0x14] sm:$0x1]  ;;  %v1585_v16 = vshrl.u32 %v3859_v13, 16  ;;  %v1588_v17 = vshll.u32 %v3859_v13, 16  ;;  %v1594_v19 = vshll.u32 %v3860_v14, 16  ;;  %v1598_v20 = vshrl.u32 %v3860_v14, 16 }
  0x17   : > { %4383 = vmatpush3.bf16.msra.mxu1 %v4855_v6  ;;  %v1604_v21 = vshll.u32 %v3861_v15, 16  ;;  %v3862_v29 = vld [vmem:[%s5077_s26 + $0x18] sm:$0xf]  ;;  %v3863_v30 = vld [vmem:[%s5077_s26 + $0x1c] sm:$0xf]  ;;  %v4866_v52 = vld [vmem:[%s5077_s26 + $0xc] sm:$0xff]  }
  0x18   : > { %4511 = vmatpush3.bf16.msra.mxu0 %v4856_v7  ;;  %4384 = vmatprep.subr.bf16.mxu1 %v4857_v8  ;;  %v1587_v22 = vrot.slane %v1585_v16, 4  ;;  %v1590_v23 = vrot.slane %v1588_v17, 5  ;;  %v1596_v25 = vrot.slane %v1594_v19, 5  ;;  %v1600_v26 = vrot.slane %v1598_v20, 4  ;;  %v3864_v31 = vld [vmem:[%s5077_s26 + $0x20] sm:$0x1] }
  0x19   : > { %4512 = vmatprep.subr.bf16.mxu0 %v4858_v9  ;;  %v1606_v27 = vrot.slane %v1604_v21, 5  ;;  %v1609_v35 = vshrl.u32 %v3862_v29, 16  ;;  %v1612_v36 = vshll.u32 %v3862_v29, 16  ;;  %v1618_v37 = vshll.u32 %v3863_v30, 16  ;;  %v3865_v56 = vld [vmem:[%s5077_s26 + $0x24] sm:$0xf] }
  0x1a   : > { %v1591_v28 = vor.u32 %v1590_v23, %v1587_v22  ;;  %v1601_v34 = vor.u32 %v1600_v26, %v1596_v25  ;;  %v1622_v40 = vshrl.u32 %v3863_v30, 16  ;;  %v1628_v41 = vshll.u32 %v3864_v31, 16  ;;  %v3866_v58 = vld [vmem:[%s5077_s26 + $0x28] sm:$0xf]  ;;  %v3867_v59 = vld [vmem:[%s5077_s26 + $0x2c] sm:$0x1] }
  0x1b   : > { %4385 = vmatpush3.bf16.msra.mxu1 %v4857_v8  ;;  %v1611_v43 = vrot.slane %v1609_v35, 4  ;;  %v1614_v44 = vrot.slane %v1612_v36, 5  ;;  %v1620_v45 = vrot.slane %v1618_v37, 5  ;;  %v1633_v60 = vshrl.u32 %v3865_v56, 16  ;;  %v4870_v6 = vld [vmem:[%s5750_s1 + $0x148] sm:$0xff]   ;;  %v4873_v16 = vld [vmem:[%s5750_s1 + $0x50] sm:$0xff]  }
  0x1c   : > { %4513 = vmatpush3.bf16.msra.mxu0 %v4858_v9  ;;  %4386 = vmatprep.subr.bf16.mxu1 %v4859_v10  ;;  %v1592_v39 = vrot.slane %v1591_v28, 4  ;;  %v1602_v42 = vrot.slane %v1601_v34, 4  ;;  %v1624_v47 = vrot.slane %v1622_v40, 4  ;;  %v1630_v54 = vrot.slane %v1628_v41, 5  ;;  %v3868_v13 = vld [vmem:[%s5077_s26 + $0x30] sm:$0xf] }
  0x1d   : > { %4514 = vmatprep.subr.bf16.mxu0 %v4860_v11  ;;  %v1615_v50 = vor.u32 %v1614_v44, %v1611_v43  ;;  %v1636_v62 = vshll.u32 %v3865_v56, 16  ;;  %v1642_v63 = vshll.u32 %v3866_v58, 16  ;;  %v1646_v0 = vshrl.u32 %v3866_v58, 16  ;;  %v3869_v17 = vld [vmem:[%s5077_s26 + $0x34] sm:$0xf]  ;;  %v4876_v41 = vld [vmem:[%s5750_s1 + $0x158] sm:$0xff]  }
  0x1e   : > { %v1597_v46 = vsel %vm5100_vm2, %v1592_v39, %v1596_v25  ;;  %v1607_v48 = vsel %vm5100_vm2, %v1602_v42, %v1606_v27  ;;  %v1625_v53 = vor.u32 %v1624_v47, %v1620_v45  ;;  %v1635_v3 = vrot.slane %v1633_v60, 4  ;;  %v4872_v27 = vld [vmem:[%s5077_s26 + $0x24] sm:$0xff]   ;;  %v4877_v34 = vld [vmem:[%s5077_s26 + $0x30] sm:$0xff]   ;;  %v3871_v42 = vld [vmem:[%s5077_s26 + $0x3c] sm:$0xf] }
  0x1f   : > { %4387 = vmatpush3.bf16.msra.mxu1 %v4859_v10  ;;  %v3899_v51 = vcombine.low %v1597_v46, %v1607_v48  ;;  %v1616_v57 = vrot.slane %v1615_v50, 4  ;;  %v1652_v4 = vshll.u32 %v3867_v59, 16  ;;  %v1638_v7 = vrot.slane %v1636_v62, 5  ;;  %v3872_v44 = vld [vmem:[%s5077_s26 + $0x40] sm:$0xf] }
  0x20   : > { %4515 = vmatpush3.bf16.msra.mxu0 %v4860_v11  ;;  %4388 = vmatprep.subr.bf16.mxu1 %v4861_v18  ;;  %v1626_v61 = vrot.slane %v1625_v53, 4  ;;  %v1644_v8 = vrot.slane %v1642_v63, 5  ;;  %v1648_v9 = vrot.slane %v1646_v0, 4  ;;  %v4871_v11 = vld [vmem:[%s5077_s26 + $0x18] sm:$0xff]   ;;  %v1657_v19 = vshrl.u32 %v3868_v13, 16  ;;  %v4879_v58 = vld [vmem:[%s5750_s1 + $0x60] sm:$0xff]  }
  0x21   : > { %4516 = vmatprep.subr.bf16.mxu0 %v4862_v24  ;;  %4520 = vmatprep.mubr.bf16.mxu0 %v3899_v51  ;;  %v1621_v1 = vsel %vm5100_vm2, %v1616_v57, %v1620_v45  ;;  %v1654_v12 = vrot.slane %v1652_v4, 5  ;;  %v1639_v14 = vor.u32 %v1638_v7, %v1635_v3  ;;  %v1660_v20 = vshll.u32 %v3868_v13, 16  ;;  %v3873_v45 = vld [vmem:[%s5077_s26 + $0x44] sm:$0x1]  ;;  %v4881_v13 = vld [vmem:[%s5750_s1 + $0x68] sm:$0xff]  }
  0x22   : > { %v1631_v5 = vsel %vm5100_vm2, %v1626_v61, %v1630_v54  ;;  %v1649_v15 = vor.u32 %v1648_v9, %v1644_v8  ;;  %v1666_v21 = vshll.u32 %v3869_v17, 16  ;;  %v1670_v22 = vshrl.u32 %v3869_v17, 16  ;;  %v3874_v61 = vld [vmem:[%s5077_s26 + $0x48] sm:$0xf]  ;;  %v4880_v62 = vld [vmem:[%s5750_s1 + $0x160] sm:$0xff]  }
  0x23   : > { %4389 = vmatpush3.bf16.msra.mxu1 %v4861_v18  ;;  %v3900_v10 = vcombine.low %v1621_v1, %v1631_v5  ;;  %v3870_v18 = vld [vmem:[%s5077_s26 + $0x38] sm:$0x1]  ;;  %v1640_v25 = vrot.slane %v1639_v14, 4  ;;  %v1659_v28 = vrot.slane %v1657_v19, 4  ;;  %v1662_v29 = vrot.slane %v1660_v20, 5  ;;  %v4878_v5 = vld [vmem:[%s5077_s26 + $0x3c] sm:$0xff]  }
  0x24   : > { %4517 = vmatpush3.bf16.msra.mxu0 %v4862_v24  ;;  %4390 = vmatprep.subr.bf16.mxu1 %v4863_v32  ;;  %v1676_v23 = vshll.u32 %v3870_v18, 16  ;;  %v4874_v24 = vld [vmem:[%s5750_s1 + $0x150] sm:$0xff]   ;;  %v1650_v26 = vrot.slane %v1649_v15, 4  ;;  %v1668_v30 = vrot.slane %v1666_v21, 5  ;;  %v1672_v31 = vrot.slane %v1670_v22, 4  ;;  %v4882_v14 = vld [vmem:[%s5750_s1 + $0x168] sm:$0xff]  }
  0x25   : > { %4518 = vmatprep.subr.bf16.mxu0 %v4864_v38  ;;  %v1645_v35 = vsel %vm5100_vm2, %v1640_v25, %v1644_v8  ;;  %v1663_v37 = vor.u32 %v1662_v29, %v1659_v28  ;;  %v1681_v46 = vshrl.u32 %v3871_v42, 16  ;;  %v1684_v48 = vshll.u32 %v3871_v42, 16  ;;  %v3875_v1 = vld [vmem:[%s5077_s26 + $0x4c] sm:$0xf] }
  0x26   : > { %v1655_v36 = vsel %vm5100_vm2, %v1650_v26, %v1654_v12  ;;  %v1673_v40 = vor.u32 %v1672_v31, %v1668_v30  ;;  %v1694_v50 = vshrl.u32 %v3872_v44, 16  ;;  %v1700_v53 = vshll.u32 %v3873_v45, 16  ;;  %v4883_v18 = vld [vmem:[%s5077_s26 + $0x48] sm:$0xff]   ;;  %v3878_v26 = vld [vmem:[%s5077_s26 + $0x58] sm:$0xf] }
  0x27   : > { %4391 = vmatpush3.bf16.msra.mxu1 %v4863_v32  ;;  %v1678_v32 = vrot.slane %v1676_v23, 5  ;;  %v3901_v39 = vcombine.low %v1645_v35, %v1655_v36  ;;  %v1664_v43 = vrot.slane %v1663_v37, 4  ;;  %v1705_v3 = vshrl.u32 %v3874_v61, 16  ;;  %v4884_v37 = vld [vmem:[%s5077_s26 + $0x54] sm:$0xff]  }
  0x28   : > { %4519 = vmatpush3.bf16.msra.mxu0 %v4864_v38  ;;  %4408 = vmatprep.subr.bf16.mxu1 %v4867_v49  ;;  %v4875_v38 = vld [vmem:[%s5750_s1 + $0x58] sm:$0xff]   ;;  %v1674_v47 = vrot.slane %v1673_v40, 4  ;;  %v1696_v57 = vrot.slane %v1694_v50, 4  ;;  %v1702_v60 = vrot.slane %v1700_v53, 5  ;;  %v1708_v4 = vshll.u32 %v3874_v61, 16 }
  0x29   : > { %4536 = vmatprep.subr.bf16.mxu0 %v4868_v55  ;;  %v1669_v51 = vsel %vm5100_vm2, %v1664_v43, %v1668_v30  ;;  %v1718_v7 = vshrl.u32 %v3875_v1, 16  ;;  %v1738_v31 = vshll.u32 %v3878_v26, 16  ;;  %v4886_v43 = vld [vmem:[%s5750_s1 + $0x170] sm:$0xff]   ;;  %v3881_v50 = vld [vmem:[%s5077_s26 + $0x64] sm:$0xf] }
  0x2a   : > { %4393 = vmatmul.mubr.bf16.vlgmr.msra.gmra.mrb[0].mxu1 %v4866_v52  ;;  %v1683_v52 = vrot.slane %v1681_v46, 4  ;;  %v1679_v54 = vsel %vm5100_vm2, %v1674_v47, %v1678_v32  ;;  %v1710_v12 = vrot.slane %v1708_v4, 5  ;;  %v1742_v32 = vshrl.u32 %v3878_v26, 16  ;;  %v3880_v46 = vld [vmem:[%s5077_s26 + $0x60] sm:$0xf]  ;;  %v4887_v47 = vld [vmem:[%s5750_s1 + $0x78] sm:$0xff]  }
  0x2b   : > { %4521 = vmatmul.mubr.bf16.vlgmr.msra.gmra.mrb[0].mxu0 %v3900_v10  ;;  %4409 = vmatpush3.bf16.msra.mxu1 %v4867_v49  ;;  %v1690_v49 = vshll.u32 %v3872_v44, 16  ;;  %v3902_v59 = vcombine.low %v1669_v51, %v1679_v54  ;;  %v3882_v51 = vld [vmem:[%s5077_s26 + $0x68] sm:$0x1]  ;;  %v1756_v53 = vshll.u32 %v3880_v46, 16  ;;  %v1762_v54 = vshll.u32 %v3881_v50, 16  ;;  %v5231_v26 = vld [vmem:[%s5750_s1 + $0x180] sm:$0xff]  }
  0x2c   : > { %4537 = vmatpush3.bf16.msra.mxu0 %v4868_v55  ;;  %4410 = vmatprep.subr.bf16.mxu1 %v4869_v2  ;;  %v1686_v55 = vrot.slane %v1684_v48, 5  ;;  %v1744_v42 = vrot.slane %v1742_v32, 4 }
  0x2d   : > { %4538 = vmatprep.subr.bf16.mxu0 %v4870_v6  ;;  %4396 = vmatprep.mubr.bf16.mxu1 %v4871_v11  ;;  %v1692_v56 = vrot.slane %v1690_v49, 5  ;;  %v1707_v11 = vrot.slane %v1705_v3, 4  ;;  %v1758_v61 = vrot.slane %v1756_v53, 5 }
  0x2e   : > { %4524 = vmatprep.mubr.bf16.mxu0 %v3901_v39  ;;  %v1687_v63 = vor.u32 %v1686_v55, %v1683_v52  ;;  %v1753_v52 = vshrl.u32 %v3880_v46, 16  ;;  %v1766_v55 = vshrl.u32 %v3881_v50, 16 }
  0x2f   : > { %4411 = vmatpush3.bf16.msra.mxu1 %v4869_v2  ;;  %v1697_v0 = vor.u32 %v1696_v57, %v1692_v56  ;;  %v3876_v2 = vld [vmem:[%s5077_s26 + $0x50] sm:$0x1]  ;;  %v1711_v21 = vor.u32 %v1710_v12, %v1707_v11  ;;  %v4888_v57 = vld [vmem:[%s5750_s1 + $0x178] sm:$0xff]  }
  0x30   : > { %4539 = vmatpush3.bf16.msra.mxu0 %v4870_v6  ;;  %4412 = vmatprep.subr.bf16.mxu1 %v4873_v16  ;;  %v1714_v6 = vshll.u32 %v3875_v1, 16  ;;  %v1724_v8 = vshll.u32 %v3876_v2, 16  ;;  %v1688_v9 = vrot.slane %v1687_v63, 4  ;;  %v1768_v63 = vrot.slane %v1766_v55, 4  ;;  %v5207_v1 = vld [vmem:[%s5750_s1 + $0x80] sm:$0xff]  }
  0x31   : > { %4540 = vmatprep.subr.bf16.mxu0 %v4874_v24  ;;  %v1698_v10 = vrot.slane %v1697_v0, 4  ;;  %v1712_v25 = vrot.slane %v1711_v21, 4 }
  0x32   : > { %4397 = vmatmul.mubr.bf16.gmra.mrb[4].mxu1 %v4872_v27  ;;  %v1716_v15 = vrot.slane %v1714_v6, 5  ;;  %v1726_v17 = vrot.slane %v1724_v8, 5  ;;  %v1693_v19 = vsel %vm5100_vm2, %v1688_v9, %v1692_v56  ;;  %v3879_v27 = vld [vmem:[%s5077_s26 + $0x5c] sm:$0x1]  ;;  %v1772_v56 = vshll.u32 %v3882_v51, 16 }
  0x33   : > { %4413 = vmatpush3.bf16.msra.mxu1 %v4873_v16  ;;  %4400 = vmatprep.mubr.bf16.mxu1 %v4877_v34  ;;  %v1720_v16 = vrot.slane %v1718_v7, 4  ;;  %v1703_v20 = vsel %vm5100_vm2, %v1698_v10, %v1702_v60  ;;  %v1748_v36 = vshll.u32 %v3879_v27, 16  ;;  %v1755_v60 = vrot.slane %v1753_v52, 4  ;;  %v472_v7 = vld [vmem:[%s5077_s26] sm:$0xf] }
  0x34   : > { %4541 = vmatpush3.bf16.msra.mxu0 %v4874_v24  ;;  %4414 = vmatprep.subr.bf16.mxu1 %v4875_v38  ;;  %v3903_v22 = vcombine.low %v1693_v19, %v1703_v20  ;;  %v3877_v24 = vld [vmem:[%s5077_s26 + $0x54] sm:$0xf]  ;;  %v1717_v34 = vsel %vm5100_vm2, %v1712_v25, %v1716_v15  ;;  %v1774_v0 = vrot.slane %v1772_v56, 5  ;;  %v473_v8 = vld [vmem:[%s5077_s26 + $0x4] sm:$0xf]  ;;  %v500_v11 = vshrl.u32 %v472_v7, 16 }
  0x35   : > { %4542 = vmatprep.subr.bf16.mxu0 %v4876_v41  ;;  %4525 = vmatmul.mubr.bf16.gmra.mrb[4].mxu0 %v3902_v59  ;;  %v1721_v23 = vor.u32 %v1720_v16, %v1716_v15  ;;  %v1729_v28 = vshrl.u32 %v3877_v24, 16  ;;  %v1732_v30 = vshll.u32 %v3877_v24, 16  ;;  %v1750_v45 = vrot.slane %v1748_v36, 5  ;;  %v474_v9 = vld [vmem:[%s5077_s26 + $0x8] sm:$0x1] }
  0x36   : > { %4528 = vmatprep.mubr.bf16.mxu0 %v3903_v22  ;;  %v1759_v4 = vor.u32 %v1758_v61, %v1755_v60  ;;  %v503_v12 = vshll.u32 %v472_v7, 16  ;;  %v513_v16 = vshrl.u32 %v473_v8, 16  ;;  %v502_v21 = vrot.slane %v500_v11, 4  ;;  %v3917_v25 = vld [vmem:[%s5077_s26 + $0x14] sm:$0x1]  ;;  %v4891_v11 = vld [vmem:[%s5750_s1 + $0x88] sm:$0xff]  }
  0x37   : > { %4415 = vmatpush3.bf16.msra.mxu1 %v4875_v38  ;;  %v1722_v29 = vrot.slane %v1721_v23, 4  ;;  %v1731_v35 = vrot.slane %v1729_v28, 4  ;;  %v4885_v38 = vld [vmem:[%s5750_s1 + $0x70] sm:$0xff]   ;;  %v1734_v40 = vrot.slane %v1732_v30, 5  ;;  %v3919_v52 = vld [vmem:[%s5077_s26 + $0x1c] sm:$0xf] }
  0x38   : > { %4543 = vmatpush3.bf16.msra.mxu0 %v4876_v41  ;;  %4416 = vmatprep.subr.bf16.mxu1 %v4879_v58  ;;  %v1740_v41 = vrot.slane %v1738_v31, 5  ;;  %v1760_v10 = vrot.slane %v1759_v4, 4  ;;  %v505_v22 = vrot.slane %v503_v12, 5  ;;  %v515_v28 = vrot.slane %v513_v16, 4  ;;  %v475_v31 = vld [vmem:[%s5077_s26 + $0xc] sm:$0xf] }
  0x39   : > { %4544 = vmatprep.subr.bf16.mxu0 %v4880_v62  ;;  %v1727_v39 = vsel %vm5100_vm2, %v1722_v29, %v1726_v17  ;;  %v1735_v48 = vor.u32 %v1734_v40, %v1731_v35  ;;  %v519_v17 = vshll.u32 %v474_v9, 16  ;;  %v2071_v35 = vrot.slane %v3917_v25, 5  ;;  %v476_v36 = vld [vmem:[%s5077_s26 + $0x10] sm:$0xf]  ;;  %v478_v4 = vld [vmem:[%s5077_s26 + $0x18] sm:$0xf] }
  0x3a   : > { %4401 = vmatmul.mubr.bf16.gmra.mrb[8].mxu1 %v4878_v5  ;;  %v3904_v44 = vcombine.low %v1717_v34, %v1727_v39  ;;  %v1745_v49 = vor.u32 %v1744_v42, %v1740_v41  ;;  %v506_v34 = vor.u32 %v505_v22, %v502_v21  ;;  %v527_v42 = vshll.u32 %v475_v31, 16  ;;  %v480_v9 = vld [vmem:[%s5077_s26 + $0x20] sm:$0x1]  ;;  %v4892_v12 = vld [vmem:[%s5750_s1 + $0x188] sm:$0xff]   ;;  %v3921_v16 = vld [vmem:[%s5077_s26 + $0x24] sm:$0xe] }
  0x3b   : > { %4417 = vmatpush3.bf16.msra.mxu1 %v4879_v58  ;;  %4404 = vmatprep.mubr.bf16.mxu1 %v4883_v18  ;;  %v1736_v58 = vrot.slane %v1735_v48, 4  ;;  %v3916_v18 = vld [vmem:[%s5077_s26 + $0x10] sm:$0xf]  ;;  %v521_v29 = vrot.slane %v519_v17, 5  ;;  %v537_v46 = vshrl.u32 %v476_v36, 16 }
  0x3c   : > { %4545 = vmatpush3.bf16.msra.mxu0 %v4880_v62  ;;  %4418 = vmatprep.subr.bf16.mxu1 %v4881_v13  ;;  %v1746_v59 = vrot.slane %v1745_v49, 4  ;;  %v1764_v62 = vrot.slane %v1762_v54, 5  ;;  %v2068_v30 = vrot.slane %v3916_v18, 5  ;;  %v529_v50 = vrot.slane %v527_v42, 5  ;;  %v3922_v21 = vld [vmem:[%s5077_s26 + $0x28] sm:$0xf] }
  0x3d   : > { %4546 = vmatprep.subr.bf16.mxu0 %v4882_v14  ;;  %4529 = vmatmul.mubr.bf16.gmra.mrb[8].mxu0 %v3904_v44  ;;  %v1741_v2 = vsel %vm5100_vm2, %v1736_v58, %v1740_v41  ;;  %v539_v56 = vrot.slane %v537_v46, 4  ;;  %v3923_v22 = vld [vmem:[%s5077_s26 + $0x2c] sm:$0x1] }
  0x3e   : > { %v1751_v3 = vsel %vm5100_vm2, %v1746_v59, %v1750_v45  ;;  %v1769_v6 = vor.u32 %v1768_v63, %v1764_v62  ;;  %v1765_v20 = vsel %vm5100_vm2, %v1760_v10, %v1764_v62  ;;  %v2070_v41 = vrot.slane %v2068_v30, 4 }
  0x3f   : > { %4419 = vmatpush3.bf16.msra.mxu1 %v4881_v13  ;;  %v3905_v5 = vcombine.low %v1741_v2, %v1751_v3  ;;  %v509_v13 = vshll.u32 %v473_v8, 16  ;;  %v533_v45 = vshll.u32 %v476_v36, 16  ;;  %v479_v8 = vld [vmem:[%s5077_s26 + $0x1c] sm:$0xf]  ;;  %v483_v36 = vld [vmem:[%s5077_s26 + $0x2c] sm:$0x1] }
  0x40   : > { %4547 = vmatpush3.bf16.msra.mxu0 %v4882_v14  ;;  %4420 = vmatprep.subr.bf16.mxu1 %v4885_v38  ;;  %v3915_v14 = vld [vmem:[%s5077_s26 + $0xc] sm:$0xe]  ;;  %v1770_v15 = vrot.slane %v1769_v6, 4  ;;  %v2072_v49 = vsel %vm5222_vm5, %v2070_v41, %v2071_v35  ;;  %v3941_v35 = vrot.slane %v3921_v16, 9 }
  0x41   : > { %4548 = vmatprep.subr.bf16.mxu0 %v4886_v43  ;;  %4532 = vmatprep.mubr.bf16.mxu0 %v3905_v5  ;;  %v3939_v19 = vrot.slane %v3915_v14, 9  ;;  %v511_v23 = vrot.slane %v509_v13, 5  ;;  %v535_v55 = vrot.slane %v533_v45, 5  ;;  %v548_v13 = vshrl.u32 %v478_v4, 16  ;;  %v4893_v45 = vld [vmem:[%s5750_s1 + $0x90] sm:$0xff]  }
  0x42   : > { %4405 = vmatmul.mubr.bf16.gmra.mrb[12].mxu1 %v4884_v37  ;;  %v1775_v27 = vsel %vm5100_vm2, %v1770_v15, %v1774_v0  ;;  %v477_v37 = vld [vmem:[%s5077_s26 + $0x14] sm:$0x1]  ;;  %v2075_v0 = vrot.slane %v3919_v52, 5  ;;  %v551_v14 = vshll.u32 %v478_v4, 16  ;;  %v557_v15 = vshll.u32 %v479_v8, 16 }
  0x43   : > { %4421 = vmatpush3.bf16.msra.mxu1 %v4885_v38  ;;  %v3906_v32 = vcombine.low %v1765_v20, %v1775_v27  ;;  %v524_v38 = vshrl.u32 %v475_v31, 16  ;;  %v516_v39 = vor.u32 %v515_v28, %v511_v23  ;;  %v2069_v40 = vsel %vm5222_vm5, %v3939_v19, %v2068_v30  ;;  %v482_v30 = vld [vmem:[%s5077_s26 + $0x28] sm:$0xf] }
  0x44   : > { %4549 = vmatpush3.bf16.msra.mxu0 %v4886_v43  ;;  %4422 = vmatprep.subr.bf16.mxu1 %v4887_v47  ;;  %v507_v43 = vrot.slane %v506_v34, 4  ;;  %v543_v51 = vshll.u32 %v477_v37, 16  ;;  %v3963_v54 = vcombine.low %v2069_v40, %v2072_v49  ;;  %v540_v63 = vor.u32 %v539_v56, %v535_v55  ;;  %v3924_v49 = vld [vmem:[%s5077_s26 + $0x30] sm:$0xe] }
  0x45   : > { %4550 = vmatprep.subr.bf16.mxu0 %v4888_v57  ;;  %4533 = vmatmul.mubr.bf16.gmra.mrb[12].mxu0 %v3906_v32  ;;  %v526_v44 = vrot.slane %v524_v38, 4  ;;  %v517_v48 = vrot.slane %v516_v39, 4  ;;  %v2077_v7 = vrot.slane %v2075_v0, 4  ;;  %v561_v19 = vshrl.u32 %v479_v8, 16 }
  0x46   : > { %v512_v53 = vsel %vm5100_vm2, %v507_v43, %v511_v23  ;;  %v545_v60 = vrot.slane %v543_v51, 5  ;;  %4552 = vmatprep.mubr.bf16.mxu0 %v3963_v54  ;;  %v541_v5 = vrot.slane %v540_v63, 4  ;;  %v567_v20 = vshll.u32 %v480_v9, 16  ;;  %v3925_v54 = vld [vmem:[%s5077_s26 + $0x34] sm:$0xf] }
  0x47   : > { %4423 = vmatpush3.bf16.msra.mxu1 %v4887_v47  ;;  %v3918_v47 = vld [vmem:[%s5077_s26 + $0x18] sm:$0xe]  ;;  %v522_v58 = vsel %vm5100_vm2, %v517_v48, %v521_v29  ;;  %v530_v59 = vor.u32 %v529_v50, %v526_v44  ;;  %v550_v27 = vrot.slane %v548_v13, 4  ;;  %v553_v28 = vrot.slane %v551_v14, 5  ;;  %v481_v29 = vld [vmem:[%s5077_s26 + $0x24] sm:$0xf] }
  0x48   : > { %4551 = vmatpush3.bf16.msra.mxu0 %v4888_v57  ;;  %4440 = vmatprep.subr.bf16.mxu1 %v5207_v1  ;;  %v3920_v57 = vld [vmem:[%s5077_s26 + $0x20] sm:$0x1]  ;;  %v3940_v61 = vrot.slane %v3918_v47, 9  ;;  %v3753_v62 = vcombine.low %v512_v53, %v522_v58  ;;  %v546_v17 = vsel %vm5100_vm2, %v541_v5, %v545_v60  ;;  %v559_v31 = vrot.slane %v557_v15, 5  ;;  %v3926_v58 = vld [vmem:[%s5077_s26 + $0x38] sm:$0x1] }
  0x49   : > { %4568 = vmatprep.subr.bf16.mxu0 %v5231_v26  ;;  %v2078_v2 = vrot.slane %v3920_v57, 5  ;;  %v531_v3 = vrot.slane %v530_v59, 4  ;;  %v563_v32 = vrot.slane %v561_v19, 4  ;;  %v569_v34 = vrot.slane %v567_v20, 5  ;;  %v4895_v60 = vld [vmem:[%s5750_s1 + $0x98] sm:$0xff]   ;;  %v4898_v15 = vld [vmem:[%s5750_s1 + $0x1a0] sm:$0xff]  }
  0x4a   : > { %4424 = vmatprep.mubr.bf16.mxu1 %v3753_v62  ;;  %v2076_v6 = vsel %vm5222_vm5, %v3940_v61, %v2075_v0  ;;  %v554_v37 = vor.u32 %v553_v28, %v550_v27  ;;  %v2082_v38 = vrot.slane %v3922_v21, 5  ;;  %v2085_v39 = vrot.slane %v3923_v22, 5  ;;  %v486_v13 = vld [vmem:[%s5077_s26 + $0x38] sm:$0x1]  ;;  %v3927_v20 = vld [vmem:[%s5077_s26 + $0x3c] sm:$0xe] }
  0x4b   : > { %v536_v10 = vsel %vm5100_vm2, %v531_v3, %v535_v55  ;;  %v2079_v18 = vsel %vm5222_vm5, %v2077_v7, %v2078_v2  ;;  %v572_v40 = vshrl.u32 %v481_v29, 16  ;;  %v564_v41 = vor.u32 %v563_v32, %v559_v31  ;;  %v4896_v2 = vld [vmem:[%s5750_s1 + $0x198] sm:$0xff]   ;;  %v3928_v21 = vld [vmem:[%s5077_s26 + $0x40] sm:$0xf]  ;;  %v3929_v28 = vld [vmem:[%s5077_s26 + $0x44] sm:$0x1] }
  0x4c   : > { %v3754_v23 = vcombine.low %v536_v10, %v546_v17  ;;  %v3964_v25 = vcombine.low %v2076_v6, %v2079_v18  ;;  %v575_v42 = vshll.u32 %v481_v29, 16  ;;  %v581_v43 = vshll.u32 %v482_v30, 16  ;;  %v484_v10 = vld [vmem:[%s5077_s26 + $0x30] sm:$0xf]  ;;  %v487_v29 = vld [vmem:[%s5077_s26 + $0x3c] sm:$0xf] }
  0x4d   : > { %v585_v44 = vshrl.u32 %v482_v30, 16  ;;  %v555_v46 = vrot.slane %v554_v37, 4  ;;  %v2083_v47 = vsel %vm5222_vm5, %v3941_v35, %v2082_v38  ;;  %v2084_v48 = vrot.slane %v2082_v38, 4  ;;  %v488_v35 = vld [vmem:[%s5077_s26 + $0x40] sm:$0xf] }
  0x4e   : > { %4425 = vmatmul.mubr.bf16.vlgmr.msra.gmra.mrb[0].mxu1 %v3754_v23  ;;  %4553 = vmatmul.mubr.bf16.vlgmr.msra.gmra.mrb[0].mxu0 %v3964_v25  ;;  %v565_v50 = vrot.slane %v564_v41, 4  ;;  %v577_v51 = vrot.slane %v575_v42, 5  ;;  %v583_v52 = vrot.slane %v581_v43, 5  ;;  %v591_v57 = vshll.u32 %v483_v36, 16  ;;  %v4897_v36 = vld [vmem:[%s5750_s1 + $0xa0] sm:$0xff]  }
  0x4f   : > { %4441 = vmatpush3.bf16.msra.mxu1 %v5207_v1  ;;  %4569 = vmatpush3.bf16.msra.mxu0 %v5231_v26  ;;  %v574_v1 = vrot.slane %v572_v40, 4  ;;  %v4894_v26 = vld [vmem:[%s5750_s1 + $0x190] sm:$0xff]   ;;  %v587_v53 = vrot.slane %v585_v44, 4  ;;  %v560_v55 = vsel %vm5100_vm2, %v555_v46, %v559_v31  ;;  %v2086_v56 = vsel %vm5222_vm5, %v2084_v48, %v2085_v39  ;;  %v489_v41 = vld [vmem:[%s5077_s26 + $0x44] sm:$0x1]  ;;  %v4899_v46 = vld [vmem:[%s5750_s1 + $0xa8] sm:$0xff]  }
  0x50   : > { %4442 = vmatprep.subr.bf16.mxu1 %v4891_v11  ;;  %4570 = vmatprep.subr.bf16.mxu0 %v4892_v12  ;;  %v3942_v59 = vrot.slane %v3924_v49, 9  ;;  %v570_v61 = vsel %vm5100_vm2, %v565_v50, %v569_v34  ;;  %v3965_v62 = vcombine.low %v2083_v47, %v2086_v56  ;;  %v2089_v0 = vrot.slane %v3925_v54, 5  ;;  %v4900_v47 = vld [vmem:[%s5750_s1 + $0x1a8] sm:$0xff]  }
  0x51   : > { %v578_v63 = vor.u32 %v577_v51, %v574_v1  ;;  %v3755_v3 = vcombine.low %v560_v55, %v570_v61  ;;  %v588_v4 = vor.u32 %v587_v53, %v583_v52  ;;  %v593_v5 = vrot.slane %v591_v57, 5  ;;  %v3930_v50 = vld [vmem:[%s5077_s26 + $0x48] sm:$0xe]  ;;  %v3931_v55 = vld [vmem:[%s5077_s26 + $0x4c] sm:$0xf] }
  0x52   : > { %v2092_v6 = vrot.slane %v3926_v58, 5  ;;  %4556 = vmatprep.mubr.bf16.mxu0 %v3965_v62  ;;  %v2090_v8 = vsel %vm5222_vm5, %v3942_v59, %v2089_v0  ;;  %v2091_v9 = vrot.slane %v2089_v0, 4  ;;  %v596_v14 = vshrl.u32 %v484_v10, 16 }
  0x53   : > { %4443 = vmatpush3.bf16.msra.mxu1 %v4891_v11  ;;  %4571 = vmatpush3.bf16.msra.mxu0 %v4892_v12  ;;  %v579_v7 = vrot.slane %v578_v63, 4  ;;  %v589_v11 = vrot.slane %v588_v4, 4  ;;  %v485_v12 = vld [vmem:[%s5077_s26 + $0x34] sm:$0xf]  ;;  %v599_v18 = vshll.u32 %v484_v10, 16  ;;  %v615_v34 = vshll.u32 %v486_v13, 16 }
  0x54   : > { %4444 = vmatprep.subr.bf16.mxu1 %v4893_v45  ;;  %4572 = vmatprep.subr.bf16.mxu0 %v4894_v26  ;;  %v2093_v17 = vsel %vm5222_vm5, %v2091_v9, %v2092_v6  ;;  %v605_v19 = vshll.u32 %v485_v12, 16  ;;  %v598_v25 = vrot.slane %v596_v14, 4  ;;  %v609_v27 = vshrl.u32 %v485_v12, 16  ;;  %v490_v14 = vld [vmem:[%s5077_s26 + $0x48] sm:$0xf] }
  0x55   : > { %4428 = vmatprep.mubr.bf16.mxu1 %v3755_v3  ;;  %v584_v16 = vsel %vm5100_vm2, %v579_v7, %v583_v52  ;;  %v594_v22 = vsel %vm5100_vm2, %v589_v11, %v593_v5  ;;  %v3966_v23 = vcombine.low %v2090_v8, %v2093_v17  ;;  %v601_v31 = vrot.slane %v599_v18, 5  ;;  %v4902_v7 = vld [vmem:[%s5750_s1 + $0x1b0] sm:$0xff]   ;;  %v491_v17 = vld [vmem:[%s5077_s26 + $0x4c] sm:$0xf] }
  0x56   : > { %v3756_v30 = vcombine.low %v584_v16, %v594_v22  ;;  %v607_v32 = vrot.slane %v605_v19, 5  ;;  %v611_v37 = vrot.slane %v609_v27, 4  ;;  %v3943_v38 = vrot.slane %v3927_v20, 9  ;;  %v492_v18 = vld [vmem:[%s5077_s26 + $0x50] sm:$0x1]  ;;  %v4904_v27 = vld [vmem:[%s5750_s1 + $0x1b8] sm:$0xff]  }
  0x57   : > { %4445 = vmatpush3.bf16.msra.mxu1 %v4893_v45  ;;  %4573 = vmatpush3.bf16.msra.mxu0 %v4894_v26  ;;  %v2096_v39 = vrot.slane %v3928_v21, 5  ;;  %v2099_v40 = vrot.slane %v3929_v28, 5  ;;  %v602_v42 = vor.u32 %v601_v31, %v598_v25  ;;  %v617_v43 = vrot.slane %v615_v34, 5  ;;  %v3933_v25 = vld [vmem:[%s5077_s26 + $0x54] sm:$0xe] }
  0x58   : > { %4446 = vmatprep.subr.bf16.mxu1 %v4895_v60  ;;  %4574 = vmatprep.subr.bf16.mxu0 %v4896_v2  ;;  %v620_v44 = vshrl.u32 %v487_v29, 16  ;;  %v623_v45 = vshll.u32 %v487_v29, 16  ;;  %v612_v48 = vor.u32 %v611_v37, %v607_v32  ;;  %v629_v26 = vshll.u32 %v488_v35, 16  ;;  %v3935_v34 = vld [vmem:[%s5077_s26 + $0x5c] sm:$0x1] }
  0x59   : > { %4557 = vmatmul.mubr.bf16.gmra.mrb[4].mxu0 %v3966_v23  ;;  %4429 = vmatmul.mubr.bf16.gmra.mrb[4].mxu1 %v3756_v30  ;;  %v2097_v1 = vsel %vm5222_vm5, %v3943_v38, %v2096_v39  ;;  %v2098_v49 = vrot.slane %v2096_v39, 4  ;;  %v603_v51 = vrot.slane %v602_v42, 4  ;;  %v633_v54 = vshrl.u32 %v488_v35, 16  ;;  %v493_v39 = vld [vmem:[%s5077_s26 + $0x54] sm:$0xf] }
  0x5a   : > { %v622_v52 = vrot.slane %v620_v44, 4  ;;  %v625_v53 = vrot.slane %v623_v45, 5  ;;  %v613_v56 = vrot.slane %v612_v48, 4  ;;  %v631_v58 = vrot.slane %v629_v26, 5  ;;  %v494_v45 = vld [vmem:[%s5077_s26 + $0x58] sm:$0xf] }
  0x5b   : > { %4575 = vmatpush3.bf16.msra.mxu0 %v4896_v2  ;;  %4447 = vmatpush3.bf16.msra.mxu1 %v4895_v60  ;;  %v2100_v57 = vsel %vm5222_vm5, %v2098_v49, %v2099_v40  ;;  %v639_v59 = vshll.u32 %v489_v41, 16  ;;  %v3932_v60 = vld [vmem:[%s5077_s26 + $0x50] sm:$0x1]  ;;  %v608_v61 = vsel %vm5100_vm2, %v603_v51, %v607_v32  ;;  %v635_v0 = vrot.slane %v633_v54, 4  ;;  %v3934_v32 = vld [vmem:[%s5077_s26 + $0x58] sm:$0xf] }
  0x5c   : > { %4576 = vmatprep.subr.bf16.mxu0 %v4898_v15  ;;  %4448 = vmatprep.subr.bf16.mxu1 %v4897_v36  ;;  %v3967_v62 = vcombine.low %v2097_v1, %v2100_v57  ;;  %v626_v63 = vor.u32 %v625_v53, %v622_v52  ;;  %v4901_v2 = vld [vmem:[%s5750_s1 + $0xb0] sm:$0xff]   ;;  %v618_v3 = vsel %vm5100_vm2, %v613_v56, %v617_v43  ;;  %v3944_v5 = vrot.slane %v3930_v50, 9  ;;  %v4903_v40 = vld [vmem:[%s5750_s1 + $0xb8] sm:$0xff]   ;;  %v5372_v53 = vld [vmem:[%s5750_s1 + $0xc0] sm:$0xff]  }
  0x5d   : > { %v641_v4 = vrot.slane %v639_v59, 5  ;;  %v2103_v6 = vrot.slane %v3931_v55, 5  ;;  %v3757_v8 = vcombine.low %v608_v61, %v618_v3  ;;  %v636_v10 = vor.u32 %v635_v0, %v631_v58  ;;  %v495_v48 = vld [vmem:[%s5077_s26 + $0x5c] sm:$0x1]  ;;  %v5381_v0 = vld [vmem:[%s5750_s1 + $0x1c0] sm:$0xff]  }
  0x5e   : > { %4560 = vmatprep.mubr.bf16.mxu0 %v3967_v62  ;;  %v627_v9 = vrot.slane %v626_v63, 4  ;;  %v2106_v11 = vrot.slane %v3932_v60, 5  ;;  %v644_v19 = vshrl.u32 %v490_v14, 16  ;;  %v647_v21 = vshll.u32 %v490_v14, 16  ;;  %v3937_v63 = vld [vmem:[%s5077_s26 + $0x64] sm:$0xf] }
  0x5f   : > { %4577 = vmatpush3.bf16.msra.mxu0 %v4898_v15  ;;  %4449 = vmatpush3.bf16.msra.mxu1 %v4897_v36  ;;  %v2104_v12 = vsel %vm5222_vm5, %v3944_v5, %v2103_v6  ;;  %v2105_v13 = vrot.slane %v2103_v6, 4  ;;  %v637_v16 = vrot.slane %v636_v10, 4  ;;  %v653_v22 = vshll.u32 %v491_v17, 16  ;;  %v3938_v6 = vld [vmem:[%s5077_s26 + $0x68] sm:$0x1] }
  0x60   : > { %4578 = vmatprep.subr.bf16.mxu0 %v4900_v47  ;;  %4450 = vmatprep.subr.bf16.mxu1 %v4899_v46  ;;  %v632_v15 = vsel %vm5100_vm2, %v627_v9, %v631_v58  ;;  %v657_v23 = vshrl.u32 %v491_v17, 16  ;;  %v646_v30 = vrot.slane %v644_v19, 4  ;;  %v663_v31 = vshll.u32 %v492_v18, 16  ;;  %v3936_v58 = vld [vmem:[%s5077_s26 + $0x60] sm:$0xe] }
  0x61   : > { %4432 = vmatprep.mubr.bf16.mxu1 %v3757_v8  ;;  %v2107_v20 = vsel %vm5222_vm5, %v2105_v13, %v2106_v11  ;;  %v642_v28 = vsel %vm5100_vm2, %v637_v16, %v641_v4  ;;  %v649_v36 = vrot.slane %v647_v21, 5  ;;  %v655_v37 = vrot.slane %v653_v22, 5  ;;  %v934_v19 = vld [vmem:[%s5077_s26 + $0x4] sm:$0xf]  ;;  %v4905_v22 = vld [vmem:[%s5077_s26 + $0x18] sm:$0xff]  }
  0x62   : > { %v3968_v29 = vcombine.low %v2104_v12, %v2107_v20  ;;  %v3758_v35 = vcombine.low %v632_v15, %v642_v28  ;;  %v659_v38 = vrot.slane %v657_v23, 4  ;;  %v665_v41 = vrot.slane %v663_v31, 5  ;;  %v933_v15 = vld [vmem:[%s5077_s26] sm:$0xe]  ;;  %v935_v20 = vld [vmem:[%s5077_s26 + $0x8] sm:$0x1] }
  0x63   : > { %4579 = vmatpush3.bf16.msra.mxu0 %v4900_v47  ;;  %4451 = vmatpush3.bf16.msra.mxu1 %v4899_v46  ;;  %v3945_v42 = vrot.slane %v3933_v25, 9  ;;  %v2110_v43 = vrot.slane %v3934_v32, 5  ;;  %v2113_v44 = vrot.slane %v3935_v34, 5  ;;  %v650_v46 = vor.u32 %v649_v36, %v646_v30  ;;  %v936_v30 = vld [vmem:[%s5077_s26 + $0xc] sm:$0xe] }
  0x64   : > { %4580 = vmatprep.subr.bf16.mxu0 %v4902_v7  ;;  %4452 = vmatprep.subr.bf16.mxu1 %v4901_v2  ;;  %v660_v47 = vor.u32 %v659_v38, %v655_v37  ;;  %v668_v1 = vshrl.u32 %v493_v39, 16  ;;  %v671_v49 = vshll.u32 %v493_v39, 16  ;;  %v677_v51 = vshll.u32 %v494_v45, 16  ;;  %v937_v31 = vld [vmem:[%s5077_s26 + $0x10] sm:$0xf] }
  0x65   : > { %4561 = vmatmul.mubr.bf16.gmra.mrb[8].mxu0 %v3968_v29  ;;  %4433 = vmatmul.mubr.bf16.gmra.mrb[8].mxu1 %v3758_v35  ;;  %v2111_v26 = vsel %vm5222_vm5, %v3945_v42, %v2110_v43  ;;  %v2112_v50 = vrot.slane %v2110_v43, 4  ;;  %v681_v52 = vshrl.u32 %v494_v45, 16  ;;  %v651_v54 = vrot.slane %v650_v46, 4  ;;  %v938_v32 = vld [vmem:[%s5077_s26 + $0x14] sm:$0x1] }
  0x66   : > { %v661_v55 = vrot.slane %v660_v47, 4  ;;  %v670_v56 = vrot.slane %v668_v1, 4  ;;  %v673_v57 = vrot.slane %v671_v49, 5  ;;  %v679_v60 = vrot.slane %v677_v51, 5  ;;  %v939_v45 = vld [vmem:[%s5077_s26 + $0x18] sm:$0xe] }
  0x67   : > { %4581 = vmatpush3.bf16.msra.mxu0 %v4902_v7  ;;  %4453 = vmatpush3.bf16.msra.mxu1 %v4901_v2  ;;  %v2114_v59 = vsel %vm5222_vm5, %v2112_v50, %v2113_v44  ;;  %v683_v61 = vrot.slane %v681_v52, 4  ;;  %v687_v62 = vshll.u32 %v495_v48, 16  ;;  %v656_v2 = vsel %vm5100_vm2, %v651_v54, %v655_v37  ;;  %v4907_v44 = vld [vmem:[%s5077_s26 + $0x24] sm:$0xff]   ;;  %v940_v46 = vld [vmem:[%s5077_s26 + $0x1c] sm:$0xf] }
  0x68   : > { %4582 = vmatprep.subr.bf16.mxu0 %v4904_v27  ;;  %4454 = vmatprep.subr.bf16.mxu1 %v4903_v40  ;;  %v666_v3 = vsel %vm5100_vm2, %v661_v55, %v665_v41  ;;  %v3969_v4 = vcombine.low %v2111_v26, %v2114_v59  ;;  %v674_v5 = vor.u32 %v673_v57, %v670_v56  ;;  %v3946_v10 = vrot.slane %v3936_v58, 9  ;;  %v4909_v48 = vld [vmem:[%s5750_s1 + $0xc8] sm:$0xff]   ;;  %v941_v1 = vld [vmem:[%s5077_s26 + $0x20] sm:$0x1]  ;;  %v942_v54 = vld [vmem:[%s5077_s26 + $0x24] sm:$0xe] }
  0x69   : > { %v3759_v7 = vcombine.low %v656_v2, %v666_v3  ;;  %v684_v8 = vor.u32 %v683_v61, %v679_v60  ;;  %v689_v9 = vrot.slane %v687_v62, 5  ;;  %v2117_v12 = vrot.slane %v3937_v63, 5  ;;  %v4910_v51 = vld [vmem:[%s5750_s1 + $0x1c8] sm:$0xff]   ;;  %v4911_v63 = vld [vmem:[%s5077_s26 + $0x30] sm:$0xff]  }
  0x6a   : > { %4564 = vmatprep.mubr.bf16.mxu0 %v3969_v4  ;;  %v675_v11 = vrot.slane %v674_v5, 4  ;;  %v2120_v13 = vrot.slane %v3938_v6, 5  ;;  %v3769_v21 = vrot.slane %v933_v15, 9  ;;  %v986_v25 = vrot.slane %v934_v19, 5  ;;  %v943_v57 = vld [vmem:[%s5077_s26 + $0x28] sm:$0xf] }
  0x6b   : > { %4583 = vmatpush3.bf16.msra.mxu0 %v4904_v27  ;;  %4455 = vmatpush3.bf16.msra.mxu1 %v4903_v40  ;;  %v685_v14 = vrot.slane %v684_v8, 4  ;;  %v2118_v17 = vsel %vm5222_vm5, %v3946_v10, %v2117_v12  ;;  %v2119_v18 = vrot.slane %v2117_v12, 4  ;;  %v989_v27 = vrot.slane %v935_v20, 5  ;;  %v944_v58 = vld [vmem:[%s5077_s26 + $0x2c] sm:$0x1]  ;;  %v4912_v5 = vld [vmem:[%s5750_s1 + $0xd0] sm:$0xff]  }
  0x6c   : > { %4600 = vmatprep.subr.bf16.mxu0 %v5381_v0  ;;  %4472 = vmatprep.subr.bf16.mxu1 %v5372_v53  ;;  %v680_v16 = vsel %vm5100_vm2, %v675_v11, %v679_v60  ;;  %v987_v35 = vsel %vm5222_vm5, %v3769_v21, %v986_v25  ;;  %v988_v36 = vrot.slane %v986_v25, 4  ;;  %v3770_v37 = vrot.slane %v936_v30, 9  ;;  %v946_v10 = vld [vmem:[%s5077_s26 + $0x34] sm:$0xf]  ;;  %v947_v11 = vld [vmem:[%s5077_s26 + $0x38] sm:$0x1] }
  0x6d   : > { %4436 = vmatprep.mubr.bf16.mxu1 %v3759_v7  ;;  %v690_v23 = vsel %vm5100_vm2, %v685_v14, %v689_v9  ;;  %v2121_v29 = vsel %vm5222_vm5, %v2119_v18, %v2120_v13  ;;  %v993_v38 = vrot.slane %v937_v31, 5  ;;  %v996_v39 = vrot.slane %v938_v32, 5  ;;  %v4914_v7 = vld [vmem:[%s5750_s1 + $0x1d0] sm:$0xff]   ;;  %v4916_v12 = vld [vmem:[%s5750_s1 + $0x1d8] sm:$0xff]   ;;  %v4917_v20 = vld [vmem:[%s5077_s26 + $0x48] sm:$0xff]  }
  0x6e   : > { %v3760_v28 = vcombine.low %v680_v16, %v690_v23  ;;  %v3970_v34 = vcombine.low %v2118_v17, %v2121_v29  ;;  %v990_v40 = vsel %vm5222_vm5, %v988_v36, %v989_v27  ;;  %v3771_v49 = vrot.slane %v939_v45, 9  ;;  %v945_v9 = vld [vmem:[%s5077_s26 + $0x30] sm:$0xe]  ;;  %v948_v16 = vld [vmem:[%s5077_s26 + $0x3c] sm:$0xe]  ;;  %v4918_v30 = vld [vmem:[%s5750_s1 + $0xe0] sm:$0xff]  }
  0x6f   : > { %v3793_v41 = vcombine.low %v987_v35, %v990_v40  ;;  %v994_v42 = vsel %vm5222_vm5, %v3770_v37, %v993_v38  ;;  %v995_v43 = vrot.slane %v993_v38, 4  ;;  %v1000_v26 = vrot.slane %v940_v46, 5  ;;  %v949_v17 = vld [vmem:[%s5077_s26 + $0x40] sm:$0xf]  ;;  %v950_v21 = vld [vmem:[%s5077_s26 + $0x44] sm:$0x1] }
  0x70   : > { %4437 = vmatmul.mubr.bf16.gmra.mrb[12].mxu1 %v3760_v28  ;;  %4565 = vmatmul.mubr.bf16.gmra.mrb[12].mxu0 %v3970_v34  ;;  %v1003_v52 = vrot.slane %v941_v1, 5  ;;  %v3772_v59 = vrot.slane %v942_v54, 9  ;;  %v1007_v60 = vrot.slane %v943_v57, 5  ;;  %v1010_v61 = vrot.slane %v944_v58, 5  ;;  %v4919_v34 = vld [vmem:[%s5077_s26 + $0x54] sm:$0xff]   ;;  %v4920_v35 = vld [vmem:[%s5750_s1 + $0x1e0] sm:$0xff]  }
  0x71   : > { %4584 = vmatprep.mubr.bf16.mxu0 %v4905_v22  ;;  %4456 = vmatprep.mubr.bf16.mxu1 %v3793_v41  ;;  %v997_v47 = vsel %vm5222_vm5, %v995_v43, %v996_v39  ;;  %v1001_v55 = vsel %vm5222_vm5, %v3771_v49, %v1000_v26  ;;  %v1002_v56 = vrot.slane %v1000_v26, 4  ;;  %v3773_v13 = vrot.slane %v945_v9, 9  ;;  %v4921_v37 = vld [vmem:[%s5750_s1 + $0xe8] sm:$0xff]   ;;  %v953_v41 = vld [vmem:[%s5077_s26 + $0x50] sm:$0x1]  ;;  %v4923_v43 = vld [vmem:[%s5077_s26 + $0x60] sm:$0xff]  }
  0x72   : > { %v3794_v50 = vcombine.low %v994_v42, %v997_v47  ;;  %v1008_v3 = vsel %vm5222_vm5, %v3772_v59, %v1007_v60  ;;  %v1009_v4 = vrot.slane %v1007_v60, 4  ;;  %v1014_v14 = vrot.slane %v946_v10, 5  ;;  %v951_v38 = vld [vmem:[%s5077_s26 + $0x48] sm:$0xe]  ;;  %v952_v40 = vld [vmem:[%s5077_s26 + $0x4c] sm:$0xf] }
  0x73   : > { %v1004_v62 = vsel %vm5222_vm5, %v1002_v56, %v1003_v52  ;;  %v1017_v15 = vrot.slane %v947_v11, 5  ;;  %v3774_v22 = vrot.slane %v948_v16, 9  ;;  %v1021_v23 = vrot.slane %v949_v17, 5  ;;  %v4922_v39 = vld [vmem:[%s5750_s1 + $0x1e8] sm:$0xff]   ;;  %v954_v46 = vld [vmem:[%s5077_s26 + $0x54] sm:$0xe] }
  0x74   : > { %v3795_v2 = vcombine.low %v1001_v55, %v1004_v62  ;;  %v1011_v6 = vsel %vm5222_vm5, %v1009_v4, %v1010_v61  ;;  %v1015_v18 = vsel %vm5222_vm5, %v3773_v13, %v1014_v14  ;;  %v1016_v19 = vrot.slane %v1014_v14, 4  ;;  %v955_v47 = vld [vmem:[%s5077_s26 + $0x58] sm:$0xf]  ;;  %v4924_v52 = vld [vmem:[%s5750_s1 + $0xf0] sm:$0xff]   ;;  %v4030_v4 = vld [vmem:[%s5077_s26 + $0x1c] sm:$0xf] }
  0x75   : > { %v3796_v8 = vcombine.low %v1008_v3, %v1011_v6  ;;  %v1024_v25 = vrot.slane %v950_v21, 5  ;;  %v1022_v28 = vsel %vm5222_vm5, %v3774_v22, %v1021_v23  ;;  %v1023_v29 = vrot.slane %v1021_v23, 4  ;;  %v4926_v57 = vld [vmem:[%s5750_s1 + $0x1f0] sm:$0xff]   ;;  %v4927_v61 = vld [vmem:[%s5750_s1 + $0xf8] sm:$0xff]   ;;  %v4032_v13 = vld [vmem:[%s5077_s26 + $0x24] sm:$0xf] }
  0x76   : > { %v1018_v27 = vsel %vm5222_vm5, %v1016_v19, %v1017_v15  ;;  %v3775_v42 = vrot.slane %v951_v38, 9  ;;  %v1031_v45 = vrot.slane %v953_v41, 5  ;;  %v3776_v26 = vrot.slane %v954_v46, 9  ;;  %v4925_v59 = vld [vmem:[%s5077_s26 + $0x6c] sm:$0xff]   ;;  %v4029_v3 = vld [vmem:[%s5077_s26 + $0x18] sm:$0xf] }
  0x77   : > { %v3797_v31 = vcombine.low %v1015_v18, %v1018_v27  ;;  %v1025_v32 = vsel %vm5222_vm5, %v1023_v29, %v1024_v25  ;;  %v2667_v6 = vshrl.u32 %v4029_v3, 16  ;;  %v4930_v15 = vld [vmem:[%s5077_s26 + $0x18] sm:$0xff]   ;;  %v4033_v16 = vld [vmem:[%s5077_s26 + $0x28] sm:$0xf]  ;;  %v4034_v17 = vld [vmem:[%s5077_s26 + $0x2c] sm:$0x1] }
  0x78   : > { %4457 = vmatmul.mubr.bf16.vlgmr.msra.gmra.mrb[0].mxu1 %v3794_v50  ;;  %4585 = vmatmul.mubr.bf16.vlgmr.msra.gmra.mrb[0].mxu0 %v4907_v44  ;;  %v3798_v36 = vcombine.low %v1022_v28, %v1025_v32  ;;  %v1028_v44 = vrot.slane %v952_v40, 5  ;;  %v1035_v50 = vrot.slane %v955_v47, 5  ;;  %v2691_v18 = vshrl.u32 %v4032_v13, 16  ;;  %v4931_v28 = vld [vmem:[%s5750_s1 + $0x200] sm:$0xff]   ;;  %v4035_v41 = vld [vmem:[%s5077_s26 + $0x30] sm:$0xf] }
  0x79   : > { %4473 = vmatpush3.bf16.msra.mxu1 %v5372_v53  ;;  %4601 = vmatpush3.bf16.msra.mxu0 %v5381_v0  ;;  %v4913_v53 = vld [vmem:[%s5077_s26 + $0x3c] sm:$0xff]   ;;  %v2669_v9 = vrot.slane %v2667_v6, 4  ;;  %v2694_v21 = vshll.u32 %v4032_v13, 16  ;;  %v2700_v22 = vshll.u32 %v4033_v16, 16  ;;  %v2704_v25 = vshrl.u32 %v4033_v16, 16 }
  0x7a   : > { %4474 = vmatprep.subr.bf16.mxu1 %v4909_v48  ;;  %4602 = vmatprep.subr.bf16.mxu0 %v4910_v51  ;;  %v4915_v0 = vld [vmem:[%s5750_s1 + $0xd8] sm:$0xff]   ;;  %v1029_v1 = vsel %vm5222_vm5, %v3775_v42, %v1028_v44  ;;  %v1030_v49 = vrot.slane %v1028_v44, 4  ;;  %v1036_v55 = vsel %vm5222_vm5, %v3776_v26, %v1035_v50  ;;  %v1037_v56 = vrot.slane %v1035_v50, 4  ;;  %v4036_v42 = vld [vmem:[%s5077_s26 + $0x34] sm:$0xf] }
  0x7b   : > { %4460 = vmatprep.mubr.bf16.mxu1 %v3795_v2  ;;  %4588 = vmatprep.mubr.bf16.mxu0 %v4911_v63  ;;  %v4928_v63 = vld [vmem:[%s5750_s1 + $0x1f8] sm:$0xff]   ;;  %v4929_v2 = vld [vmem:[%s5077_s26 + $0xc] sm:$0xff]   ;;  %v2693_v23 = vrot.slane %v2691_v18, 4  ;;  %v2710_v27 = vshll.u32 %v4034_v17, 16  ;;  %v2702_v32 = vrot.slane %v2700_v22, 5  ;;  %v2715_v46 = vshrl.u32 %v4035_v41, 16 }
  0x7c   : > { %v1032_v54 = vsel %vm5222_vm5, %v1030_v49, %v1031_v45  ;;  %v4037_v45 = vld [vmem:[%s5077_s26 + $0x38] sm:$0x1]  ;;  %v2718_v47 = vshll.u32 %v4035_v41, 16  ;;  %v2728_v49 = vshrl.u32 %v4036_v42, 16  ;;  %v4937_v18 = vld [vmem:[%s5077_s26 + $0x3c] sm:$0xff]  }
  0x7d   : > { %4475 = vmatpush3.bf16.msra.mxu1 %v4909_v48  ;;  %4603 = vmatpush3.bf16.msra.mxu0 %v4910_v51  ;;  %v956_v48 = vld [vmem:[%s5077_s26 + $0x5c] sm:$0x1]  ;;  %v3799_v58 = vcombine.low %v1029_v1, %v1032_v54  ;;  %v2724_v1 = vshll.u32 %v4036_v42, 16  ;;  %v2734_v26 = vshll.u32 %v4037_v45, 16  ;;  %v4934_v54 = vld [vmem:[%s5077_s26 + $0x30] sm:$0xff]  }
  0x7e   : > { %4476 = vmatprep.subr.bf16.mxu1 %v4912_v5  ;;  %4604 = vmatprep.subr.bf16.mxu0 %v4914_v7  ;;  %v1038_v51 = vrot.slane %v956_v48, 5  ;;  %v4042_v22 = vld [vmem:[%s5077_s26 + $0x4c] sm:$0xf]  ;;  %v4044_v42 = vld [vmem:[%s5077_s26 + $0x54] sm:$0xf] }
  0x80   : > { %4461 = vmatmul.mubr.bf16.gmra.mrb[4].mxu1 %v3796_v8  ;;  %4589 = vmatmul.mubr.bf16.gmra.mrb[4].mxu0 %v4913_v53  ;;  %v1039_v60 = vsel %vm5222_vm5, %v1037_v56, %v1038_v51  ;;  %v2670_v53 = vshll.u32 %v4029_v3, 16  ;;  %v2680_v8 = vshrl.u32 %v4030_v4, 16  ;;  %v2717_v51 = vrot.slane %v2715_v46, 4 }
  0x81   : > { %4477 = vmatpush3.bf16.msra.mxu1 %v4912_v5  ;;  %4605 = vmatpush3.bf16.msra.mxu0 %v4914_v7  ;;  %v3800_v62 = vcombine.low %v1036_v55, %v1039_v60  ;;  %v4031_v5 = vld [vmem:[%s5077_s26 + $0x20] sm:$0x1]  ;;  %v2676_v7 = vshll.u32 %v4030_v4, 16  ;;  %v4038_v55 = vld [vmem:[%s5077_s26 + $0x3c] sm:$0xf] }
  0x82   : > { %4478 = vmatprep.subr.bf16.mxu1 %v4915_v0  ;;  %4606 = vmatprep.subr.bf16.mxu0 %v4916_v12  ;;  %v2672_v10 = vrot.slane %v2670_v53, 5  ;;  %v4039_v60 = vld [vmem:[%s5077_s26 + $0x40] sm:$0xf]  ;;  %v2739_v3 = vshrl.u32 %v4038_v55, 16  ;;  %v2742_v4 = vshll.u32 %v4038_v55, 16 }
  0x83   : > { %4592 = vmatprep.mubr.bf16.mxu0 %v4917_v20  ;;  %4464 = vmatprep.mubr.bf16.mxu1 %v3797_v31  ;;  %v2678_v11 = vrot.slane %v2676_v7, 5  ;;  %v2696_v31 = vrot.slane %v2694_v21, 5  ;;  %v2748_v53 = vshll.u32 %v4039_v60, 16  ;;  %v2752_v7 = vshrl.u32 %v4039_v60, 16  ;;  %v4941_v60 = vld [vmem:[%s5077_s26 + $0x54] sm:$0xff]  }
  0x84   : > { %v2673_v19 = vor.u32 %v2672_v10, %v2669_v9  ;;  %v2744_v9 = vrot.slane %v2742_v4, 5 }
  0x85   : > { %4479 = vmatpush3.bf16.msra.mxu1 %v4915_v0  ;;  %4607 = vmatpush3.bf16.msra.mxu0 %v4916_v12  ;;  %v2686_v0 = vshll.u32 %v4031_v5, 16  ;;  %v2682_v12 = vrot.slane %v2680_v8, 4  ;;  %v2697_v40 = vor.u32 %v2696_v31, %v2693_v23  ;;  %v2754_v13 = vrot.slane %v2752_v7, 4  ;;  %v4043_v23 = vld [vmem:[%s5077_s26 + $0x50] sm:$0x1] }
  0x86   : > { %4480 = vmatprep.subr.bf16.mxu1 %v4918_v30  ;;  %4608 = vmatprep.subr.bf16.mxu0 %v4920_v35  ;;  %v2674_v29 = vrot.slane %v2673_v19, 4  ;;  %v4041_v19 = vld [vmem:[%s5077_s26 + $0x48] sm:$0xf]  ;;  %v2776_v31 = vshrl.u32 %v4042_v22, 16 }
  0x87   : > { %v2688_v14 = vrot.slane %v2686_v0, 5  ;;  %v2683_v20 = vor.u32 %v2682_v12, %v2678_v11  ;;  %v2698_v48 = vrot.slane %v2697_v40, 4  ;;  %v2741_v0 = vrot.slane %v2739_v3, 4 }
  0x88   : > { %4465 = vmatmul.mubr.bf16.gmra.mrb[8].mxu1 %v3798_v36  ;;  %4593 = vmatmul.mubr.bf16.gmra.mrb[8].mxu0 %v4919_v34  ;;  %v2706_v34 = vrot.slane %v2704_v25, 4  ;;  %v5520_v36 = vld [vmem:[%s5750_s1 + $0x208] sm:$0xff]   ;;  %v2679_v38 = vsel %vm5100_vm2, %v2674_v29, %v2678_v11  ;;  %v2750_v12 = vrot.slane %v2748_v53, 5  ;;  %v2763_v25 = vshrl.u32 %v4041_v19, 16 }
  0x89   : > { %4481 = vmatpush3.bf16.msra.mxu1 %v4918_v30  ;;  %4609 = vmatpush3.bf16.msra.mxu0 %v4920_v35  ;;  %v2684_v30 = vrot.slane %v2683_v20, 4  ;;  %v2712_v35 = vrot.slane %v2710_v27, 5  ;;  %v2703_v56 = vsel %vm5100_vm2, %v2698_v48, %v2702_v32  ;;  %v2745_v16 = vor.u32 %v2744_v9, %v2741_v0  ;;  %v4049_v53 = vld [vmem:[%s5077_s26 + $0x68] sm:$0x1] }
  0x8a   : > { %4482 = vmatprep.subr.bf16.mxu1 %v4921_v37  ;;  %4610 = vmatprep.subr.bf16.mxu0 %v4922_v39  ;;  %v2707_v44 = vor.u32 %v2706_v34, %v2702_v32  ;;  %v2755_v21 = vor.u32 %v2754_v13, %v2750_v12  ;;  %v2766_v27 = vshll.u32 %v4041_v19, 16  ;;  %v4938_v32 = vld [vmem:[%s5077_s26 + $0x48] sm:$0xff]   ;;  %v2778_v41 = vrot.slane %v2776_v31, 4  ;;  %v4942_v13 = vld [vmem:[%s5077_s26 + $0x60] sm:$0xff]  }
  0x8b   : > { %4596 = vmatprep.mubr.bf16.mxu0 %v4923_v43  ;;  %4468 = vmatprep.mubr.bf16.mxu1 %v3799_v58  ;;  %v2730_v58 = vrot.slane %v2728_v49, 4  ;;  %v2746_v29 = vrot.slane %v2745_v16, 4  ;;  %v2787_v48 = vshrl.u32 %v4044_v42, 16  ;;  %v2790_v49 = vshll.u32 %v4044_v42, 16  ;;  %v4050_v19 = vld [vmem:[%s5077_s26 + $0x6c] sm:$0xf] }
  0x8c   : > { %v2708_v50 = vrot.slane %v2707_v44, 4  ;;  %v2756_v34 = vrot.slane %v2755_v21, 4  ;;  %v2838_v31 = vshll.u32 %v4050_v19, 16 }
  0x8d   : > { %4483 = vmatpush3.bf16.msra.mxu1 %v4921_v37  ;;  %4611 = vmatpush3.bf16.msra.mxu0 %v4922_v39  ;;  %v4933_v37 = vld [vmem:[%s5077_s26 + $0x24] sm:$0xff]   ;;  %v2689_v39 = vsel %vm5100_vm2, %v2684_v30, %v2688_v14  ;;  %v5549_v14 = vld [vmem:[%s5750_s1 + $0x218] sm:$0xff]   ;;  %v2772_v30 = vshll.u32 %v4042_v22, 16 }
  0x8e   : > { %4484 = vmatprep.subr.bf16.mxu1 %v4924_v52  ;;  %4612 = vmatprep.subr.bf16.mxu0 %v4926_v57  ;;  %v4069_v43 = vcombine.low %v2679_v38, %v2689_v39  ;;  %v2782_v38 = vshll.u32 %v4043_v23, 16  ;;  %v2751_v39 = vsel %vm5100_vm2, %v2746_v29, %v2750_v12  ;;  %v2830_v12 = vshll.u32 %v4049_v53, 16  ;;  %v4052_v29 = vld [vmem:[%s5077_s26 + $0x74] sm:$0x1] }
  0x8f   : > { %v2774_v40 = vrot.slane %v2772_v30, 5  ;;  %v2835_v30 = vshrl.u32 %v4050_v19, 16  ;;  %v4102_v19 = vld [vmem:[%s5077_s26 + $0x5c] sm:$0x1] }
  0x90   : > { %4469 = vmatmul.mubr.bf16.gmra.mrb[12].mxu1 %v3800_v62  ;;  %4597 = vmatmul.mubr.bf16.gmra.mrb[12].mxu0 %v4925_v59  ;;  %v2736_v59 = vrot.slane %v2734_v26, 5  ;;  %v2713_v62 = vsel %vm5100_vm2, %v2708_v50, %v2712_v35  ;;  %v2765_v35 = vrot.slane %v2763_v25, 4  ;;  %v2784_v46 = vrot.slane %v2782_v38, 5  ;;  %v4939_v50 = vld [vmem:[%s5750_s1 + $0x220] sm:$0xff]   ;;  %v4051_v25 = vld [vmem:[%s5077_s26 + $0x70] sm:$0xf] }
  0x91   : > { %4485 = vmatpush3.bf16.msra.mxu1 %v4924_v52  ;;  %4613 = vmatpush3.bf16.msra.mxu0 %v4926_v57  ;;  %v2720_v52 = vrot.slane %v2718_v47, 5  ;;  %v2726_v57 = vrot.slane %v2724_v1, 5  ;;  %v4070_v5 = vcombine.low %v2703_v56, %v2713_v62  ;;  %v4046_v47 = vld [vmem:[%s5077_s26 + $0x5c] sm:$0x1]  ;;  %v2779_v1 = vor.u32 %v2778_v41, %v2774_v40 }
  0x92   : > { %4486 = vmatprep.subr.bf16.mxu1 %v4927_v61  ;;  %4614 = vmatprep.subr.bf16.mxu0 %v4928_v63  ;;  %v2806_v56 = vshll.u32 %v4046_v47, 16  ;;  %v2832_v23 = vrot.slane %v2830_v12, 5  ;;  %v2854_v41 = vshll.u32 %v4052_v29, 16  ;;  %v4100_v12 = vld [vmem:[%s5077_s26 + $0x54] sm:$0xe] }
  0x93   : > { %4488 = vmatprep.mubr.bf16.mxu1 %v4929_v2  ;;  %4616 = vmatprep.mubr.bf16.mxu0 %v4069_v43  ;;  %v4040_v2 = vld [vmem:[%s5077_s26 + $0x44] sm:$0x1]  ;;  %v2731_v6 = vor.u32 %v2730_v58, %v2726_v57  ;;  %v4045_v43 = vld [vmem:[%s5077_s26 + $0x58] sm:$0xf]  ;;  %v2792_v58 = vrot.slane %v2790_v49, 5  ;;  %v4114_v33 = vrot.slane %v4100_v12, 9 }
  0x94   : > { %v2758_v10 = vshll.u32 %v4040_v2, 16  ;;  %v2796_v26 = vshll.u32 %v4045_v43, 16  ;;  %v2800_v55 = vshrl.u32 %v4045_v43, 16  ;;  %v2808_v2 = vrot.slane %v2806_v56, 5  ;;  %v4098_v56 = vld [vmem:[%s5077_s26 + $0x4c] sm:$0xf] }
  0x95   : > { %4487 = vmatpush3.bf16.msra.mxu1 %v4927_v61  ;;  %4615 = vmatpush3.bf16.msra.mxu0 %v4928_v63  ;;  %v5539_v61 = vld [vmem:[%s5750_s1 + $0x210] sm:$0xff]   ;;  %v2721_v63 = vor.u32 %v2720_v52, %v2717_v51  ;;  %v2732_v11 = vrot.slane %v2731_v6, 4  ;;  %v5579_v51 = vld [vmem:[%s5750_s1 + $0x228] sm:$0xff]   ;;  %v4048_v6 = vld [vmem:[%s5077_s26 + $0x64] sm:$0xf] }
  0x96   : > { %4664 = vmatprep.subr.bf16.mxu1 %v4931_v28  ;;  %4632 = vmatprep.subr.bf16.mxu0 %v4931_v28  ;;  %v2760_v17 = vrot.slane %v2758_v10, 5  ;;  %v2820_v10 = vshll.u32 %v4048_v6, 16 }
  0x97   : > { %v2722_v8 = vrot.slane %v2721_v63, 4  ;;  %v2737_v20 = vsel %vm5100_vm2, %v2732_v11, %v2736_v59  ;;  %v2798_v59 = vrot.slane %v2796_v26, 5  ;;  %v2802_v63 = vrot.slane %v2800_v55, 4  ;;  %v4097_v55 = vld [vmem:[%s5077_s26 + $0x48] sm:$0xe] }
  0x98   : > { %4489 = vmatmul.mubr.bf16.vlgmr.msra.gmra.mrb[0].mxu1 %v4930_v15  ;;  %4617 = vmatmul.mubr.bf16.vlgmr.msra.gmra.mrb[0].mxu0 %v4070_v5  ;;  %v2761_v44 = vsel %vm5100_vm2, %v2756_v34, %v2760_v17  ;;  %v4047_v5 = vld [vmem:[%s5077_s26 + $0x60] sm:$0xf]  ;;  %v2824_v11 = vshrl.u32 %v4048_v6, 16  ;;  %v2822_v21 = vrot.slane %v2820_v10, 5 }
  0x99   : > { %4672 = vmatpush3.bf16.msra.mxu1 %v4931_v28  ;;  %4492 = vmatprep.mubr.bf16.mxu1 %v4933_v37  ;;  %v2727_v15 = vsel %vm5100_vm2, %v2722_v8, %v2726_v57  ;;  %v2768_v37 = vrot.slane %v2766_v27, 5  ;;  %v2780_v57 = vrot.slane %v2779_v1, 4  ;;  %v2803_v8 = vor.u32 %v2802_v63, %v2798_v59  ;;  %v4087_v1 = vld [vmem:[%s5077_s26 + $0x20] sm:$0x1] }
  0x9a   : > { %4665 = vmatprep.subr.bf16.mxu1 %v5520_v36  ;;  %4633 = vmatpush3.bf16.msra.mxu0 %v4931_v28  ;;  %v4071_v28 = vcombine.low %v2727_v15, %v2737_v20  ;;  %v2814_v0 = vshll.u32 %v4047_v5, 16  ;;  %v5596_v15 = vld [vmem:[%s5750_s1 + $0x230] sm:$0xff]   ;;  %v2826_v22 = vrot.slane %v2824_v11, 4 }
  0x9b   : > { %4634 = vmatprep.subr.bf16.mxu0 %v5520_v36  ;;  %v2769_v45 = vor.u32 %v2768_v37, %v2765_v35  ;;  %v2785_v3 = vsel %vm5100_vm2, %v2780_v57, %v2784_v46  ;;  %v2804_v16 = vrot.slane %v2803_v8, 4  ;;  %v2844_v35 = vshll.u32 %v4051_v25, 16  ;;  %v4090_v8 = vld [vmem:[%s5077_s26 + $0x2c] sm:$0x1] }
  0x9c   : > { %4620 = vmatprep.mubr.bf16.mxu0 %v4071_v28  ;;  %v2827_v34 = vor.u32 %v2826_v22, %v2822_v21  ;;  %v2848_v37 = vshrl.u32 %v4051_v25, 16  ;;  %v3160_v11 = vrot.slane %v4090_v8, 5 }
  0x9d   : > { %4673 = vmatpush3.bf16.msra.mxu1 %v5520_v36  ;;  %v2770_v52 = vrot.slane %v2769_v45, 4  ;;  %v2809_v27 = vsel %vm5100_vm2, %v2804_v16, %v2808_v2  ;;  %v2846_v43 = vrot.slane %v2844_v35, 5  ;;  %v4085_v45 = vld [vmem:[%s5077_s26 + $0x18] sm:$0xe] }
  0x9e   : > { %4666 = vmatprep.subr.bf16.mxu1 %v5539_v61  ;;  %4635 = vmatpush3.bf16.msra.mxu0 %v5520_v36  ;;  %v4072_v36 = vcombine.low %v2751_v39, %v2761_v44  ;;  %v2837_v39 = vrot.slane %v2835_v30, 4  ;;  %v2828_v42 = vrot.slane %v2827_v34, 4  ;;  %v2850_v44 = vrot.slane %v2848_v37, 4 }
  0x9f   : > { %4636 = vmatprep.subr.bf16.mxu0 %v5539_v61  ;;  %v2775_v62 = vsel %vm5100_vm2, %v2770_v52, %v2774_v40  ;;  %v2840_v40 = vrot.slane %v2838_v31, 5  ;;  %v4109_v49 = vrot.slane %v4085_v45, 9  ;;  %v4095_v45 = vld [vmem:[%s5077_s26 + $0x40] sm:$0xf] }
  0xa0   : > { %4493 = vmatmul.mubr.bf16.gmra.mrb[4].mxu1 %v4934_v54  ;;  %v2789_v54 = vrot.slane %v2787_v48, 4  ;;  %4621 = vmatmul.mubr.bf16.gmra.mrb[4].mxu0 %v4072_v36  ;;  %v4073_v7 = vcombine.low %v2775_v62, %v2785_v3  ;;  %v2856_v48 = vrot.slane %v2854_v41, 5  ;;  %v4086_v36 = vld [vmem:[%s5077_s26 + $0x1c] sm:$0xf]  ;;  %v2833_v26 = vsel %vm5100_vm2, %v2828_v42, %v2832_v23 }
  0xa1   : > { %4674 = vmatpush3.bf16.msra.mxu1 %v5539_v61  ;;  %4496 = vmatprep.mubr.bf16.mxu1 %v4937_v18  ;;  %v2816_v18 = vrot.slane %v2814_v0, 5  ;;  %v2841_v47 = vor.u32 %v2840_v40, %v2837_v39  ;;  %v3150_v52 = vrot.slane %v4086_v36, 5  ;;  %v3178_v62 = vrot.slane %v4098_v56, 5  ;;  %v4105_v39 = vld [vmem:[%s5077_s26 + $0x68] sm:$0x1] }
  0xa2   : > { %4667 = vmatprep.subr.bf16.mxu1 %v5549_v14  ;;  %4637 = vmatpush3.bf16.msra.mxu0 %v5539_v61  ;;  %v2793_v4 = vor.u32 %v2792_v58, %v2789_v54  ;;  %v2811_v61 = vshrl.u32 %v4047_v5, 16  ;;  %v3153_v54 = vrot.slane %v4087_v1, 5  ;;  %v4088_v5 = vld [vmem:[%s5077_s26 + $0x24] sm:$0xe]  ;;  %v4096_v36 = vld [vmem:[%s5077_s26 + $0x44] sm:$0x1] }
  0xa3   : > { %4638 = vmatprep.subr.bf16.mxu0 %v5549_v14  ;;  %4624 = vmatprep.mubr.bf16.mxu0 %v4073_v7  ;;  %v2842_v58 = vrot.slane %v2841_v47, 4  ;;  %v3151_v2 = vsel %vm5222_vm5, %v4109_v49, %v3150_v52  ;;  %v3152_v3 = vrot.slane %v3150_v52, 4  ;;  %v3180_v53 = vrot.slane %v3178_v62, 4  ;;  %v4089_v7 = vld [vmem:[%s5077_s26 + $0x28] sm:$0xf] }
  0xa4   : > { %v2794_v9 = vrot.slane %v2793_v4, 4  ;;  %v2813_v17 = vrot.slane %v2811_v61, 4  ;;  %v4110_v61 = vrot.slane %v4088_v5, 9  ;;  %v3157_v10 = vrot.slane %v4089_v7, 5  ;;  %v4106_v52 = vld [vmem:[%s5077_s26 + $0x6c] sm:$0xe] }
  0xa5   : > { %4675 = vmatpush3.bf16.msra.mxu1 %v5549_v14  ;;  %v3171_v1 = vrot.slane %v4095_v45, 5 }
  0xa6   : > { %4668 = vmatprep.subr.bf16.mxu1 %v4939_v50  ;;  %4639 = vmatpush3.bf16.msra.mxu0 %v5549_v14  ;;  %v2799_v20 = vsel %vm5100_vm2, %v2794_v9, %v2798_v59  ;;  %v5607_v14 = vld [vmem:[%s5750_s1 + $0x238] sm:$0xff]   ;;  %v2817_v28 = vor.u32 %v2816_v18, %v2813_v17  ;;  %v4099_v59 = vld [vmem:[%s5077_s26 + $0x50] sm:$0x1]  ;;  %v3154_v9 = vsel %vm5222_vm5, %v3152_v3, %v3153_v54  ;;  %v3159_v23 = vrot.slane %v3157_v10, 4 }
  0xa7   : > { %4640 = vmatprep.subr.bf16.mxu0 %v4939_v50  ;;  %v3181_v4 = vrot.slane %v4099_v59, 5  ;;  %v4133_v17 = vcombine.low %v3151_v2, %v3154_v9  ;;  %v3158_v22 = vsel %vm5222_vm5, %v4110_v61, %v3157_v10  ;;  %v4107_v54 = vld [vmem:[%s5077_s26 + $0x70] sm:$0xf]  ;;  %v4108_v59 = vld [vmem:[%s5077_s26 + $0x74] sm:$0x1] }
  0xa8   : > { %4497 = vmatmul.mubr.bf16.gmra.mrb[8].mxu1 %v4938_v32  ;;  %v4074_v32 = vcombine.low %v2799_v20, %v2809_v27  ;;  %v2818_v38 = vrot.slane %v2817_v28, 4  ;;  %v4091_v20 = vld [vmem:[%s5077_s26 + $0x30] sm:$0xe]  ;;  %v4092_v27 = vld [vmem:[%s5077_s26 + $0x34] sm:$0xf]  ;;  %v3188_v28 = vrot.slane %v4102_v19, 5  ;;  %v3161_v34 = vsel %vm5222_vm5, %v3159_v23, %v3160_v11 }
  0xa9   : > { %4676 = vmatpush3.bf16.msra.mxu1 %v4939_v50  ;;  %4500 = vmatprep.mubr.bf16.mxu1 %v4941_v60  ;;  %v4113_v60 = vrot.slane %v4097_v55, 9  ;;  %v3182_v18 = vsel %vm5222_vm5, %v3180_v53, %v3181_v4  ;;  %v4111_v29 = vrot.slane %v4091_v20, 9  ;;  %v3164_v30 = vrot.slane %v4092_v27, 5 }
  0xaa   : > { %4669 = vmatprep.subr.bf16.mxu1 %v5579_v51  ;;  %4641 = vmatpush3.bf16.msra.mxu0 %v4939_v50  ;;  %v2823_v46 = vsel %vm5100_vm2, %v2818_v38, %v2822_v21  ;;  %v2851_v50 = vor.u32 %v2850_v44, %v2846_v43  ;;  %v4104_v38 = vld [vmem:[%s5077_s26 + $0x64] sm:$0xf]  ;;  %v4094_v44 = vld [vmem:[%s5077_s26 + $0x3c] sm:$0xe]  ;;  %v3202_v2 = vrot.slane %v4108_v59, 5 }
  0xab   : > { %4625 = vmatmul.mubr.bf16.gmra.mrb[8].mxu0 %v4074_v32  ;;  %4642 = vmatprep.subr.bf16.mxu0 %v5579_v51  ;;  %v4075_v57 = vcombine.low %v2823_v46, %v2833_v26  ;;  %v3179_v6 = vsel %vm5222_vm5, %v4113_v60, %v3178_v62  ;;  %v4103_v32 = vld [vmem:[%s5077_s26 + $0x60] sm:$0xe]  ;;  %v3165_v41 = vsel %vm5222_vm5, %v4111_v29, %v3164_v30  ;;  %v3166_v42 = vrot.slane %v3164_v30, 4 }
  0xac   : > { %v2852_v63 = vrot.slane %v2851_v50, 4  ;;  %v4137_v21 = vcombine.low %v3179_v6, %v3182_v18  ;;  %v4115_v40 = vrot.slane %v4103_v32, 9  ;;  %v4134_v46 = vcombine.low %v3158_v22, %v3161_v34 }
  0xad   : > { %4677 = vmatpush3.bf16.msra.mxu1 %v5579_v51  ;;  %4628 = vmatprep.mubr.bf16.mxu0 %v4075_v57  ;;  %v4112_v56 = vrot.slane %v4094_v44, 9  ;;  %v3173_v57 = vrot.slane %v3171_v1, 4  ;;  %v4116_v62 = vrot.slane %v4106_v52, 9 }
  0xae   : > { %4670 = vmatprep.subr.bf16.mxu1 %v5596_v15  ;;  %4643 = vmatpush3.bf16.msra.mxu0 %v5579_v51  ;;  %v2847_v51 = vsel %vm5100_vm2, %v2842_v58, %v2846_v43  ;;  %v2857_v0 = vsel %vm5100_vm2, %v2852_v63, %v2856_v48  ;;  %v3192_v43 = vrot.slane %v4104_v38, 5  ;;  %v3195_v48 = vrot.slane %v4105_v39, 5 }
  0xaf   : > { %4644 = vmatprep.subr.bf16.mxu0 %v5596_v15  ;;  %v4076_v16 = vcombine.low %v2847_v51, %v2857_v0  ;;  %v3174_v58 = vrot.slane %v4096_v36, 5  ;;  %v3199_v63 = vrot.slane %v4107_v54, 5  ;;  %v3172_v51 = vsel %vm5222_vm5, %v4112_v56, %v3171_v1 }
  0xb0   : > { %4501 = vmatmul.mubr.bf16.gmra.mrb[12].mxu1 %v4942_v13  ;;  %v4101_v13 = vld [vmem:[%s5077_s26 + $0x58] sm:$0xf]  ;;  %v3193_v26 = vsel %vm5222_vm5, %v4115_v40, %v3192_v43  ;;  %v3194_v50 = vrot.slane %v3192_v43, 4 }
  0xb1   : > { %4678 = vmatpush3.bf16.msra.mxu1 %v5596_v15  ;;  %v3185_v25 = vrot.slane %v4101_v13, 5  ;;  %4656 = vmatprep.mubr.bf16.mxu1 %v4137_v21  ;;  %v3200_v4 = vsel %vm5222_vm5, %v4116_v62, %v3199_v63  ;;  %v3201_v5 = vrot.slane %v3199_v63, 4  ;;  %v3175_v6 = vsel %vm5222_vm5, %v3173_v57, %v3174_v58 }
  0xb2   : > { %4671 = vmatprep.subr.bf16.mxu1 %v5607_v14  ;;  %4645 = vmatpush3.bf16.msra.mxu0 %v5596_v15  ;;  %v4093_v15 = vld [vmem:[%s5077_s26 + $0x38] sm:$0x1]  ;;  %v3196_v60 = vsel %vm5222_vm5, %v3194_v50, %v3195_v48  ;;  %v4136_v8 = vcombine.low %v3172_v51, %v3175_v6  ;;  %s3715_s26 = sshll.u32 %s4967_s12, 4 }
  0xb3   : > { %4646 = vmatprep.subr.bf16.mxu0 %v5607_v14  ;;  %4629 = vmatmul.mubr.bf16.gmra.mrb[12].mxu0 %v4076_v16  ;;  %v3167_v31 = vrot.slane %v4093_v15, 5  ;;  %v3186_v35 = vsel %vm5222_vm5, %v4114_v33, %v3185_v25  ;;  %v3187_v37 = vrot.slane %v3185_v25, 4  ;;  %v4139_v3 = vcombine.low %v3193_v26, %v3196_v60  ;;  %p216_p6 = scmp.lt.s32.totalorder %s3715_s26, 31 }
  0xb4   : > { %4648 = vmatprep.mubr.bf16.mxu0 %v4133_v17  ;;  %v3203_v53 = vsel %vm5222_vm5, %v3201_v5, %v3202_v2 }
  0xb5   : > { %4679 = vmatpush3.bf16.msra.mxu1 %v5607_v14  ;;  %v3189_v47 = vsel %vm5222_vm5, %v3187_v37, %v3188_v28  ;;  %v4140_v7 = vcombine.low %v3200_v4, %v3203_v53  ;;  %s5770_s26 = smov (!%p216_p6, %s3715_s26), 31 }
  0xb6   : > { %4647 = vmatpush3.bf16.msra.mxu0 %v5607_v14  ;;  %v4138_v49 = vcombine.low %v3186_v35, %v3189_v47  ;;  %v3168_v14 = vsel %vm5222_vm5, %v3166_v42, %v3167_v31  ;;  %v5699_v42 = vld [vmem:[%s5751_s2] ss:$0 sm:$0xff]  ;;  %s222_s12 = sadd.s32 %s3716_s8, %s5770_s26 }
  0xb7   : > { %v4135_v55 = vcombine.low %v3165_v41, %v3168_v14  ;;  %s3717_s13 = sshll.u32 %s222_s12, 2 }
  0xb8   : > { %4657 = vmatmul.mubr.bf16.vlgmr.msra.gmra.mrb[16].mxu1 %v4138_v49  ;;  %s5711_s20 = scalar_lea.vmem %s5752_s3, %s3717_s13 }
  0xb9   : > { %4660 = vmatprep.mubr.bf16.mxu1 %v4139_v3 }
  0xbb   : > { %4649 = vmatmul.mubr.bf16.vlgmr.msra.gmra.mrb[0].mxu0 %v4134_v46 }
  0xbc   : > { %4652 = vmatprep.mubr.bf16.mxu0 %v4135_v55 }
  0xc0   : > { %4661 = vmatmul.mubr.bf16.gmra.mrb[20].mxu1 %v4140_v7 }
  0xc3   : > { %4653 = vmatmul.mubr.bf16.gmra.mrb[4].mxu0 %v4136_v8 }
 0x16b   : > { %v4490_v61 = vpop.f32.mrb[0].mxu1 }
 0x16c   : > { %v1449_v0 = vpop.f32.mrb[1].mxu1 }
 0x16d   : > { %v4491_v9 = vpop.f32.mrb[2].mxu1 }
 0x16e   : > { %v1452_v10 = vpop.f32.mrb[3].mxu1 }
 0x173   : > { %v5686_v11 = vpop.f32.mrb[4].mxu1 }
 0x174   : > { %v5688_v12 = vpop.f32.mrb[5].mxu1 }
 0x175   : > { %v5690_v13 = vpop.f32.mrb[6].mxu1 }
 0x176   : > { %v5692_v16 = vpop.f32.mrb[7].mxu1 }
 0x17b   : > { %v4498_v17 = vpop.f32.mrb[8].mxu1 }
 0x17c   : > { %v1481_v24 = vpop.f32.mrb[9].mxu1 }
 0x17d   : > { %v4499_v18 = vpop.f32.mrb[10].mxu1 }
 0x17e   : > { %v1484_v19 = vpop.f32.mrb[11].mxu1  ;;  %v4626_v21 = vpop.f32.mrb[8].mxu0 }
 0x17f   : > { %v4688_v23 = vadd.f32 %v4626_v21, %v4498_v17  ;;  %v3021_v25 = vpop.f32.mrb[9].mxu0 }
 0x180   : > { %v4690_v15 = vadd.f32 %v3021_v25, %v1481_v24  ;;  %v4627_v28 = vpop.f32.mrb[10].mxu0 }
 0x181   : > { %v4692_v29 = vadd.f32 %v4627_v28, %v4499_v18  ;;  %v3024_v30 = vpop.f32.mrb[11].mxu0 }
 0x182   : > { %v4694_v31 = vadd.f32 %v3024_v30, %v1484_v19 }
 0x183   : > { %v4502_v33 = vpop.f32.mrb[12].mxu1 }
 0x184   : > { %v1497_v20 = vpop.f32.mrb[13].mxu1 }
 0x185   : > { %v4503_v22 = vpop.f32.mrb[14].mxu1 }
 0x186   : > { %v1500_v27 = vpop.f32.mrb[15].mxu1  ;;  %v4630_v32 = vpop.f32.mrb[12].mxu0 }
 0x187   : > { %v4696_v34 = vadd.f32 %v4630_v32, %v4502_v33  ;;  %v3037_v35 = vpop.f32.mrb[13].mxu0 }
 0x188   : > { %v4698_v37 = vadd.f32 %v3037_v35, %v1497_v20  ;;  %v4631_v38 = vpop.f32.mrb[14].mxu0 }
 0x189   : > { %v4700_v39 = vadd.f32 %v4631_v38, %v4503_v22  ;;  %v3040_v40 = vpop.f32.mrb[15].mxu0 }
 0x18a   : > { %v4702_v41 = vadd.f32 %v3040_v40, %v1500_v27 }
 0x18b   : > { %v4658_v43 = vpop.f32.mrb[16].mxu1 }
 0x18c   : > { %v4689_v44 = vadd.f32 %v4688_v23, %v4658_v43  ;;  %v3367_v45 = vpop.f32.mrb[17].mxu1 }
 0x18d   : > { %v4691_v47 = vadd.f32 %v4690_v15, %v3367_v45  ;;  %v4659_v48 = vpop.f32.mrb[18].mxu1 }
 0x18e   : > { %v4650_v46 = vpop.f32.mrb[0].mxu0  ;;  %v3483_v1 = vadd.f32 %v4689_v44, %v5699_v42  ;;  %v4693_v14 = vadd.f32 %v4692_v29, %v4659_v48  ;;  %v3370_v26 = vpop.f32.mrb[19].mxu1 }
 0x18f   : > { %v4680_v36 = vadd.f32 %v4650_v46, %v4490_v61  ;;  %v3335_v49 = vpop.f32.mrb[1].mxu0  ;;  %v3481_v52 = vadd.f32 %v4691_v47, %v5699_v42  ;;  %v4695_v55 = vadd.f32 %v4694_v31, %v3370_v26 }
 0x190   : > { %v4681_v50 = vadd.f32 %v3335_v49, %v1449_v0  ;;  %v4651_v54 = vpop.f32.mrb[2].mxu0  ;;  %v3484_v58 = vadd.f32 %v4693_v14, %v5699_v42  ;;  %v3499_v2 = vmax.f32 %v3483_v1, 0.0 }
 0x191   : > { %v3475_v56 = vadd.f32 %v4680_v36, %v5699_v42  ;;  %v4682_v57 = vadd.f32 %v4651_v54, %v4491_v9  ;;  %v3338_v59 = vpop.f32.mrb[3].mxu0  ;;  %v3482_v63 = vadd.f32 %v4695_v55, %v5699_v42  ;;  %v3497_v5 = vmax.f32 %v3481_v52, 0.0 }
 0x192   : > { %v3473_v60 = vadd.f32 %v4681_v50, %v5699_v42  ;;  %v4683_v62 = vadd.f32 %v3338_v59, %v1452_v10  ;;  %v3500_v4 = vmax.f32 %v3484_v58, 0.0 }
 0x193   : > { %v3476_v3 = vadd.f32 %v4682_v57, %v5699_v42  ;;  %v3498_v6 = vmax.f32 %v3482_v63, 0.0  ;;  %v4662_v53 = vpop.f32.mrb[20].mxu1  ;;  %v3491_v7 = vmax.f32 %v3475_v56, 0.0 }
 0x194   : > { %v3474_v51 = vadd.f32 %v4683_v62, %v5699_v42  ;;  %v4213_v61 = vpack.c.bf16 %v3500_v4, %v3499_v2  ;;  %v4697_v0 = vadd.f32 %v4696_v34, %v4662_v53  ;;  %v3383_v9 = vpop.f32.mrb[21].mxu1  ;;  %v3489_v10 = vmax.f32 %v3473_v60, 0.0 }
 0x195   : > { %v3492_v8 = vmax.f32 %v3476_v3, 0.0  ;;  %v4208_v24 = vpack.c.bf16 %v3498_v6, %v3497_v5  ;;  %v4699_v19 = vadd.f32 %v4698_v37, %v3383_v9  ;;  %v4663_v33 = vpop.f32.mrb[22].mxu1 }
 0x196   : > { %v3490_v17 = vmax.f32 %v3474_v51, 0.0  ;;  %v4654_v18 = vpop.f32.mrb[4].mxu0  ;;  %4229 = vst [vmem:[%s5711_s20 + $0x28] sm:$0xff] %v4213_v61   ;;  %v3487_v22 = vadd.f32 %v4697_v0, %v5699_v42  ;;  %v4701_v25 = vadd.f32 %v4700_v39, %v4663_v33  ;;  %v3386_v27 = vpop.f32.mrb[23].mxu1 }
 0x197   : > { %v4193_v20 = vpack.c.bf16 %v3492_v8, %v3491_v7  ;;  %v4684_v21 = vadd.f32 %v4654_v18, %v5686_v11  ;;  %v3351_v23 = vpop.f32.mrb[5].mxu0  ;;  %4228 = vst [vmem:[%s5711_s20 + $0x20] sm:$0xff] %v4208_v24   ;;  %v3485_v29 = vadd.f32 %v4699_v19, %v5699_v42  ;;  %v4703_v31 = vadd.f32 %v4702_v41, %v3386_v27 }
 0x198   : > { %v4188_v15 = vpack.c.bf16 %v3490_v17, %v3489_v10  ;;  %v4685_v28 = vadd.f32 %v3351_v23, %v5688_v12  ;;  %v4655_v30 = vpop.f32.mrb[6].mxu0  ;;  %v3488_v11 = vadd.f32 %v4701_v25, %v5699_v42  ;;  %v3503_v39 = vmax.f32 %v3487_v22, 0.0 }
 0x199   : > { %4225 = vst [vmem:[%s5711_s20 + $0x8] sm:$0xff] %v4193_v20   ;;  %v3479_v32 = vadd.f32 %v4684_v21, %v5699_v42  ;;  %v4686_v34 = vadd.f32 %v4655_v30, %v5690_v13  ;;  %v3354_v35 = vpop.f32.mrb[7].mxu0  ;;  %v3486_v12 = vadd.f32 %v4703_v31, %v5699_v42  ;;  %v3501_v43 = vmax.f32 %v3485_v29, 0.0 }
 0x19a   : > { %4189 = vst [vmem:[%s5711_s20] sm:$0xff] %v4188_v15   ;;  %v3477_v37 = vadd.f32 %v4685_v28, %v5699_v42  ;;  %v4687_v38 = vadd.f32 %v3354_v35, %v5692_v16  ;;  %v3504_v41 = vmax.f32 %v3488_v11, 0.0 }
 0x19b   : > { %v3480_v40 = vadd.f32 %v4686_v34, %v5699_v42  ;;  %v3502_v44 = vmax.f32 %v3486_v12, 0.0  ;;  %v3495_v45 = vmax.f32 %v3479_v32, 0.0 }
 0x19c   : > { %v3478_v13 = vadd.f32 %v4687_v38, %v5699_v42  ;;  %v4223_v47 = vpack.c.bf16 %v3504_v41, %v3503_v39  ;;  %v3493_v48 = vmax.f32 %v3477_v37, 0.0 }
 0x19d   : > { %v3496_v46 = vmax.f32 %v3480_v40, 0.0  ;;  %v4218_v1 = vpack.c.bf16 %v3502_v44, %v3501_v43 }
 0x19e   : > { %v3494_v36 = vmax.f32 %v3478_v13, 0.0  ;;  %4231 = vst [vmem:[%s5711_s20 + $0x38] sm:$0xff] %v4223_v47  }
 0x19f   : > { %v4203_v16 = vpack.c.bf16 %v3496_v46, %v3495_v45  ;;  %4230 = vst [vmem:[%s5711_s20 + $0x30] sm:$0xff] %v4218_v1  }
 0x1a0   : > { %v4198_v49 = vpack.c.bf16 %v3494_v36, %v3493_v48 }
 0x1a1   : > { %4227 = vst [vmem:[%s5711_s20 + $0x18] sm:$0xff] %v4203_v16  }
 0x1a2   : > { %4226 = vst [vmem:[%s5711_s20 + $0x10] sm:$0xff] %v4198_v49  }
 0x1a3 PF: > { %s13_s16 = sadd.s32 1, %s4983_s16   ;;  %s5757_s12 = smov %s4975_s14 }
 0x1a4   : > { %p10_p7 = scmp.ge.s32.totalorder %s13_s16, 6   ;;  %s5758_s13 = smov %s4979_s15 }
 0x1a5   : > { %s5759_s14 = smov %s5762_s17  ;;  %s5760_s15 = smov %s5766_s18 }
 0x1a6   :  { %12 = sbr.rel (!%p10_p7) target bundleno = 3 (0x3), region = 77 }

</bundles_post_ra>
